<compile_context>
chip_gen: v6e
topology: v6e:2x2x1
jax: 0.10.0
libtpu: 0.0.40
codegen_flags: <defaults>
</compile_context>

<pallas_src>
import functools

import jax
import jax.numpy as jnp
from jax.experimental import pallas as pl
from jax.experimental.pallas import tpu as pltpu


# --------------------------------------------------------------------------- #
# In-kernel 3x3 "same" convolution on a flattened (H*W, C) activation          #
# --------------------------------------------------------------------------- #
def _conv3x3_flat(a, w_ref, c, H, W):
    """3x3 / pad=1 conv of a flattened (H*W, c) bf16 value.

    `w_ref` holds the (BN-folded) weight as (9*c, cout), taps stored in
    (dh, dw) row-major order.  Each tap is one shifted matmul; the shift is a
    zero-filled concatenation along the sublane axis plus a row-boundary mask,
    so the kernel never reshapes to (H, W, C) and im2col never hits HBM.
    Returns an f32 (H*W, cout) accumulator.
    """
    HW = H * W
    col = jax.lax.broadcasted_iota(jnp.int32, (HW, 1), 0) % W
    not_last = jnp.where(col == W - 1, 0.0, 1.0).astype(a.dtype)   # kills w+1 wrap
    not_first = jnp.where(col == 0, 0.0, 1.0).astype(a.dtype)      # kills w-1 wrap

    acc = None
    t = 0
    for dh in (-1, 0, 1):
        for dw in (-1, 0, 1):
            s = dh * W + dw
            if s > 0:
                shifted = jnp.concatenate(
                    [a[s:, :], jnp.zeros((s, c), a.dtype)], axis=0)
            elif s < 0:
                shifted = jnp.concatenate(
                    [jnp.zeros((-s, c), a.dtype), a[:HW + s, :]], axis=0)
            else:
                shifted = a
            if dw == 1:
                shifted = shifted * not_last
            elif dw == -1:
                shifted = shifted * not_first
            part = jnp.dot(shifted, w_ref[pl.ds(t * c, c), :],
                           preferred_element_type=jnp.float32)
            acc = part if acc is None else acc + part
            t += 1
    return acc


# --------------------------------------------------------------------------- #
# Fused block kernels (one grid step == one batch element)                     #
# --------------------------------------------------------------------------- #
def _basic_block_kernel(x_ref, w1_ref, b1_ref, w2_ref, b2_ref, ws_ref, bs_ref,
                        o_ref, *, H, W, cin, cmid):
    """BasicBlock: relu(conv3x3+BN) -> conv3x3+BN, + conv1x1(x)+BN, -> relu."""
    x = x_ref[...]                                                  # (HW, cin) bf16
    h1 = _conv3x3_flat(x, w1_ref, cin, H, W) + b1_ref[...]
    h1 = jnp.maximum(h1, 0.0).astype(jnp.bfloat16)                  # (HW, cmid)
    h2 = _conv3x3_flat(h1, w2_ref, cmid, H, W) + b2_ref[...]        # (HW, cout) f32
    sc = jnp.dot(x, ws_ref[...], preferred_element_type=jnp.float32) + bs_ref[...]
    o_ref[...] = jnp.maximum(h2 + sc, 0.0).astype(o_ref.dtype)


def _bottleneck_kernel(x_ref, w1_ref, b1_ref, w2_ref, b2_ref, w3_ref, b3_ref,
                       *rest, H, W, cmid, proj, se):
    """SE-bottleneck: 1x1 -> 3x3 -> 1x1, SE, residual add, ReLU — all in VMEM."""
    i = 0
    if proj:
        ws_ref, bs_ref = rest[i], rest[i + 1]
        i += 2
    if se:
        sw1_ref, sb1_ref, sw2_ref, sb2_ref = rest[i], rest[i + 1], rest[i + 2], rest[i + 3]
        i += 4
    o_ref = rest[i]

    x = x_ref[...]                                                  # (HW, cin) bf16
    # conv1 (1x1) + folded-BN bias + ReLU
    h1 = jnp.dot(x, w1_ref[...], preferred_element_type=jnp.float32) + b1_ref[...]
    h1 = jnp.maximum(h1, 0.0).astype(jnp.bfloat16)                  # (HW, cmid)
    # conv2 (3x3, pad=1) via nine in-VMEM shifted matmuls, + bias + ReLU
    h2 = _conv3x3_flat(h1, w2_ref, cmid, H, W) + b2_ref[...]
    h2 = jnp.maximum(h2, 0.0).astype(jnp.bfloat16)                  # (HW, cmid)
    # conv3 (1x1) + bias (no ReLU before the residual add)
    h3 = jnp.dot(h2, w3_ref[...], preferred_element_type=jnp.float32) + b3_ref[...]
    # shortcut (projection if cin != cout)
    if proj:
        sc = jnp.dot(x, ws_ref[...], preferred_element_type=jnp.float32) + bs_ref[...]
    else:
        sc = x.astype(jnp.float32)
    # squeeze-excite on this batch element: GAP over the HW rows, two tiny FCs
    if se:
        m = jnp.mean(h3, axis=0, keepdims=True).astype(jnp.bfloat16)     # (1, cout)
        z = jnp.dot(m, sw1_ref[...], preferred_element_type=jnp.float32) + sb1_ref[...]
        z = jnp.maximum(z, 0.0).astype(jnp.bfloat16)
        z = jnp.dot(z, sw2_ref[...], preferred_element_type=jnp.float32) + sb2_ref[...]
        z = jax.nn.sigmoid(z)                                            # (1, cout) f32
        h3 = h3 * z
    o_ref[...] = jnp.maximum(h3 + sc, 0.0).astype(o_ref.dtype)


# --------------------------------------------------------------------------- #
# Wrappers: one pallas_call per block, grid over batch                         #
# --------------------------------------------------------------------------- #
def basic_block_pallas(p, x):
    N, H, W, cin = x.shape
    cmid = p["b1"].shape[1]
    cout = p["b2"].shape[1]
    HW = H * W
    out = pl.pallas_call(
        functools.partial(_basic_block_kernel, H=H, W=W, cin=cin, cmid=cmid),
        out_shape=jax.ShapeDtypeStruct((N * HW, cout), jnp.bfloat16),
        grid_spec=pltpu.PrefetchScalarGridSpec(
            num_scalar_prefetch=0,
            grid=(N,),
            in_specs=[
                pl.BlockSpec((HW, cin), lambda n: (n, 0)),
                pl.BlockSpec((9 * cin, cmid), lambda n: (0, 0)),
                pl.BlockSpec((1, cmid), lambda n: (0, 0)),
                pl.BlockSpec((9 * cmid, cout), lambda n: (0, 0)),
                pl.BlockSpec((1, cout), lambda n: (0, 0)),
                pl.BlockSpec((cin, cout), lambda n: (0, 0)),
                pl.BlockSpec((1, cout), lambda n: (0, 0)),
            ],
            out_specs=pl.BlockSpec((HW, cout), lambda n: (n, 0)),
        ),
        compiler_params=pltpu.CompilerParams(dimension_semantics=("parallel",)),
    )(x.reshape(N * HW, cin), p["w1"], p["b1"], p["w2"], p["b2"], p["ws"], p["bs"])
    return out.reshape(N, H, W, cout)


def bottleneck_block_pallas(p, x):
    N, H, W, cin = x.shape
    cmid = p["b1"].shape[1]
    cout = p["b3"].shape[1]
    HW = H * W
    proj = "ws" in p
    se = "se_w1" in p

    args = [x.reshape(N * HW, cin), p["w1"], p["b1"], p["w2"], p["b2"], p["w3"], p["b3"]]
    in_specs = [
        pl.BlockSpec((HW, cin), lambda n: (n, 0)),
        pl.BlockSpec((cin, cmid), lambda n: (0, 0)),
        pl.BlockSpec((1, cmid), lambda n: (0, 0)),
        pl.BlockSpec((9 * cmid, cmid), lambda n: (0, 0)),
        pl.BlockSpec((1, cmid), lambda n: (0, 0)),
        pl.BlockSpec((cmid, cout), lambda n: (0, 0)),
        pl.BlockSpec((1, cout), lambda n: (0, 0)),
    ]
    if proj:
        args += [p["ws"], p["bs"]]
        in_specs += [pl.BlockSpec((cin, cout), lambda n: (0, 0)),
                     pl.BlockSpec((1, cout), lambda n: (0, 0))]
    if se:
        cr = p["se_b1"].shape[1]
        args += [p["se_w1"], p["se_b1"], p["se_w2"], p["se_b2"]]
        in_specs += [pl.BlockSpec((cout, cr), lambda n: (0, 0)),
                     pl.BlockSpec((1, cr), lambda n: (0, 0)),
                     pl.BlockSpec((cr, cout), lambda n: (0, 0)),
                     pl.BlockSpec((1, cout), lambda n: (0, 0))]

    out = pl.pallas_call(
        functools.partial(_bottleneck_kernel, H=H, W=W, cmid=cmid, proj=proj, se=se),
        out_shape=jax.ShapeDtypeStruct((N * HW, cout), jnp.bfloat16),
        grid_spec=pltpu.PrefetchScalarGridSpec(
            num_scalar_prefetch=0,
            grid=(N,),
            in_specs=in_specs,
            out_specs=pl.BlockSpec((HW, cout), lambda n: (n, 0)),
        ),
        compiler_params=pltpu.CompilerParams(dimension_semantics=("parallel",)),
    )(*args)
    return out.reshape(N, H, W, cout)


# --------------------------------------------------------------------------- #
# XLA fallback for skinny shapes (per the review) + glue ops                   #
# --------------------------------------------------------------------------- #
def _im2col3x3(x):
    """(N,H,W,C) -> (N*H*W, 9*C), taps in the same (dh, dw) order as the kernel."""
    N, H, W, C = x.shape
    xp = jnp.pad(x, ((0, 0), (1, 1), (1, 1), (0, 0)))
    cols = [xp[:, dh:dh + H, dw:dw + W, :] for dh in range(3) for dw in range(3)]
    return jnp.concatenate(cols, axis=-1).reshape(N * H * W, 9 * C)


def bottleneck_block_xla(p, x):
    """Reference / fallback path for tiny spatial sizes (2x2, 1x1 here)."""
    N, H, W, cin = x.shape
    cout = p["b3"].shape[1]
    M = N * H * W
    xm = x.reshape(M, cin)
    h1 = jnp.dot(xm, p["w1"], preferred_element_type=jnp.float32) + p["b1"]
    h1 = jnp.maximum(h1, 0.0).astype(jnp.bfloat16)
    h2 = jnp.dot(_im2col3x3(h1.reshape(N, H, W, -1)), p["w2"],
                 preferred_element_type=jnp.float32) + p["b2"]
    h2 = jnp.maximum(h2, 0.0).astype(jnp.bfloat16)
    h3 = jnp.dot(h2, p["w3"], preferred_element_type=jnp.float32) + p["b3"]
    if "ws" in p:
        sc = jnp.dot(xm, p["ws"], preferred_element_type=jnp.float32) + p["bs"]
    else:
        sc = xm.astype(jnp.float32)
    if "se_w1" in p:
        m = jnp.mean(h3.reshape(N, H * W, cout), axis=1)                 # (N, cout)
        z = jnp.dot(m.astype(jnp.bfloat16), p["se_w1"],
                    preferred_element_type=jnp.float32) + p["se_b1"]
        z = jnp.maximum(z, 0.0).astype(jnp.bfloat16)
        z = jnp.dot(z, p["se_w2"], preferred_element_type=jnp.float32) + p["se_b2"]
        z = jax.nn.sigmoid(z)
        h3 = (h3.reshape(N, H * W, cout) * z[:, None, :]).reshape(M, cout)
    out = jnp.maximum(h3 + sc, 0.0)
    return out.reshape(N, H, W, cout).astype(jnp.bfloat16)


def bottleneck_block(p, x):
    H, W = x.shape[1], x.shape[2]
    if (H * W) % 8 == 0:              # (8,128)-friendly block -> fused Pallas kernel
        return bottleneck_block_pallas(p, x)
    return bottleneck_block_xla(p, x)  # skinny late blocks stay in XLA (review)


def maxpool2(x):
    N, H, W, C = x.shape
    return x.reshape(N, H // 2, 2, W // 2, 2, C).max(axis=(2, 4))


# --------------------------------------------------------------------------- #
# Deterministic synthetic parameters (BN scale folded into bf16 weights)       #
# --------------------------------------------------------------------------- #
class ParamGen:
    def __init__(self, seed=0):
        self.key = jax.random.PRNGKey(seed)

    def _next(self):
        self.key, sub = jax.random.split(self.key)
        return sub

    def conv(self, k_in, c_out):
        w = (jax.random.normal(self._next(), (k_in, c_out), jnp.float32)
             * float(k_in) ** -0.5)
        bn_scale = 1.0 + 0.05 * jax.random.normal(self._next(), (1, c_out), jnp.float32)
        bn_bias = 0.05 * jax.random.normal(self._next(), (1, c_out), jnp.float32)
        # BN scale folded into the weight at build time (review item).
        return (w * bn_scale).astype(jnp.bfloat16), bn_bias

    def linear(self, c_in, c_out):
        w = (jax.random.normal(self._next(), (c_in, c_out), jnp.float32)
             * float(c_in) ** -0.5)
        return w.astype(jnp.bfloat16), jnp.zeros((1, c_out), jnp.float32)


def make_basic(pg, cin, cmid, cout):
    p = {}
    p["w1"], p["b1"] = pg.conv(9 * cin, cmid)
    p["w2"], p["b2"] = pg.conv(9 * cmid, cout)
    p["ws"], p["bs"] = pg.conv(cin, cout)          # projection shortcut (cin != cout)
    return p


def make_bottleneck(pg, cin, cmid, cout, apply_se=True):
    p = {}
    p["w1"], p["b1"] = pg.conv(cin, cmid)
    p["w2"], p["b2"] = pg.conv(9 * cmid, cmid)
    p["w3"], p["b3"] = pg.conv(cmid, cout)
    if apply_se:
        cr = max(cout // 16, 8)                    # SE hidden dim, kept 8-aligned
        p["se_w1"], p["se_b1"] = pg.linear(cout, cr)
        p["se_w2"], p["se_b2"] = pg.linear(cr, cout)
    if cin != cout:
        p["ws"], p["bs"] = pg.conv(cin, cout)
    return p


def build_model(out_number, seed=0):
    pg = ParamGen(seed)
    m = {
        "block1": make_basic(pg, 3, 32, 64),
        "block2": make_bottleneck(pg, 64, 32, 128),
        "block2_2": make_bottleneck(pg, 128, 32, 128),
        "block3": make_bottleneck(pg, 128, 32, 256),
        "block3_2": make_bottleneck(pg, 256, 32, 256),
        "block4": make_bottleneck(pg, 256, 64, 512),
        "block4_2": make_bottleneck(pg, 512, 64, 512),
        "block5": make_bottleneck(pg, 512, 64, 512),
        "block5_2": make_bottleneck(pg, 512, 64, 512),
        "block6": make_bottleneck(pg, 512, 64, 512),
        "block6_2": make_bottleneck(pg, 512, 64, 1024, apply_se=False),
    }
    m["lin1_w"], m["lin1_b"] = pg.linear(1024, 256)
    m["lin2_w"], m["lin2_b"] = pg.linear(256, out_number)
    return m


# --------------------------------------------------------------------------- #
# Forward pass                                                                 #
# --------------------------------------------------------------------------- #
@jax.jit
def forward(params, x_nchw):
    x = jnp.transpose(x_nchw, (0, 2, 3, 1)).astype(jnp.bfloat16)     # NCHW -> NHWC

    out = maxpool2(basic_block_pallas(params["block1"], x))
    out = maxpool2(bottleneck_block(params["block2_2"],
                                    bottleneck_block(params["block2"], out)))
    out = maxpool2(bottleneck_block(params["block3_2"],
                                    bottleneck_block(params["block3"], out)))
    out = maxpool2(bottleneck_block(params["block4_2"],
                                    bottleneck_block(params["block4"], out)))
    out = maxpool2(bottleneck_block(params["block5_2"],
                                    bottleneck_block(params["block5"], out)))
    out = bottleneck_block(params["block6_2"],
                           bottleneck_block(params["block6"], out))

    feat = out.astype(jnp.float32).mean(axis=(1, 2))                 # GAP + squeeze
    # Final linears: M = batch (tiny) -> plain jnp.dot per the skinny-shape gate.
    h = jnp.dot(feat.astype(jnp.bfloat16), params["lin1_w"],
                preferred_element_type=jnp.float32) + params["lin1_b"]
    y = jnp.dot(h.astype(jnp.bfloat16), params["lin2_w"],
                preferred_element_type=jnp.float32) + params["lin2_b"]
    return jax.nn.sigmoid(y)


def _self_check(params):
    """Fused Pallas bottleneck vs. the plain-XLA reference on one real block."""
    x = jax.random.normal(jax.random.PRNGKey(1), (2, 16, 16, 64),
                          jnp.float32).astype(jnp.bfloat16)
    a = bottleneck_block_pallas(params["block2"], x).astype(jnp.float32)
    b = bottleneck_block_xla(params["block2"], x).astype(jnp.float32)
    err = float(jnp.max(jnp.abs(a - b)))
    assert err < 0.1, f"Pallas/XLA bottleneck mismatch: max abs err {err}"


# --------------------------------------------------------------------------- #
if __name__ == "__main__":
    OUT_NUMBER = 5
    # Smallest input compatible with the module's five MaxPool2d(2) stages.
    x = jax.random.normal(jax.random.PRNGKey(0), (2, 3, 32, 32), jnp.float32)

    params = build_model(OUT_NUMBER, seed=0)
    _self_check(params)

    y = jax.block_until_ready(forward(params, x))

    assert y.shape == (2, OUT_NUMBER), y.shape
    assert bool(jnp.all(jnp.isfinite(y)))
    assert bool(jnp.all((y >= 0.0) & (y <= 1.0)))
    print("KERNEL_OK")
</pallas_src>

<mosaic_0001>
module attributes {stable_mosaic.version = 11 : i64} {
  func.func @_bottleneck_kernel(%arg0: i32, %arg1: memref<256x64xbf16, #tpu.memory_space<vmem>>, %arg2: memref<64x32xbf16, #tpu.memory_space<vmem>>, %arg3: memref<1x32xf32, #tpu.memory_space<vmem>>, %arg4: memref<288x32xbf16, #tpu.memory_space<vmem>>, %arg5: memref<1x32xf32, #tpu.memory_space<vmem>>, %arg6: memref<32x128xbf16, #tpu.memory_space<vmem>>, %arg7: memref<1x128xf32, #tpu.memory_space<vmem>>, %arg8: memref<64x128xbf16, #tpu.memory_space<vmem>>, %arg9: memref<1x128xf32, #tpu.memory_space<vmem>>, %arg10: memref<128x8xbf16, #tpu.memory_space<vmem>>, %arg11: memref<1x8xf32, #tpu.memory_space<vmem>>, %arg12: memref<8x128xbf16, #tpu.memory_space<vmem>>, %arg13: memref<1x128xf32, #tpu.memory_space<vmem>>, %arg14: memref<256x128xbf16, #tpu.memory_space<vmem>>) attributes {dimension_semantics = [#tpu.dimension_semantics<parallel>], iteration_bounds = array<i64: 2>, scalar_prefetch = 0 : i64, scratch_operands = 0 : i64, tpu.core_type = #tpu.core_type<tc>, window_params = [{transform_indices = @transform_0, window_bounds = array<i64: 256, 64>}, {pipeline_mode = #tpu.pipeline_mode<synchronous>, transform_indices = @transform_1, window_bounds = array<i64: 64, 32>}, {pipeline_mode = #tpu.pipeline_mode<synchronous>, transform_indices = @transform_2, window_bounds = array<i64: 1, 32>}, {pipeline_mode = #tpu.pipeline_mode<synchronous>, transform_indices = @transform_3, window_bounds = array<i64: 288, 32>}, {pipeline_mode = #tpu.pipeline_mode<synchronous>, transform_indices = @transform_4, window_bounds = array<i64: 1, 32>}, {pipeline_mode = #tpu.pipeline_mode<synchronous>, transform_indices = @transform_5, window_bounds = array<i64: 32, 128>}, {pipeline_mode = #tpu.pipeline_mode<synchronous>, transform_indices = @transform_6, window_bounds = array<i64: 1, 128>}, {pipeline_mode = #tpu.pipeline_mode<synchronous>, transform_indices = @transform_7, window_bounds = array<i64: 64, 128>}, {pipeline_mode = #tpu.pipeline_mode<synchronous>, transform_indices = @transform_8, window_bounds = array<i64: 1, 128>}, {pipeline_mode = #tpu.pipeline_mode<synchronous>, transform_indices = @transform_9, window_bounds = array<i64: 128, 8>}, {pipeline_mode = #tpu.pipeline_mode<synchronous>, transform_indices = @transform_10, window_bounds = array<i64: 1, 8>}, {pipeline_mode = #tpu.pipeline_mode<synchronous>, transform_indices = @transform_11, window_bounds = array<i64: 8, 128>}, {pipeline_mode = #tpu.pipeline_mode<synchronous>, transform_indices = @transform_12, window_bounds = array<i64: 1, 128>}, {transform_indices = @transform_13, window_bounds = array<i64: 256, 128>}]} {
    %c0 = arith.constant 0 : index
    %c0_0 = arith.constant 0 : index
    %0 = vector.load %arg1[%c0, %c0_0] : memref<256x64xbf16, #tpu.memory_space<vmem>>, vector<256x64xbf16>
    %c0_1 = arith.constant 0 : index
    %c0_2 = arith.constant 0 : index
    %1 = vector.load %arg2[%c0_1, %c0_2] : memref<64x32xbf16, #tpu.memory_space<vmem>>, vector<64x32xbf16>
    %cst = arith.constant dense<0.000000e+00> : vector<256x32xf32>
    %2 = tpu.matmul %0, %1, %cst {dimension_numbers = #tpu.dot_dimension_numbers<[1], [0], [0], [1], [0, 0, 1, 1], [], []>} : vector<256x64xbf16>, vector<64x32xbf16>, vector<256x32xf32> -> vector<256x32xf32>
    %c0_3 = arith.constant 0 : index
    %c0_4 = arith.constant 0 : index
    %3 = vector.load %arg3[%c0_3, %c0_4] : memref<1x32xf32, #tpu.memory_space<vmem>>, vector<1x32xf32>
    %4 = vector.broadcast %3 : vector<1x32xf32> to vector<256x32xf32>
    %5 = arith.addf %2, %4 : vector<256x32xf32>
    %cst_5 = arith.constant 0.000000e+00 : f32
    %6 = vector.broadcast %cst_5 : f32 to vector<256x32xf32>
    %7 = arith.maximumf %5, %6 : vector<256x32xf32>
    %8 = arith.truncf %7 : vector<256x32xf32> to vector<256x32xbf16>
    %9 = tpu.iota {dimensions = array<i32: 0>} : vector<256x1xi32>
    %c16_i32 = arith.constant 16 : i32
    %c0_i32 = arith.constant 0 : i32
    %10 = arith.cmpi eq, %c16_i32, %c0_i32 : i32
    %c1_i32 = arith.constant 1 : i32
    %11 = arith.select %10, %c1_i32, %c16_i32 : i32
    %12 = vector.broadcast %11 : i32 to vector<256x1xi32>
    %13 = arith.remsi %9, %12 : vector<256x1xi32>
    %c0_i32_6 = arith.constant 0 : i32
    %14 = vector.broadcast %c0_i32_6 : i32 to vector<256x1xi32>
    %15 = arith.cmpi ne, %13, %14 : vector<256x1xi32>
    %c0_i32_7 = arith.constant 0 : i32
    %16 = vector.broadcast %c0_i32_7 : i32 to vector<256x1xi32>
    %17 = arith.cmpi slt, %13, %16 : vector<256x1xi32>
    %c0_i32_8 = arith.constant 0 : i32
    %18 = arith.cmpi slt, %11, %c0_i32_8 : i32
    %19 = vector.broadcast %18 : i1 to vector<256x1xi1>
    %20 = vector.broadcast %19 : vector<256x1xi1> to vector<256x1xi1>
    %21 = arith.xori %17, %20 : vector<256x1xi1>
    %22 = arith.andi %21, %15 : vector<256x1xi1>
    %23 = vector.broadcast %11 : i32 to vector<256x1xi32>
    %24 = arith.addi %13, %23 : vector<256x1xi32>
    %25 = arith.select %22, %24, %13 : vector<256x1xi1>, vector<256x1xi32>
    %c15_i32 = arith.constant 15 : i32
    %26 = vector.broadcast %c15_i32 : i32 to vector<256x1xi32>
    %27 = arith.cmpi eq, %25, %26 : vector<256x1xi32>
    %cst_9 = arith.constant 0.000000e+00 : f32
    %cst_10 = arith.constant 1.000000e+00 : f32
    %28 = vector.broadcast %cst_9 : f32 to vector<256x1xf32>
    %29 = vector.broadcast %cst_10 : f32 to vector<256x1xf32>
    %30 = arith.select %27, %28, %29 : vector<256x1xi1>, vector<256x1xf32>
    %31 = arith.truncf %30 : vector<256x1xf32> to vector<256x1xbf16>
    %c0_i32_11 = arith.constant 0 : i32
    %32 = vector.broadcast %c0_i32_11 : i32 to vector<256x1xi32>
    %33 = arith.cmpi eq, %25, %32 : vector<256x1xi32>
    %cst_12 = arith.constant 0.000000e+00 : f32
    %cst_13 = arith.constant 1.000000e+00 : f32
    %34 = vector.broadcast %cst_12 : f32 to vector<256x1xf32>
    %35 = vector.broadcast %cst_13 : f32 to vector<256x1xf32>
    %36 = arith.select %33, %34, %35 : vector<256x1xi1>, vector<256x1xf32>
    %37 = arith.truncf %36 : vector<256x1xf32> to vector<256x1xbf16>
    %cst_14 = arith.constant 0.000000e+00 : bf16
    %38 = vector.broadcast %cst_14 : bf16 to vector<17x32xbf16>
    %39 = vector.extract_strided_slice %8 {offsets = [0, 0], sizes = [239, 32], strides = [1, 1]} : vector<256x32xbf16> to vector<239x32xbf16>
    %40 = tpu.concatenate %38, %39 in 0 : vector<17x32xbf16>, vector<239x32xbf16> -> vector<256x32xbf16>
    %41 = vector.broadcast %37 : vector<256x1xbf16> to vector<256x32xbf16>
    %42 = arith.mulf %40, %41 : vector<256x32xbf16>
    %c0_15 = arith.constant 0 : index
    %c0_16 = arith.constant 0 : index
    %43 = vector.load %arg4[%c0_15, %c0_16] : memref<288x32xbf16, #tpu.memory_space<vmem>>, vector<32x32xbf16>
    %cst_17 = arith.constant dense<0.000000e+00> : vector<256x32xf32>
    %44 = tpu.matmul %42, %43, %cst_17 {dimension_numbers = #tpu.dot_dimension_numbers<[1], [0], [0], [1], [0, 0, 1, 1], [], []>} : vector<256x32xbf16>, vector<32x32xbf16>, vector<256x32xf32> -> vector<256x32xf32>
    %cst_18 = arith.constant 0.000000e+00 : bf16
    %45 = vector.broadcast %cst_18 : bf16 to vector<16x32xbf16>
    %46 = vector.extract_strided_slice %8 {offsets = [0, 0], sizes = [240, 32], strides = [1, 1]} : vector<256x32xbf16> to vector<240x32xbf16>
    %47 = tpu.concatenate %45, %46 in 0 : vector<16x32xbf16>, vector<240x32xbf16> -> vector<256x32xbf16>
    %c32 = arith.constant 32 : index
    %c0_19 = arith.constant 0 : index
    %48 = vector.load %arg4[%c32, %c0_19] : memref<288x32xbf16, #tpu.memory_space<vmem>>, vector<32x32xbf16>
    %cst_20 = arith.constant dense<0.000000e+00> : vector<256x32xf32>
    %49 = tpu.matmul %47, %48, %cst_20 {dimension_numbers = #tpu.dot_dimension_numbers<[1], [0], [0], [1], [0, 0, 1, 1], [], []>} : vector<256x32xbf16>, vector<32x32xbf16>, vector<256x32xf32> -> vector<256x32xf32>
    %50 = arith.addf %44, %49 : vector<256x32xf32>
    %cst_21 = arith.constant 0.000000e+00 : bf16
    %51 = vector.broadcast %cst_21 : bf16 to vector<15x32xbf16>
    %52 = vector.extract_strided_slice %8 {offsets = [0, 0], sizes = [241, 32], strides = [1, 1]} : vector<256x32xbf16> to vector<241x32xbf16>
    %53 = tpu.concatenate %51, %52 in 0 : vector<15x32xbf16>, vector<241x32xbf16> -> vector<256x32xbf16>
    %54 = vector.broadcast %31 : vector<256x1xbf16> to vector<256x32xbf16>
    %55 = arith.mulf %53, %54 : vector<256x32xbf16>
    %c64 = arith.constant 64 : index
    %c0_22 = arith.constant 0 : index
    %56 = vector.load %arg4[%c64, %c0_22] : memref<288x32xbf16, #tpu.memory_space<vmem>>, vector<32x32xbf16>
    %cst_23 = arith.constant dense<0.000000e+00> : vector<256x32xf32>
    %57 = tpu.matmul %55, %56, %cst_23 {dimension_numbers = #tpu.dot_dimension_numbers<[1], [0], [0], [1], [0, 0, 1, 1], [], []>} : vector<256x32xbf16>, vector<32x32xbf16>, vector<256x32xf32> -> vector<256x32xf32>
    %58 = arith.addf %50, %57 : vector<256x32xf32>
    %cst_24 = arith.constant 0.000000e+00 : bf16
    %59 = vector.broadcast %cst_24 : bf16 to vector<1x32xbf16>
    %60 = vector.extract_strided_slice %8 {offsets = [0, 0], sizes = [255, 32], strides = [1, 1]} : vector<256x32xbf16> to vector<255x32xbf16>
    %61 = tpu.concatenate %59, %60 in 0 : vector<1x32xbf16>, vector<255x32xbf16> -> vector<256x32xbf16>
    %62 = vector.broadcast %37 : vector<256x1xbf16> to vector<256x32xbf16>
    %63 = arith.mulf %61, %62 : vector<256x32xbf16>
    %c96 = arith.constant 96 : index
    %c0_25 = arith.constant 0 : index
    %64 = vector.load %arg4[%c96, %c0_25] : memref<288x32xbf16, #tpu.memory_space<vmem>>, vector<32x32xbf16>
    %cst_26 = arith.constant dense<0.000000e+00> : vector<256x32xf32>
    %65 = tpu.matmul %63, %64, %cst_26 {dimension_numbers = #tpu.dot_dimension_numbers<[1], [0], [0], [1], [0, 0, 1, 1], [], []>} : vector<256x32xbf16>, vector<32x32xbf16>, vector<256x32xf32> -> vector<256x32xf32>
    %66 = arith.addf %58, %65 : vector<256x32xf32>
    %c128 = arith.constant 128 : index
    %c0_27 = arith.constant 0 : index
    %67 = vector.load %arg4[%c128, %c0_27] : memref<288x32xbf16, #tpu.memory_space<vmem>>, vector<32x32xbf16>
    %cst_28 = arith.constant dense<0.000000e+00> : vector<256x32xf32>
    %68 = tpu.matmul %8, %67, %cst_28 {dimension_numbers = #tpu.dot_dimension_numbers<[1], [0], [0], [1], [0, 0, 1, 1], [], []>} : vector<256x32xbf16>, vector<32x32xbf16>, vector<256x32xf32> -> vector<256x32xf32>
    %69 = arith.addf %66, %68 : vector<256x32xf32>
    %70 = vector.extract_strided_slice %8 {offsets = [1, 0], sizes = [255, 32], strides = [1, 1]} : vector<256x32xbf16> to vector<255x32xbf16>
    %cst_29 = arith.constant 0.000000e+00 : bf16
    %71 = vector.broadcast %cst_29 : bf16 to vector<1x32xbf16>
    %72 = tpu.concatenate %70, %71 in 0 : vector<255x32xbf16>, vector<1x32xbf16> -> vector<256x32xbf16>
    %73 = vector.broadcast %31 : vector<256x1xbf16> to vector<256x32xbf16>
    %74 = arith.mulf %72, %73 : vector<256x32xbf16>
    %c160 = arith.constant 160 : index
    %c0_30 = arith.constant 0 : index
    %75 = vector.load %arg4[%c160, %c0_30] : memref<288x32xbf16, #tpu.memory_space<vmem>>, vector<32x32xbf16>
    %cst_31 = arith.constant dense<0.000000e+00> : vector<256x32xf32>
    %76 = tpu.matmul %74, %75, %cst_31 {dimension_numbers = #tpu.dot_dimension_numbers<[1], [0], [0], [1], [0, 0, 1, 1], [], []>} : vector<256x32xbf16>, vector<32x32xbf16>, vector<256x32xf32> -> vector<256x32xf32>
    %77 = arith.addf %69, %76 : vector<256x32xf32>
    %78 = vector.extract_strided_slice %8 {offsets = [15, 0], sizes = [241, 32], strides = [1, 1]} : vector<256x32xbf16> to vector<241x32xbf16>
    %cst_32 = arith.constant 0.000000e+00 : bf16
    %79 = vector.broadcast %cst_32 : bf16 to vector<15x32xbf16>
    %80 = tpu.concatenate %78, %79 in 0 : vector<241x32xbf16>, vector<15x32xbf16> -> vector<256x32xbf16>
    %81 = vector.broadcast %37 : vector<256x1xbf16> to vector<256x32xbf16>
    %82 = arith.mulf %80, %81 : vector<256x32xbf16>
    %c192 = arith.constant 192 : index
    %c0_33 = arith.constant 0 : index
    %83 = vector.load %arg4[%c192, %c0_33] : memref<288x32xbf16, #tpu.memory_space<vmem>>, vector<32x32xbf16>
    %cst_34 = arith.constant dense<0.000000e+00> : vector<256x32xf32>
    %84 = tpu.matmul %82, %83, %cst_34 {dimension_numbers = #tpu.dot_dimension_numbers<[1], [0], [0], [1], [0, 0, 1, 1], [], []>} : vector<256x32xbf16>, vector<32x32xbf16>, vector<256x32xf32> -> vector<256x32xf32>
    %85 = arith.addf %77, %84 : vector<256x32xf32>
    %86 = vector.extract_strided_slice %8 {offsets = [16, 0], sizes = [240, 32], strides = [1, 1]} : vector<256x32xbf16> to vector<240x32xbf16>
    %cst_35 = arith.constant 0.000000e+00 : bf16
    %87 = vector.broadcast %cst_35 : bf16 to vector<16x32xbf16>
    %88 = tpu.concatenate %86, %87 in 0 : vector<240x32xbf16>, vector<16x32xbf16> -> vector<256x32xbf16>
    %c224 = arith.constant 224 : index
    %c0_36 = arith.constant 0 : index
    %89 = vector.load %arg4[%c224, %c0_36] : memref<288x32xbf16, #tpu.memory_space<vmem>>, vector<32x32xbf16>
    %cst_37 = arith.constant dense<0.000000e+00> : vector<256x32xf32>
    %90 = tpu.matmul %88, %89, %cst_37 {dimension_numbers = #tpu.dot_dimension_numbers<[1], [0], [0], [1], [0, 0, 1, 1], [], []>} : vector<256x32xbf16>, vector<32x32xbf16>, vector<256x32xf32> -> vector<256x32xf32>
    %91 = arith.addf %85, %90 : vector<256x32xf32>
    %92 = vector.extract_strided_slice %8 {offsets = [17, 0], sizes = [239, 32], strides = [1, 1]} : vector<256x32xbf16> to vector<239x32xbf16>
    %cst_38 = arith.constant 0.000000e+00 : bf16
    %93 = vector.broadcast %cst_38 : bf16 to vector<17x32xbf16>
    %94 = tpu.concatenate %92, %93 in 0 : vector<239x32xbf16>, vector<17x32xbf16> -> vector<256x32xbf16>
    %95 = vector.broadcast %31 : vector<256x1xbf16> to vector<256x32xbf16>
    %96 = arith.mulf %94, %95 : vector<256x32xbf16>
    %c256 = arith.constant 256 : index
    %c0_39 = arith.constant 0 : index
    %97 = vector.load %arg4[%c256, %c0_39] : memref<288x32xbf16, #tpu.memory_space<vmem>>, vector<32x32xbf16>
    %cst_40 = arith.constant dense<0.000000e+00> : vector<256x32xf32>
    %98 = tpu.matmul %96, %97, %cst_40 {dimension_numbers = #tpu.dot_dimension_numbers<[1], [0], [0], [1], [0, 0, 1, 1], [], []>} : vector<256x32xbf16>, vector<32x32xbf16>, vector<256x32xf32> -> vector<256x32xf32>
    %99 = arith.addf %91, %98 : vector<256x32xf32>
    %c0_41 = arith.constant 0 : index
    %c0_42 = arith.constant 0 : index
    %100 = vector.load %arg5[%c0_41, %c0_42] : memref<1x32xf32, #tpu.memory_space<vmem>>, vector<1x32xf32>
    %101 = vector.broadcast %100 : vector<1x32xf32> to vector<256x32xf32>
    %102 = arith.addf %99, %101 : vector<256x32xf32>
    %cst_43 = arith.constant 0.000000e+00 : f32
    %103 = vector.broadcast %cst_43 : f32 to vector<256x32xf32>
    %104 = arith.maximumf %102, %103 : vector<256x32xf32>
    %105 = arith.truncf %104 : vector<256x32xf32> to vector<256x32xbf16>
    %c0_44 = arith.constant 0 : index
    %c0_45 = arith.constant 0 : index
    %106 = vector.load %arg6[%c0_44, %c0_45] : memref<32x128xbf16, #tpu.memory_space<vmem>>, vector<32x128xbf16>
    %cst_46 = arith.constant dense<0.000000e+00> : vector<256x128xf32>
    %107 = tpu.matmul %105, %106, %cst_46 {dimension_numbers = #tpu.dot_dimension_numbers<[1], [0], [0], [1], [0, 0, 1, 1], [], []>} : vector<256x32xbf16>, vector<32x128xbf16>, vector<256x128xf32> -> vector<256x128xf32>
    %c0_47 = arith.constant 0 : index
    %c0_48 = arith.constant 0 : index
    %108 = vector.load %arg7[%c0_47, %c0_48] : memref<1x128xf32, #tpu.memory_space<vmem>>, vector<1x128xf32>
    %109 = vector.broadcast %108 : vector<1x128xf32> to vector<256x128xf32>
    %110 = arith.addf %107, %109 : vector<256x128xf32>
    %c0_49 = arith.constant 0 : index
    %c0_50 = arith.constant 0 : index
    %111 = vector.load %arg8[%c0_49, %c0_50] : memref<64x128xbf16, #tpu.memory_space<vmem>>, vector<64x128xbf16>
    %cst_51 = arith.constant dense<0.000000e+00> : vector<256x128xf32>
    %112 = tpu.matmul %0, %111, %cst_51 {dimension_numbers = #tpu.dot_dimension_numbers<[1], [0], [0], [1], [0, 0, 1, 1], [], []>} : vector<256x64xbf16>, vector<64x128xbf16>, vector<256x128xf32> -> vector<256x128xf32>
    %c0_52 = arith.constant 0 : index
    %c0_53 = arith.constant 0 : index
    %113 = vector.load %arg9[%c0_52, %c0_53] : memref<1x128xf32, #tpu.memory_space<vmem>>, vector<1x128xf32>
    %114 = vector.broadcast %113 : vector<1x128xf32> to vector<256x128xf32>
    %115 = arith.addf %112, %114 : vector<256x128xf32>
    %cst_54 = arith.constant dense<0.000000e+00> : vector<128xf32>
    %116 = vector.multi_reduction <add>, %110, %cst_54 [0] : vector<256x128xf32> to vector<128xf32>
    %117 = vector.shape_cast %116 : vector<128xf32> to vector<1x128xf32>
    %cst_55 = arith.constant 2.560000e+02 : f32
    %118 = vector.broadcast %cst_55 : f32 to vector<1x128xf32>
    %119 = arith.divf %117, %118 : vector<1x128xf32>
    %120 = arith.truncf %119 : vector<1x128xf32> to vector<1x128xbf16>
    %c0_56 = arith.constant 0 : index
    %c0_57 = arith.constant 0 : index
    %121 = vector.load %arg10[%c0_56, %c0_57] : memref<128x8xbf16, #tpu.memory_space<vmem>>, vector<128x8xbf16>
    %cst_58 = arith.constant dense<0.000000e+00> : vector<1x8xf32>
    %122 = tpu.matmul %120, %121, %cst_58 {dimension_numbers = #tpu.dot_dimension_numbers<[1], [0], [0], [1], [0, 0, 1, 1], [], []>} : vector<1x128xbf16>, vector<128x8xbf16>, vector<1x8xf32> -> vector<1x8xf32>
    %c0_59 = arith.constant 0 : index
    %c0_60 = arith.constant 0 : index
    %123 = vector.load %arg11[%c0_59, %c0_60] : memref<1x8xf32, #tpu.memory_space<vmem>>, vector<1x8xf32>
    %124 = arith.addf %122, %123 : vector<1x8xf32>
    %cst_61 = arith.constant 0.000000e+00 : f32
    %125 = vector.broadcast %cst_61 : f32 to vector<1x8xf32>
    %126 = arith.maximumf %124, %125 : vector<1x8xf32>
    %127 = arith.truncf %126 : vector<1x8xf32> to vector<1x8xbf16>
    %c0_62 = arith.constant 0 : index
    %c0_63 = arith.constant 0 : index
    %128 = vector.load %arg12[%c0_62, %c0_63] : memref<8x128xbf16, #tpu.memory_space<vmem>>, vector<8x128xbf16>
    %cst_64 = arith.constant dense<0.000000e+00> : vector<1x128xf32>
    %129 = tpu.matmul %127, %128, %cst_64 {dimension_numbers = #tpu.dot_dimension_numbers<[1], [0], [0], [1], [0, 0, 1, 1], [], []>} : vector<1x8xbf16>, vector<8x128xbf16>, vector<1x128xf32> -> vector<1x128xf32>
    %c0_65 = arith.constant 0 : index
    %c0_66 = arith.constant 0 : index
    %130 = vector.load %arg13[%c0_65, %c0_66] : memref<1x128xf32, #tpu.memory_space<vmem>>, vector<1x128xf32>
    %131 = arith.addf %129, %130 : vector<1x128xf32>
    %132 = arith.negf %131 : vector<1x128xf32>
    %133 = math.exp %132 : vector<1x128xf32>
    %cst_67 = arith.constant 1.000000e+00 : f32
    %134 = vector.broadcast %cst_67 : f32 to vector<1x128xf32>
    %135 = arith.addf %134, %133 : vector<1x128xf32>
    %136 = arith.divf %134, %135 : vector<1x128xf32>
    %137 = vector.broadcast %136 : vector<1x128xf32> to vector<256x128xf32>
    %138 = arith.mulf %110, %137 : vector<256x128xf32>
    %139 = arith.addf %138, %115 : vector<256x128xf32>
    %cst_68 = arith.constant 0.000000e+00 : f32
    %140 = vector.broadcast %cst_68 : f32 to vector<256x128xf32>
    %141 = arith.maximumf %139, %140 : vector<256x128xf32>
    %142 = arith.truncf %141 : vector<256x128xf32> to vector<256x128xbf16>
    %c0_69 = arith.constant 0 : index
    %c0_70 = arith.constant 0 : index
    %143 = vector.load %arg14[%c0_69, %c0_70] : memref<256x128xbf16, #tpu.memory_space<vmem>>, vector<256x128xbf16>
    tpu.vector_store %arg14[%c0_69, %c0_70], %142 {strides = array<i32>} : memref<256x128xbf16, #tpu.memory_space<vmem>>, vector<256x128xbf16>,
    return
  }
  func.func @transform_0(%arg0: i32) -> (i32, i32) {
    %c0_i32 = arith.constant 0 : i32
    %c0_i32_0 = arith.constant 0 : i32
    return %arg0, %c0_i32 : i32, i32
  }
  func.func @transform_1(%arg0: i32) -> (i32, i32) {
    %c0_i32 = arith.constant 0 : i32
    %c0_i32_0 = arith.constant 0 : i32
    %c0_i32_1 = arith.constant 0 : i32
    return %c0_i32, %c0_i32_0 : i32, i32
  }
  func.func @transform_2(%arg0: i32) -> (i32, i32) {
    %c0_i32 = arith.constant 0 : i32
    %c0_i32_0 = arith.constant 0 : i32
    %c0_i32_1 = arith.constant 0 : i32
    return %c0_i32, %c0_i32_0 : i32, i32
  }
  func.func @transform_3(%arg0: i32) -> (i32, i32) {
    %c0_i32 = arith.constant 0 : i32
    %c0_i32_0 = arith.constant 0 : i32
    %c0_i32_1 = arith.constant 0 : i32
    return %c0_i32, %c0_i32_0 : i32, i32
  }
  func.func @transform_4(%arg0: i32) -> (i32, i32) {
    %c0_i32 = arith.constant 0 : i32
    %c0_i32_0 = arith.constant 0 : i32
    %c0_i32_1 = arith.constant 0 : i32
    return %c0_i32, %c0_i32_0 : i32, i32
  }
  func.func @transform_5(%arg0: i32) -> (i32, i32) {
    %c0_i32 = arith.constant 0 : i32
    %c0_i32_0 = arith.constant 0 : i32
    %c0_i32_1 = arith.constant 0 : i32
    return %c0_i32, %c0_i32_0 : i32, i32
  }
  func.func @transform_6(%arg0: i32) -> (i32, i32) {
    %c0_i32 = arith.constant 0 : i32
    %c0_i32_0 = arith.constant 0 : i32
    %c0_i32_1 = arith.constant 0 : i32
    return %c0_i32, %c0_i32_0 : i32, i32
  }
  func.func @transform_7(%arg0: i32) -> (i32, i32) {
    %c0_i32 = arith.constant 0 : i32
    %c0_i32_0 = arith.constant 0 : i32
    %c0_i32_1 = arith.constant 0 : i32
    return %c0_i32, %c0_i32_0 : i32, i32
  }
  func.func @transform_8(%arg0: i32) -> (i32, i32) {
    %c0_i32 = arith.constant 0 : i32
    %c0_i32_0 = arith.constant 0 : i32
    %c0_i32_1 = arith.constant 0 : i32
    return %c0_i32, %c0_i32_0 : i32, i32
  }
  func.func @transform_9(%arg0: i32) -> (i32, i32) {
    %c0_i32 = arith.constant 0 : i32
    %c0_i32_0 = arith.constant 0 : i32
    %c0_i32_1 = arith.constant 0 : i32
    return %c0_i32, %c0_i32_0 : i32, i32
  }
  func.func @transform_10(%arg0: i32) -> (i32, i32) {
    %c0_i32 = arith.constant 0 : i32
    %c0_i32_0 = arith.constant 0 : i32
    %c0_i32_1 = arith.constant 0 : i32
    return %c0_i32, %c0_i32_0 : i32, i32
  }
  func.func @transform_11(%arg0: i32) -> (i32, i32) {
    %c0_i32 = arith.constant 0 : i32
    %c0_i32_0 = arith.constant 0 : i32
    %c0_i32_1 = arith.constant 0 : i32
    return %c0_i32, %c0_i32_0 : i32, i32
  }
  func.func @transform_12(%arg0: i32) -> (i32, i32) {
    %c0_i32 = arith.constant 0 : i32
    %c0_i32_0 = arith.constant 0 : i32
    %c0_i32_1 = arith.constant 0 : i32
    return %c0_i32, %c0_i32_0 : i32, i32
  }
  func.func @transform_13(%arg0: i32) -> (i32, i32) {
    %c0_i32 = arith.constant 0 : i32
    %c0_i32_0 = arith.constant 0 : i32
    return %arg0, %c0_i32 : i32, i32
  }
}

</mosaic_0001>

<bundles_post_ra>
// kernel: tpu_custom_call.1
= control target key start
LH: loop header
LB: loop body
LE: loop exit
PB: predicated region body
PF: predicated region fallthrough
CT: control target
= control target key end

     0   :  { %s8892_s0 = inlined_call_operand.vmem [shape: bf16[512,64], index: 0, kind: input, shape index: {}]   ;;  %s8893_s1 = inlined_call_operand.vmem [shape: bf16[64,32], index: 1, kind: input, shape index: {}]   ;;  %s8894_s2 = inlined_call_operand.vmem [shape: f32[1,32], index: 2, kind: input, shape index: {}]   ;;  %s8895_s3 = inlined_call_operand.vmem [shape: bf16[288,32], index: 3, kind: input, shape index: {}]   ;;  %s8896_s4 = inlined_call_operand.vmem [shape: f32[1,32], index: 4, kind: input, shape index: {}]   ;;  %s8897_s5 = inlined_call_operand.vmem [shape: bf16[32,128], index: 5, kind: input, shape index: {}]   ;;  %s8898_s6 = inlined_call_operand.vmem [shape: f32[1,128], index: 6, kind: input, shape index: {}]   ;;  %s8899_s7 = inlined_call_operand.vmem [shape: bf16[64,128], index: 7, kind: input, shape index: {}]   ;;  %s8900_s8 = inlined_call_operand.vmem [shape: f32[1,128], index: 8, kind: input, shape index: {}]   ;;  %s8901_s9 = inlined_call_operand.vmem [shape: bf16[128,8], index: 9, kind: input, shape index: {}]   ;;  %s8902_s10 = inlined_call_operand.vmem [shape: f32[1,8], index: 10, kind: input, shape index: {}]   ;;  %s8903_s11 = inlined_call_operand.vmem [shape: bf16[8,128], index: 11, kind: input, shape index: {}]   ;;  %s8904_s12 = inlined_call_operand.vmem [shape: f32[1,128], index: 12, kind: input, shape index: {}]   ;;  %s8905_s13 = inlined_call_operand.hbm [shape: bf16[512,128], index: 13, kind: output, shape index: {}]  }
   0x1   :  { %9016 = sst [smem:[#allocation52_spill]] %s8892_s0 }
   0x2   :  { %9017 = sst [smem:[#allocation53_spill]] %s8893_s1 }
   0x3   :  { %18 = vsyncpa [#allocation3], 0 }
   0x4   :  { %20 = vsyncpa [#allocation3 + $0x1], 0  ;;  %s6315_s25 = smov 0   ;;  %s6317_s26 = smov 0  }
   0x5   :  { %s6319_s27 = smov 0   ;;  %s6321_s28 = smov 0  }
   0x6 LB: > { %s6336_s29 = sadd.s32 4294967295, %s6236_s28   ;;  %s4942_s30 = sadd.s32 4294967294, %s6236_s28   ;;  %s6236_s28 = sphi %s6321_s28, %s9394_s28   ;;  %s6232_s27 = sphi %s6319_s27, %s9393_s27   ;;  %s6228_s26 = sphi %s6317_s26, %s9392_s26   ;;  %s6224_s25 = sphi %s6315_s25, %s9391_s25  }
   0x7   : > { %s6340_s14 = sadd.s32 1, %s6236_s28   ;;  %s311_s15 = sadd.s32 1, %s6232_s27 }
   0x8   : > { %s308_s16 = ssub.s32 %s6236_s28, %s6340_s14  ;;  %p321_p0 = scmp.ne.s32.totalorder %s6232_s27, %s6228_s26 }
   0x9   : > { %p309_p1 = scmp.eq.s32.totalorder %s308_s16, 0  ;;  %p322_p2 = scmp.eq.s32.totalorder %s6336_s29, 1 }
   0xa   : > { %p327_p3 = scmp.ne.s32.totalorder %s6228_s26, %s6224_s25  ;;  %p328_p4 = scmp.eq.s32.totalorder %s4942_s30, 1 }
   0xb   : > { %s6351_s17 = scalar_select %p309_p1, %s6232_s27, %s311_s15  }
   0xc   : > { %p6353_p5 = por %p322_p2, %p321_p0  ;;  %p6357_p6 = por %p328_p4, %p327_p3 }
   0xd   : > { %9018 = sst [smem:[#allocation5_spill]] %s6351_s17  ;;  %p4945_p7 = scmp.ge.s32.totalorder %s6236_s28, 1 }
   0xe   : > { %p391_p8 = scmp.lt.s32.totalorder %s6236_s28, 3 }
  0x10   : > { %p392_p9 = pnand %p4945_p7, %p391_p8 }
  0x12   : > { %395 = sbr.rel (%p392_p9) target bundleno = 1474 (0x5c2), region = 72 }
  0x17   : > { %s9021_s1 = sld [smem:[#allocation53_spill]]  ;;  %s4947_s22 = sshll.u32 %s6336_s29, 5  ;;  %vm594_vm0 = vcmask 523264   ;;  %v6124_v20 = vld [vmem:[%s8895_s3 + $0x18] sm:$0xff]   ;;  %v6125_v21 = vld [vmem:[%s8895_s3 + $0x10] sm:$0xff]   ;;  %v8906_v22 = vmov 0   ;;  %v852_v27 = vlaneseq }
  0x18   : > { %p436_p10 = scmp.lt.s32.totalorder %s4947_s22, 63  ;;  %s9022_s0 = sld [smem:[#allocation52_spill]]  ;;  %5633 = vmatprep.subr.bf16.mxu1 %v6124_v20  ;;  %5637 = vmatprep.mubr.bf16.mxu1 %v8906_v22  ;;  %v6127_v23 = vld [vmem:[%s8895_s3 + $0x28] sm:$0xff]   ;;  %v6128_v24 = vld [vmem:[%s8895_s3 + $0x20] sm:$0xff]   ;;  %v8910_v46 = vmov 1.0  }
  0x19   : > { %5634 = vmatpush3.bf16.msra.mxu1 %v6124_v20  ;;  %v6429_v25 = vld [vmem:[%s8895_s3 + $0x8] sm:$0xff]   ;;  %v6438_v28 = vshrl.u32 %v852_v27, 7  ;;  %s432_s20 = sand.u32 1, %s6228_s26   ;;  %s5266_s24 = sshll.u32 %s6336_s29, 11 }
  0x1a   : > { %s9396_s22 = smov (!%p436_p10, %s4947_s22), 63  ;;  %5635 = vmatprep.subr.bf16.mxu1 %v6125_v21  ;;  %v6435_v26 = vld [vmem:[%s8895_s3 + $0x48] sm:$0xff]   ;;  %s8808_s23 = sshll.u32 %s432_s20, 7 }
  0x1b   : > { %s4948_s16 = sshll.u32 %s9396_s22, 2  ;;  %9023 = vst [vmem:[#allocation6_spill] sm:$0xff] %v6438_v28  ;;  %v855_v29 = vadd.s32 16, %v6438_v28  ;;  %v854_v30 = vadd.s32 8, %v6438_v28  ;;  %v856_v33 = vadd.s32 24, %v6438_v28  ;;  %v858_v34 = vadd.s32 40, %v6438_v28  ;;  %s8834_s30 = scalar_lea.hbm %s8905_s13, %s5266_s24 }
  0x1c   : > { %v889_v35 = vand.u32 15, %v6438_v28  ;;  %v857_v36 = vadd.s32 32, %v6438_v28  ;;  %v860_v37 = vadd.s32 56, %v6438_v28  ;;  %v859_v41 = vadd.s32 48, %v6438_v28  ;;  %s8852_s15 = scalar_lea.sflag [#allocation3], %s432_s20 }
  0x1d   : > { %v6104_v0 = vld [vmem:[%s9021_s1 + $0x18] sm:$0xff]   ;;  %v6105_v1 = vld [vmem:[%s9021_s1 + $0x10] sm:$0xff]   ;;  %v6106_v2 = vld [vmem:[%s9021_s1 + $0x8] sm:$0xff]   ;;  %5636 = vmatpush3.bf16.msra.mxu1 %v6125_v21  ;;  %v903_v31 = vand.u32 15, %v855_v29  ;;  %v896_v32 = vand.u32 15, %v854_v30  ;;  %v910_v38 = vand.u32 15, %v856_v33 }
  0x1e   : > { %5593 = vmatprep.subr.bf16.mxu0 %v6104_v0  ;;  %s6376_s21 = scalar_lea.vmem %s9022_s0, %s4948_s16  ;;  %v6107_v4 = vld [vmem:[%s9021_s1] sm:$0xff]   ;;  %5669 = vmatprep.subr.bf16.mxu1 %v6429_v25  ;;  %v924_v39 = vand.u32 15, %v858_v34  ;;  %vm1349_vm3 = vcmp.eq.s32.totalorder %v889_v35, 0  ;;  %v917_v40 = vand.u32 15, %v857_v36  ;;  %v938_v42 = vand.u32 15, %v860_v37 }
  0x1f   : > { %5594 = vmatpush3.bf16.msra.mxu0 %v6104_v0  ;;  %v6108_v3 = vld [vmem:[%s6376_s21] sm:$0xff]   ;;  %v6109_v5 = vld [vmem:[%s6376_s21 + $0x8] sm:$0xff]   ;;  %v6110_v6 = vld [vmem:[%s6376_s21 + $0x10] sm:$0xff]   ;;  %vm1351_vm1 = vcmp.eq.s32.totalorder %v903_v31, 0  ;;  %vm1270_vm2 = vcmp.eq.s32.totalorder %v896_v32, 15  ;;  %v862_v43 = vadd.s32 72, %v6438_v28 }
  0x20   : > { %5595 = vmatprep.subr.bf16.mxu0 %v6105_v1  ;;  %5601 = vmatprep.mubr.msk.bf16.mxu0 %vm594_vm0, %v6108_v3  ;;  %v6111_v7 = vld [vmem:[%s6376_s21 + $0x18] sm:$0xff]   ;;  %v6112_v8 = vld [vmem:[%s6376_s21 + $0x20] sm:$0xff]   ;;  %v6113_v9 = vld [vmem:[%s6376_s21 + $0x28] sm:$0xff]   ;;  %v864_v44 = vadd.s32 88, %v6438_v28  ;;  %v861_v45 = vadd.s32 64, %v6438_v28  ;;  %v1383_v47 = vsel %vm1351_vm1, 0.0, %v8910_v46 }
  0x21   : > { %v6114_v10 = vld [vmem:[%s6376_s21 + $0x30] sm:$0xff]   ;;  %v6115_v11 = vld [vmem:[%s6376_s21 + $0x38] sm:$0xff]   ;;  %v6116_v12 = vld [vmem:[%s6376_s21 + $0x40] sm:$0xff]   ;;  %v1302_v48 = vsel %vm1270_vm2, 0.0, %v8910_v46  ;;  %v1381_v49 = vsel %vm1349_vm3, 0.0, %v8910_v46  ;;  %vm6454_vm4 = vcmp.eq.s32.totalorder %v910_v38, 15  ;;  %v6475_v62 = vpack.c.bf16 %v8910_v46, %v1383_v47 }
  0x22   : > { %v6117_v13 = vld [vmem:[%s6376_s21 + $0x48] sm:$0xff]   ;;  %v6118_v14 = vld [vmem:[%s6376_s21 + $0x50] sm:$0xff]   ;;  %v6119_v15 = vld [vmem:[%s6376_s21 + $0x58] sm:$0xff]   ;;  %vm6458_vm5 = vcmp.eq.s32.totalorder %v924_v39, 15  ;;  %vm6462_vm6 = vcmp.eq.s32.totalorder %v917_v40, 0  ;;  %v931_v53 = vand.u32 15, %v859_v41  ;;  %v6478_v63 = vpack.c.bf16 %v1302_v48, %v8910_v46 }
  0x23   : > { %5596 = vmatpush3.bf16.msra.mxu0 %v6105_v1  ;;  %v6120_v16 = vld [vmem:[%s6376_s21 + $0x60] sm:$0xff]   ;;  %v6121_v17 = vld [vmem:[%s6376_s21 + $0x68] sm:$0xff]   ;;  %v6122_v18 = vld [vmem:[%s6376_s21 + $0x70] sm:$0xff]   ;;  %vm6466_vm7 = vcmp.eq.s32.totalorder %v938_v42, 15  ;;  %v952_v55 = vand.u32 15, %v862_v43  ;;  %v966_v56 = vand.u32 15, %v864_v44  ;;  %v6481_v0 = vpack.c.bf16 %v8910_v46, %v1381_v49 }
  0x24   : > { %5597 = vmatprep.subr.bf16.mxu0 %v6106_v2  ;;  %v6123_v19 = vld [vmem:[%s6376_s21 + $0x78] sm:$0xff]   ;;  %v945_v57 = vand.u32 15, %v861_v45  ;;  %v866_v58 = vadd.s32 104, %v6438_v28  ;;  %v868_v59 = vadd.s32 120, %v6438_v28  ;;  %v863_v60 = vadd.s32 80, %v6438_v28  ;;  %9032 = vst [vmem:[#allocation7_spill] sm:$0xff] %v6478_v63 }
  0x25   : > { %v865_v61 = vadd.s32 96, %v6438_v28  ;;  %v867_v1 = vadd.s32 112, %v6438_v28  ;;  %v1306_v3 = vsel %vm6458_vm5, 0.0, %v8910_v46  ;;  %vm6493_vm8 = vcmp.eq.s32.totalorder %v931_v53, 0 }
  0x26   : > { %vm6500_vm9 = vcmp.eq.s32.totalorder %v952_v55, 15  ;;  %vm6504_vm10 = vcmp.eq.s32.totalorder %v966_v56, 15  ;;  %vm6508_vm11 = vcmp.eq.s32.totalorder %v945_v57, 0  ;;  %v1387_v21 = vsel %vm6493_vm8, 0.0, %v8910_v46 }
  0x27   : > { %5598 = vmatpush3.bf16.msra.mxu0 %v6106_v2  ;;  %v1304_v2 = vsel %vm6454_vm4, 0.0, %v8910_v46  ;;  %v1312_v27 = vsel %vm6504_vm10, 0.0, %v8910_v46  ;;  %v1389_v29 = vsel %vm6508_vm11, 0.0, %v8910_v46  ;;  %v874_v38 = vadd.s32 168, %v6438_v28 }
  0x28   : > { %5599 = vmatprep.subr.bf16.mxu0 %v6107_v4  ;;  %v876_v39 = vadd.s32 184, %v6438_v28  ;;  %v871_v40 = vadd.s32 144, %v6438_v28  ;;  %v873_v41 = vadd.s32 160, %v6438_v28  ;;  %v6567_v43 = vpack.c.bf16 %v1312_v27, %v8910_v46 }
  0x29   : > { %v6570_v44 = vpack.c.bf16 %v8910_v46, %v1387_v21  ;;  %v6573_v45 = vpack.c.bf16 %v8910_v46, %v1389_v29  ;;  %v1036_v55 = vand.u32 15, %v874_v38  ;;  %vm1603_vm5 = vcmask 261120  }
  0x2a   : > { %9055 = vst [vmem:[#allocation12_spill] sm:$0xff] %v6567_v43  ;;  %v1050_v56 = vand.u32 15, %v876_v39  ;;  %v1015_v57 = vand.u32 15, %v871_v40  ;;  %vm2019_vm10 = vsmask.f32 7424  ;;  %vm2085_vm11 = vcmask 1047552  }
  0x2b   : > { %5600 = vmatpush3.bf16.msra.mxu0 %v6107_v4  ;;  %v1385_v4 = vsel %vm6462_vm6, 0.0, %v8910_v46  ;;  %9056 = vst [vmem:[#allocation13_spill] sm:$0xff] %v6573_v45  ;;  %vm6635_vm6 = vcmp.eq.s32.totalorder %v1036_v55, 15  ;;  %v879_v54 = vadd.s32 208, %v6438_v28 }
  0x2c   : > { %5705 = vmatprep.subr.bf16.mxu0 %v6127_v23  ;;  %v6522_v20 = vpack.c.bf16 %v8910_v46, %v1385_v4  ;;  %vm6643_vm8 = vcmp.eq.s32.totalorder %v1015_v57, 0 }
  0x2e   : > { %5602 = vmatmul.mubr.msk.bf16.vlgmr.msra.gmra.mxu0 %vm594_vm0, %v6109_v5 }
  0x2f   : > { %5605 = vmatprep.mubr.msk.bf16.mxu0 %vm594_vm0, %v6110_v6  ;;  %5706 = vmatpush3.bf16.msra.mxu0 %v6127_v23  ;;  %v1308_v6 = vsel %vm6466_vm7, 0.0, %v8910_v46  ;;  %vm6639_vm7 = vcmp.eq.s32.totalorder %v1050_v56, 15 }
  0x30   : > { %5707 = vmatprep.subr.bf16.mxu0 %v6128_v24  ;;  %v6528_v23 = vpack.c.bf16 %v1308_v6, %v8910_v46  ;;  %v880_v6 = vadd.s32 216, %v6438_v28 }
  0x32   : > { %9043 = vst [vmem:[#allocation10_spill] sm:$0xff] %v6528_v23  ;;  %v1078_v32 = vand.u32 15, %v880_v6 }
  0x33   : > { %5708 = vmatpush3.bf16.msra.mxu0 %v6128_v24  ;;  %v1310_v24 = vsel %vm6500_vm9, 0.0, %v8910_v46 }
  0x34   : > { %5777 = vmatprep.subr.bf16.mxu0 %v6435_v26  ;;  %v6564_v42 = vpack.c.bf16 %v1310_v24, %v8910_v46 }
  0x36   : > { %5606 = vmatmul.mubr.msk.bf16.gmra.mxu0 %vm594_vm0, %v6111_v7  ;;  %9054 = vst [vmem:[#allocation11_spill] sm:$0xff] %v6564_v42 }
  0x37   : > { %5609 = vmatprep.mubr.msk.bf16.mxu0 %vm594_vm0, %v6112_v8 }
  0x3e   : > { %5610 = vmatmul.mubr.msk.bf16.gmra.mxu0 %vm594_vm0, %v6113_v9 }
  0x3f   : > { %5613 = vmatprep.mubr.msk.bf16.mxu0 %vm594_vm0, %v6114_v10  ;;  %v980_v10 = vand.u32 15, %v866_v58  ;;  %v1029_v58 = vand.u32 15, %v873_v41  ;;  %v1322_v41 = vsel %vm6635_vm6, 0.0, %v8910_v46 }
  0x40   : > { %v6701_v6 = vpack.c.bf16 %v1322_v41, %v8910_v46 }
  0x41   : > { %vm6539_vm12 = vcmp.eq.s32.totalorder %v980_v10, 15  ;;  %vm6647_vm9 = vcmp.eq.s32.totalorder %v1029_v58, 0 }
  0x42   : > { %v1314_v47 = vsel %vm6539_vm12, 0.0, %v8910_v46  ;;  %v1401_v38 = vsel %vm6647_vm9, 0.0, %v8910_v46  ;;  %9081 = vst [vmem:[#allocation20_spill] sm:$0xff] %v6701_v6 }
  0x43   : > { %v6614_v4 = vpack.c.bf16 %v1314_v47, %v8910_v46  ;;  %v1324_v47 = vsel %vm6639_vm7, 0.0, %v8910_v46  ;;  %v6691_v58 = vpack.c.bf16 %v8910_v46, %v1401_v38  ;;  %vm1564_vm7 = vcmask 1040384  }
  0x45   : > { %9063 = vst [vmem:[#allocation14_spill] sm:$0xff] %v6614_v4 }
  0x46   : > { %5614 = vmatmul.mubr.msk.bf16.gmra.mxu0 %vm594_vm0, %v6115_v11  ;;  %v994_v11 = vand.u32 15, %v868_v59 }
  0x47   : > { %5617 = vmatprep.mubr.msk.bf16.mxu0 %vm594_vm0, %v6116_v12  ;;  %v959_v12 = vand.u32 15, %v863_v60  ;;  %v878_v60 = vadd.s32 200, %v6438_v28 }
  0x48   : > { %vm6543_vm13 = vcmp.eq.s32.totalorder %v994_v11, 15 }
  0x49   : > { %vm6547_vm14 = vcmp.eq.s32.totalorder %v959_v12, 0  ;;  %v1316_v48 = vsel %vm6543_vm13, 0.0, %v8910_v46  ;;  %v1064_v24 = vand.u32 15, %v878_v60 }
  0x4a   : > { %v1391_v49 = vsel %vm6547_vm14, 0.0, %v8910_v46  ;;  %v6617_v5 = vpack.c.bf16 %v1316_v48, %v8910_v46 }
  0x4b   : > { %vm6676_vm12 = vcmp.eq.s32.totalorder %v1064_v24, 15 }
  0x4c   : > { %9064 = vst [vmem:[#allocation15_spill] sm:$0xff] %v6617_v5 }
  0x4e   : > { %5618 = vmatmul.mubr.msk.bf16.gmra.mxu0 %vm594_vm0, %v6117_v13  ;;  %v973_v13 = vand.u32 15, %v865_v61  ;;  %v6604_v61 = vpack.c.bf16 %v8910_v46, %v1391_v49 }
  0x4f   : > { %5621 = vmatprep.mubr.msk.bf16.mxu0 %vm594_vm0, %v6118_v14  ;;  %v870_v14 = vadd.s32 136, %v6438_v28 }
  0x50   : > { %vm6551_vm15 = vcmp.eq.s32.totalorder %v973_v13, 0 }
  0x51   : > { %v1008_v34 = vand.u32 15, %v870_v14  ;;  %v1393_v50 = vsel %vm6551_vm15, 0.0, %v8910_v46  ;;  %vm1296_vm15 = vcmp.eq.s32.totalorder %v1078_v32, 15 }
  0x52   : > { %v6621_v7 = vpack.c.bf16 %v8910_v46, %v1393_v50  ;;  %v1328_v13 = vsel %vm1296_vm15, 0.0, %v8910_v46 }
  0x53   : > { %vm6587_vm2 = vcmp.eq.s32.totalorder %v1008_v34, 15 }
  0x54   : > { %v1318_v9 = vsel %vm6587_vm2, 0.0, %v8910_v46 }
  0x56   : > { %5622 = vmatmul.mubr.msk.bf16.gmra.mxu0 %vm594_vm0, %v6119_v15  ;;  %v872_v15 = vadd.s32 152, %v6438_v28 }
  0x57   : > { %5625 = vmatprep.mubr.msk.bf16.mxu0 %vm594_vm0, %v6120_v16  ;;  %v987_v16 = vand.u32 15, %v867_v1  ;;  %v875_v1 = vadd.s32 176, %v6438_v28 }
  0x58   : > { %v1022_v35 = vand.u32 15, %v872_v15 }
  0x59   : > { %vm6555_vm1 = vcmp.eq.s32.totalorder %v987_v16, 0  ;;  %v1043_v27 = vand.u32 15, %v875_v1 }
  0x5a   : > { %vm6591_vm3 = vcmp.eq.s32.totalorder %v1022_v35, 15  ;;  %v1395_v53 = vsel %vm6555_vm1, 0.0, %v8910_v46  ;;  %v6658_v35 = vpack.c.bf16 %v1318_v9, %v8910_v46  ;;  %vm6734_vm1 = vmand %vm2085_vm11, %vm2019_vm10 }
  0x5b   : > { %v1320_v10 = vsel %vm6591_vm3, 0.0, %v8910_v46  ;;  %v6630_v11 = vpack.c.bf16 %v8910_v46, %v1395_v53  ;;  %vm1371_vm13 = vcmp.eq.s32.totalorder %v1043_v27, 0 }
  0x5c   : > { %9073 = vst [vmem:[#allocation16_spill] sm:$0xff] %v6658_v35  ;;  %v6661_v36 = vpack.c.bf16 %v1320_v10, %v8910_v46  ;;  %v6705_v10 = vpack.c.bf16 %v1324_v47, %v8910_v46 }
  0x5e   : > { %5626 = vmatmul.mubr.msk.bf16.gmra.mxu0 %vm594_vm0, %v6121_v17  ;;  %v869_v17 = vadd.s32 128, %v6438_v28  ;;  %9074 = vst [vmem:[#allocation17_spill] sm:$0xff] %v6661_v36  ;;  %9082 = vst [vmem:[#allocation21_spill] sm:$0xff] %v6705_v10 }
  0x5f   : > { %5629 = vmatprep.mubr.msk.bf16.mxu0 %vm594_vm0, %v6122_v18  ;;  %v6516_v18 = vpack.c.bf16 %v1304_v2, %v8910_v46  ;;  %v877_v2 = vadd.s32 192, %v6438_v28 }
  0x60   : > { %v1001_v37 = vand.u32 15, %v869_v17 }
  0x61   : > { %9041 = vst [vmem:[#allocation8_spill] sm:$0xff] %v6516_v18  ;;  %v1057_v29 = vand.u32 15, %v877_v2  ;;  %v6129_v2 = vld [vmem:[%s8895_s3] sm:$0xff]  }
  0x62   : > { %vm6598_vm4 = vcmp.eq.s32.totalorder %v1001_v37, 0  ;;  %v1399_v37 = vsel %vm6643_vm8, 0.0, %v8910_v46 }
  0x63   : > { %v1397_v12 = vsel %vm6598_vm4, 0.0, %v8910_v46  ;;  %vm6680_vm14 = vcmp.eq.s32.totalorder %v1057_v29, 0  ;;  %v6688_v57 = vpack.c.bf16 %v8910_v46, %v1399_v37  ;;  %v6724_v29 = vadd.s32 232, %v6438_v28 }
  0x64   : > { %v6655_v33 = vpack.c.bf16 %v8910_v46, %v1397_v12  ;;  %v1326_v12 = vsel %vm6676_vm12, 0.0, %v8910_v46  ;;  %v1405_v14 = vsel %vm6680_vm14, 0.0, %v8910_v46  ;;  %vm1429_vm4 = vsmask.f32 256 }
  0x65   : > { %v6745_v47 = vpack.c.bf16 %v1326_v12, %v8910_v46  ;;  %vm6946_vm11 = vmand %vm1564_vm7, %vm1429_vm4 }
  0x66   : > { %5630 = vmatmul.mubr.msk.bf16.gmra.mxu0 %vm594_vm0, %v6123_v19  ;;  %v6519_v19 = vpack.c.bf16 %v1306_v3, %v8910_v46  ;;  %v6611_v3 = vld [vmem:[%s8894_s2] ss:$0 sm:$0xff] }
  0x68   : > { %9042 = vst [vmem:[#allocation9_spill] sm:$0xff] %v6519_v19 }
  0xee   : > { %v5603_v59 = vpop.f32.mrf.mxu0 }
  0xef   : > { %v686_v17 = vadd.f32 %v5603_v59, %v6611_v3  ;;  %v881_v59 = vadd.s32 224, %v6438_v28 }
  0xf0   : > { %v677_v8 = vpop.f32.mrf.mxu0 }
  0xf1   : > { %v678_v30 = vadd.f32 %v6611_v3, %v677_v8  ;;  %v806_v48 = vmax.f32 %v686_v17, 0.0  ;;  %v1403_v8 = vsel %vm1371_vm13, 0.0, %v8910_v46 }
  0xf2   : > { %v5604_v21 = vpop.f32.mrf.mxu0 }
  0xf3   : > { %v689_v31 = vadd.f32 %v5604_v21, %v6611_v3  ;;  %v804_v52 = vmax.f32 %v678_v30, 0.0  ;;  %v1071_v21 = vand.u32 15, %v879_v54  ;;  %v6727_v30 = vpack.c.bf16 %v8910_v46, %v1403_v8 }
  0xf4   : > { %v680_v34 = vpop.f32.mrf.mxu0 }
  0xf5   : > { %v807_v39 = vmax.f32 %v689_v31, 0.0  ;;  %v681_v40 = vadd.f32 %v6611_v3, %v680_v34  ;;  %v1085_v31 = vand.u32 15, %v881_v59  ;;  %vm6755_vm2 = vcmp.eq.s32.totalorder %v1071_v21, 0 }
  0xf6   : > { %v5607_v49 = vpop.f32.mrf.mxu0 }
  0xf7   : > { %v805_v53 = vmax.f32 %v681_v40, 0.0  ;;  %v6685_v55 = vpack.c.bf16 %v807_v39, %v806_v48  ;;  %v702_v1 = vadd.f32 %v5607_v49, %v6611_v3  ;;  %v6741_v39 = vld [vmem:[%s8895_s3 + $0x38] sm:$0xff]   ;;  %v6748_v48 = vpack.c.bf16 %v1328_v13, %v8910_v46 }
  0xf8   : > { %v693_v56 = vpop.f32.mrf.mxu0  ;;  %v6751_v49 = vpack.c.bf16 %v8910_v46, %v1405_v14  ;;  %vm6765_vm3 = vcmp.eq.s32.totalorder %v1085_v31, 0  ;;  %v1092_v13 = vand.u32 15, %v6724_v29  ;;  %v6775_v14 = vadd.s32 248, %v6438_v28 }
  0xf9   : > { %9079 = vst [vmem:[#allocation18_spill] sm:$0xff] %v6685_v55  ;;  %v6694_v60 = vpack.c.bf16 %v805_v53, %v804_v52  ;;  %v694_v16 = vadd.f32 %v6611_v3, %v693_v56  ;;  %v8908_v24 = vshll.u32 %v6685_v55, 16  ;;  %v810_v32 = vmax.f32 %v702_v1, 0.0 }
  0xfa   : > { %v5608_v9 = vpop.f32.mrf.mxu0  ;;  %v883_v53 = vadd.s32 240, %v6438_v28  ;;  %vm6832_vm6 = vcmp.eq.s32.totalorder %v1092_v13, 15 }
  0xfb   : > { %9080 = vst [vmem:[#allocation19_spill] sm:$0xff] %v6694_v60  ;;  %v8907_v15 = vshll.u32 %v6694_v60, 16  ;;  %v705_v17 = vadd.f32 %v5608_v9, %v6611_v3  ;;  %5638 = vmatmul.mubr.msk.bf16.vlgmr.msra.gmra.mxu1 %vm1603_vm5, %v6694_v60  ;;  %v8909_v40 = vshrl.u32 %v6694_v60, 16  ;;  %v808_v50 = vmax.f32 %v694_v16, 0.0 }
  0xfc   : > { %5670 = vmatpush3.bf16.msra.mxu1 %v6429_v25  ;;  %v696_v27 = vpop.f32.mrf.mxu0  ;;  %5641 = vmatprep.mubr.msk.bf16.mxu1 %vm1603_vm5, %v6685_v55  ;;  %v9083_v25 = vmov 0  ;;  %v2022_v54 = vrot.slane %v8908_v24, 1  ;;  %v1438_v16 = vshrl.u32 %v6685_v55, 16 }
  0xfd   : > { %v811_v34 = vmax.f32 %v705_v17, 0.0  ;;  %v697_v37 = vadd.f32 %v6611_v3, %v696_v27  ;;  %v2020_v38 = vrot.slane %v8907_v15, 1  ;;  %v9084_v25 = vsel %vm6734_vm1, 4294967295, %v9083_v25  ;;  %5671 = vmatprep.subr.bf16.mxu1 %v6129_v2 }
  0xfe   : > { %9085 = vst [vmem:[#allocation22_spill] sm:$0xff] %v9084_v25  ;;  %v5611_v41 = vpop.f32.mrf.mxu0  ;;  %v6805_v24 = vrot.slane %v1438_v16, 7 }
  0xff   : > { %v6753_v51 = vpack.c.bf16 %v811_v34, %v810_v32  ;;  %v809_v52 = vmax.f32 %v697_v37, 0.0  ;;  %v2021_v59 = vor.u32 %v2020_v38, %v8909_v40  ;;  %v2087_v1 = vsel %vm6734_vm1, 0, %v2020_v38 }
 0x100   : > { %v709_v56 = vpop.f32.mrf.mxu0  ;;  %5672 = vmatpush3.bf16.msra.mxu1 %v6129_v2  ;;  %v718_v12 = vadd.f32 %v5611_v41, %v6611_v3  ;;  %v2088_v32 = vmul.bf16 %v2087_v1, %v6478_v63  ;;  %v2024_v38 = vor.u32 %v2022_v54, %v1438_v16 }
 0x101   : > { %9086 = vst [vmem:[#allocation23_spill] sm:$0xff] %v6753_v51  ;;  %v6769_v9 = vpack.c.bf16 %v809_v52, %v808_v50  ;;  %5741 = vmatprep.subr.bf16.mxu1 %v6741_v39  ;;  %v710_v17 = vadd.f32 %v6611_v3, %v709_v56  ;;  %v6781_v27 = vsel %vm2019_vm10, %v2021_v59, %v2022_v54  ;;  %v6132_v50 = vld [vmem:[%s8895_s3 + $0x40] sm:$0xff]   ;;  %v1407_v52 = vsel %vm6755_vm2, 0.0, %v8910_v46 }
 0x102   : > { %v5612_v21 = vpop.f32.mrf.mxu0  ;;  %9092 = vst [vmem:[#allocation25_spill] sm:$0xff] %v6781_v27  ;;  %v2089_v29 = vmul.bf16 %v6781_v27, %v6516_v18  ;;  %v1409_v56 = vsel %vm6765_vm3, 0.0, %v8910_v46  ;;  %v814_v59 = vmax.f32 %v718_v12, 0.0  ;;  %5709 = vmatprep.mubr.msk.bf16.mxu0 %vm1603_vm5, %v2088_v32  ;;  %v9161_v63 = vld [vmem:[#allocation19_spill] sm:$0xff]  ;;  %v9170_v27 = vld [vmem:[#allocation21_spill] sm:$0xff] }
 0x103   : > { %9091 = vst [vmem:[#allocation24_spill] sm:$0xff] %v6769_v9  ;;  %v721_v31 = vadd.f32 %v5612_v21, %v6611_v3  ;;  %5642 = vmatmul.mubr.msk.bf16.gmra.mxu1 %vm1603_vm5, %v6769_v9  ;;  %v1449_v34 = vshll.u32 %v6769_v9, 16  ;;  %v1446_v41 = vshrl.u32 %v6769_v9, 16  ;;  %v812_v22 = vmax.f32 %v710_v17, 0.0 }
 0x104   : > { %v712_v37 = vpop.f32.mrf.mxu0  ;;  %5645 = vmatprep.mubr.msk.bf16.mxu1 %vm1603_vm5, %v6753_v51  ;;  %5710 = vmatmul.mubr.msk.bf16.vlgmr.msra.gmra.mxu0 %vm1603_vm5, %v2089_v29 }
 0x105   : > { %v815_v1 = vmax.f32 %v721_v31, 0.0  ;;  %v713_v54 = vadd.f32 %v6611_v3, %v712_v37  ;;  %v2025_v21 = vrot.slane %v1449_v34, 1  ;;  %v6807_v40 = vrot.slane %v1446_v41, 7  ;;  %5778 = vmatpush3.bf16.msra.mxu0 %v6435_v26 }
 0x106   : > { %v5615_v15 = vpop.f32.mrf.mxu0  ;;  %v9095_v31 = vshll.u32 %v6753_v51, 16  ;;  %5779 = vmatprep.subr.bf16.mxu0 %v6132_v50  ;;  %v1099_v26 = vand.u32 15, %v883_v53 }
 0x107   : > { %v6810_v2 = vpack.c.bf16 %v815_v1, %v814_v59  ;;  %v813_v8 = vmax.f32 %v713_v54, 0.0  ;;  %v6813_v12 = vsel %vm2019_vm10, %v2024_v38, %v2025_v21  ;;  %v2027_v37 = vor.u32 %v2025_v21, %v1446_v41  ;;  %v6826_v38 = vld [vmem:[%s8895_s3 + $0x68] sm:$0xff]  }
 0x108   : > { %9094 = vst [vmem:[#allocation27_spill] sm:$0xff] %v6813_v12  ;;  %v2028_v32 = vrot.slane %v9095_v31, 1  ;;  %v725_v17 = vpop.f32.mrf.mxu0  ;;  %v2090_v16 = vmul.bf16 %v6813_v12, %v6519_v19  ;;  %v1451_v59 = vor.u32 %v1449_v34, %v6807_v40  ;;  %9096 = vst [vmem:[#allocation28_spill] sm:$0xff] %v6826_v38  ;;  %v8915_v1 = vshrl.u32 %v6753_v51, 16  ;;  %v9164_v19 = vld [vmem:[#allocation16_spill] sm:$0xff] }
 0x109   : > { %9093 = vst [vmem:[#allocation26_spill] sm:$0xff] %v6810_v2  ;;  %v6829_v54 = vpack.c.bf16 %v813_v8, %v812_v22  ;;  %v734_v41 = vadd.f32 %v5615_v15, %v6611_v3  ;;  %v726_v21 = vadd.f32 %v6611_v3, %v725_v17  ;;  %5780 = vmatpush3.bf16.msra.mxu0 %v6132_v50  ;;  %v9105_v31 = vshll.u32 %v6810_v2, 16 }
 0x10a   : > { %v5616_v34 = vpop.f32.mrf.mxu0  ;;  %5713 = vmatprep.mubr.msk.bf16.mxu0 %vm1603_vm5, %v2090_v16  ;;  %v6840_v29 = vsel %vm2019_vm10, %v2027_v37, %v2028_v32  ;;  %v6844_v22 = vsel %vm1429_vm4, %v6805_v24, %v1451_v59  ;;  %v2030_v59 = vor.u32 %v2028_v32, %v8915_v1  ;;  %5849 = vmatprep.subr.bf16.mxu0 %v6826_v38  ;;  %vm6895_vm9 = vcmp.eq.s32.totalorder %v1099_v26, 0 }
 0x10b   : > { %9097 = vst [vmem:[#allocation29_spill] sm:$0xff] %v6829_v54  ;;  %9100 = vst [vmem:[#allocation30_spill] sm:$0xff] %v6840_v29  ;;  %v737_v8 = vadd.f32 %v5616_v34, %v6611_v3  ;;  %5646 = vmatmul.mubr.msk.bf16.gmra.mxu1 %vm1603_vm5, %v6829_v54  ;;  %v2091_v15 = vmul.bf16 %v6840_v29, %v6528_v23  ;;  %v8916_v17 = vshll.u32 %v6829_v54, 16  ;;  %v1106_v34 = vand.u32 15, %v6775_v14 }
 0x10c   : > { %v728_v37 = vpop.f32.mrf.mxu0  ;;  %5649 = vmatprep.mubr.msk.bf16.mxu1 %vm1603_vm5, %v6810_v2  ;;  %v818_v28 = vmax.f32 %v734_v41, 0.0  ;;  %v1462_v32 = vshrl.u32 %v6829_v54, 16  ;;  %v9101_v14 = vmov 1.0   ;;  %v2034_v25 = vrot.slane %v9105_v31, 1 }
 0x10d   : > { %v819_v46 = vmax.f32 %v737_v8, 0.0  ;;  %v729_v13 = vadd.f32 %v6611_v3, %v728_v37  ;;  %v2031_v50 = vrot.slane %v8916_v17, 1  ;;  %5714 = vmatmul.mubr.msk.bf16.gmra.mxu0 %vm1603_vm5, %v2091_v15  ;;  %v1330_v53 = vsel %vm6832_vm6, 0.0, %v9101_v14 }
 0x10e   : > { %v5619_v18 = vpop.f32.mrf.mxu0  ;;  %v6872_v8 = vpack.c.bf16 %v9101_v14, %v1407_v52  ;;  %v816_v37 = vmax.f32 %v726_v21, 0.0  ;;  %v6878_v16 = vpack.c.bf16 %v9101_v14, %v1409_v56  ;;  %v6889_v21 = vpack.c.bf16 %v1330_v53, %v9101_v14 }
 0x10f   : > { %v817_v1 = vmax.f32 %v729_v13, 0.0  ;;  %v6875_v17 = vsel %vm2019_vm10, %v2030_v59, %v2031_v50  ;;  %v6880_v41 = vpack.c.bf16 %v819_v46, %v818_v28  ;;  %v2033_v9 = vor.u32 %v2031_v50, %v1462_v32 }
 0x110   : > { %9102 = vst [vmem:[#allocation31_spill] sm:$0xff] %v6875_v17  ;;  %9103 = vst [vmem:[#allocation32_spill] sm:$0xff] %v6878_v16  ;;  %v741_v15 = vpop.f32.mrf.mxu0  ;;  %v2092_v38 = vmul.bf16 %v6875_v17, %v6564_v42  ;;  %vm6891_vm8 = vcmp.eq.s32.totalorder %v1106_v34, 15  ;;  %v9111_v46 = vshrl.u32 %v6694_v60, 16  ;;  %v1470_v59 = vshrl.u32 %v6810_v2, 16 }
 0x111   : > { %9104 = vst [vmem:[#allocation33_spill] sm:$0xff] %v6880_v41  ;;  %v6886_v52 = vpack.c.bf16 %v817_v1, %v816_v37  ;;  %v750_v50 = vadd.f32 %v5619_v18, %v6611_v3  ;;  %v6905_v53 = vsel %vm2019_vm10, %v2033_v9, %v2034_v25  ;;  %v742_v34 = vadd.f32 %v6611_v3, %v741_v15 }
 0x112   : > { %v1433_v56 = vrot.slane %v9111_v46, 7  ;;  %v5620_v1 = vpop.f32.mrf.mxu0  ;;  %5717 = vmatprep.mubr.msk.bf16.mxu0 %vm1603_vm5, %v2092_v38  ;;  %9112 = vst [vmem:[#allocation35_spill] sm:$0xff] %v6905_v53  ;;  %v2093_v37 = vmul.bf16 %v6905_v53, %v6567_v43  ;;  %v9113_v9 = vshll.u32 %v6685_v55, 16  ;;  %v1332_v15 = vsel %vm6891_vm8, 0.0, %v9101_v14 }
 0x113   : > { %9106 = vst [vmem:[#allocation34_spill] sm:$0xff] %v6886_v52  ;;  %v753_v26 = vadd.f32 %v5620_v1, %v6611_v3  ;;  %5650 = vmatmul.mubr.msk.bf16.gmra.mxu1 %vm1603_vm5, %v6886_v52  ;;  %v1411_v1 = vsel %vm6895_vm9, 0.0, %v9101_v14  ;;  %v2036_v18 = vor.u32 %v2034_v25, %v1470_v59  ;;  %v9114_v16 = vshll.u32 %v6886_v52, 16 }
 0x114   : > { %v744_v46 = vpop.f32.mrf.mxu0  ;;  %5653 = vmatprep.mubr.msk.bf16.mxu1 %vm1603_vm5, %v6880_v41  ;;  %v1443_v38 = vor.u32 %v9113_v9, %v6805_v24  ;;  %v9115_v42 = vshll.u32 %v6694_v60, 16  ;;  %v822_v55 = vmax.f32 %v750_v50, 0.0  ;;  %v1478_v13 = vshrl.u32 %v6886_v52, 16 }
 0x115   : > { %v823_v43 = vmax.f32 %v753_v26, 0.0  ;;  %v745_v31 = vadd.f32 %v6611_v3, %v744_v46  ;;  %v2037_v53 = vrot.slane %v9114_v16, 1  ;;  %5718 = vmatmul.mubr.msk.bf16.gmra.mxu0 %vm1603_vm5, %v2093_v37  ;;  %v9116_v9 = vshrl.u32 %v6753_v51, 16 }
 0x116   : > { %v1436_v17 = vor.u32 %v9115_v42, %v1433_v56  ;;  %v5623_v24 = vpop.f32.mrf.mxu0  ;;  %v820_v23 = vmax.f32 %v742_v34, 0.0  ;;  %v1464_v25 = vrot.slane %v1462_v32, 7  ;;  %v9119_v37 = vshll.u32 %v6880_v41, 16 }
 0x117   : > { %v1456_v28 = vrot.slane %v9116_v9, 7  ;;  %v821_v26 = vmax.f32 %v745_v31, 0.0  ;;  %v6936_v46 = vsel %vm2019_vm10, %v2036_v18, %v2037_v53  ;;  %v6938_v12 = vpack.c.bf16 %v823_v43, %v822_v55 }
 0x118   : > { %9117 = vst [vmem:[#allocation36_spill] sm:$0xff] %v6936_v46  ;;  %v757_v16 = vpop.f32.mrf.mxu0  ;;  %v2094_v42 = vmul.bf16 %v6936_v46, %v6614_v4  ;;  %v2039_v50 = vor.u32 %v2037_v53, %v1478_v13  ;;  %v2040_v60 = vrot.slane %v9119_v37, 1  ;;  %v9120_v9 = vmov 0 }
 0x119   : > { %9118 = vst [vmem:[#allocation37_spill] sm:$0xff] %v6938_v12  ;;  %v9121_v9 = vsel %vm6946_vm11, 4294967295, %v9120_v9  ;;  %v6950_v34 = vpack.c.bf16 %v821_v26, %v820_v23  ;;  %v6953_v32 = vsel %vm1429_vm4, %v1433_v56, %v1443_v38  ;;  %v6956_v43 = vpack.c.bf16 %v1332_v15, %v9101_v14 }
 0x11a   : > { %9122 = vst [vmem:[#allocation38_spill] sm:$0xff] %v9121_v9  ;;  %v6959_v55 = vpack.c.bf16 %v9101_v14, %v1411_v1  ;;  %v1486_v53 = vshrl.u32 %v6880_v41, 16  ;;  %v766_v31 = vadd.f32 %v5623_v24, %v6611_v3  ;;  %v5624_v18 = vpop.f32.mrf.mxu0  ;;  %5721 = vmatprep.mubr.msk.bf16.mxu0 %vm1603_vm5, %v2094_v42  ;;  %v6965_v37 = vsel %vm2019_vm10, %v2039_v50, %v2040_v60 }
 0x11b   : > { %9123 = vst [vmem:[#allocation39_spill] sm:$0xff] %v6950_v34  ;;  %9124 = vst [vmem:[#allocation40_spill] sm:$0xff] %v6956_v43  ;;  %v1472_v23 = vrot.slane %v1470_v59, 7  ;;  %v758_v56 = vadd.f32 %v6611_v3, %v757_v16  ;;  %v769_v38 = vadd.f32 %v5624_v18, %v6611_v3  ;;  %5654 = vmatmul.mubr.msk.bf16.gmra.mxu1 %vm1603_vm5, %v6950_v34  ;;  %v6976_v1 = vsel %vm6946_vm11, 0, %v1436_v17 }
 0x11c   : > { %9125 = vst [vmem:[#allocation41_spill] sm:$0xff] %v6959_v55  ;;  %9126 = vst [vmem:[#allocation42_spill] sm:$0xff] %v6965_v37  ;;  %v2095_v14 = vmul.bf16 %v6965_v37, %v6617_v5  ;;  %v760_v26 = vpop.f32.mrf.mxu0  ;;  %5657 = vmatprep.mubr.msk.bf16.mxu1 %vm1603_vm5, %v6938_v12  ;;  %v9127_v59 = vshll.u32 %v6753_v51, 16  ;;  %v9128_v42 = vshll.u32 %v6829_v54, 16  ;;  %v2042_v15 = vor.u32 %v2040_v60, %v1486_v53 }
 0x11d   : > { %v827_v18 = vmax.f32 %v769_v38, 0.0  ;;  %v761_v5 = vadd.f32 %v6611_v3, %v760_v26  ;;  %v9129_v37 = vshll.u32 %v6950_v34, 16  ;;  %v826_v4 = vmax.f32 %v766_v31, 0.0 }
 0x11e   : > { %v1459_v16 = vor.u32 %v9127_v59, %v1456_v28  ;;  %v1467_v50 = vor.u32 %v9128_v42, %v1464_v25  ;;  %5722 = vmatmul.mubr.msk.bf16.gmra.mxu0 %vm1603_vm5, %v2095_v14  ;;  %v5627_v24 = vpop.f32.mrf.mxu0  ;;  %v1494_v46 = vshrl.u32 %v6950_v34, 16  ;;  %v9130_v55 = vshll.u32 %v6810_v2, 16 }
 0x11f   : > { %v2043_v17 = vrot.slane %v9129_v37, 1  ;;  %v1480_v59 = vrot.slane %v1478_v13, 7  ;;  %v824_v9 = vmax.f32 %v758_v56, 0.0  ;;  %v825_v54 = vmax.f32 %v761_v5, 0.0 }
 0x120   : > { %v1475_v51 = vor.u32 %v9130_v55, %v1472_v23  ;;  %v6995_v26 = vrot.slane %v1486_v53, 7  ;;  %v6997_v60 = vpack.c.bf16 %v827_v18, %v826_v4  ;;  %v773_v37 = vpop.f32.mrf.mxu0  ;;  %v9133_v42 = vshll.u32 %v6938_v12, 16 }
 0x121   : > { %v6993_v38 = vsel %vm2019_vm10, %v2042_v15, %v2043_v17  ;;  %v2045_v14 = vor.u32 %v2043_v17, %v1494_v46  ;;  %v7003_v2 = vpack.c.bf16 %v825_v54, %v824_v9  ;;  %v782_v13 = vadd.f32 %v5627_v24, %v6611_v3 }
 0x122   : > { %9131 = vst [vmem:[#allocation43_spill] sm:$0xff] %v6993_v38  ;;  %9132 = vst [vmem:[#allocation44_spill] sm:$0xff] %v6997_v60  ;;  %v2096_v31 = vmul.bf16 %v6993_v38, %v6658_v35  ;;  %v2046_v29 = vrot.slane %v9133_v42, 1  ;;  %v7008_v5 = vsel %vm1429_vm4, %v6807_v40, %v1459_v16  ;;  %v7011_v55 = vsel %vm1429_vm4, %v1456_v28, %v1467_v50  ;;  %v5628_v53 = vpop.f32.mrf.mxu0 }
 0x123   : > { %9134 = vst [vmem:[#allocation45_spill] sm:$0xff] %v7003_v2  ;;  %v1502_v4 = vshrl.u32 %v6938_v12, 16  ;;  %v7019_v54 = vsel %vm1429_vm4, %v1464_v25, %v1475_v51  ;;  %v9136_v9 = vshll.u32 %v6886_v52, 16  ;;  %v774_v40 = vadd.f32 %v6611_v3, %v773_v37  ;;  %5658 = vmatmul.mubr.msk.bf16.gmra.mxu1 %vm1603_vm5, %v7003_v2 }
 0x124   : > { %5725 = vmatprep.mubr.msk.bf16.mxu0 %vm1603_vm5, %v2096_v31  ;;  %v7016_v56 = vsel %vm2019_vm10, %v2045_v14, %v2046_v29  ;;  %v785_v24 = vadd.f32 %v5628_v53, %v6611_v3  ;;  %v1513_v16 = vshll.u32 %v7003_v2, 16  ;;  %v1521_v50 = vshll.u32 %v6997_v60, 16  ;;  %v776_v18 = vpop.f32.mrf.mxu0  ;;  %5661 = vmatprep.mubr.msk.bf16.mxu1 %vm1603_vm5, %v6997_v60 }
 0x125   : > { %9135 = vst [vmem:[#allocation46_spill] sm:$0xff] %v7016_v56  ;;  %v1483_v15 = vor.u32 %v9136_v9, %v1480_v59  ;;  %v2097_v28 = vmul.bf16 %v7016_v56, %v6661_v36  ;;  %v2048_v51 = vor.u32 %v2046_v29, %v1502_v4  ;;  %v9137_v25 = vshll.u32 %v6880_v41, 16 }
 0x126   : > { %v7036_v37 = vrot.slane %v1494_v46, 7  ;;  %v830_v31 = vmax.f32 %v782_v13, 0.0  ;;  %v831_v14 = vmax.f32 %v785_v24, 0.0  ;;  %v777_v42 = vadd.f32 %v6611_v3, %v776_v18  ;;  %v5631_v9 = vpop.f32.mrf.mxu0 }
 0x127   : > { %v1491_v17 = vor.u32 %v9137_v25, %v6995_v26  ;;  %v2049_v53 = vrot.slane %v1513_v16, 1  ;;  %5726 = vmatmul.mubr.msk.bf16.gmra.mxu0 %vm1603_vm5, %v2097_v28  ;;  %v1510_v52 = vshrl.u32 %v7003_v2, 16  ;;  %v7042_v36 = vsel %vm1429_vm4, %v1472_v23, %v1483_v15 }
 0x128   : > { %v7044_v29 = vrot.slane %v1502_v4, 7  ;;  %v828_v46 = vmax.f32 %v774_v40, 0.0  ;;  %v7048_v41 = vpack.c.bf16 %v831_v14, %v830_v31  ;;  %v829_v13 = vmax.f32 %v777_v42, 0.0  ;;  %v789_v18 = vpop.f32.mrf.mxu0 }
 0x129   : > { %v7051_v24 = vsel %vm2019_vm10, %v2048_v51, %v2049_v53  ;;  %v1518_v28 = vshrl.u32 %v6997_v60, 16  ;;  %v2051_v23 = vor.u32 %v2049_v53, %v1510_v52  ;;  %v2052_v15 = vrot.slane %v1521_v50, 1 }
 0x12a   : > { %9138 = vst [vmem:[#allocation47_spill] sm:$0xff] %v7048_v41  ;;  %9139 = vst [vmem:[#allocation48_spill] sm:$0xff] %v7051_v24  ;;  %v2098_v2 = vmul.bf16 %v7051_v24, %v6701_v6  ;;  %v7056_v4 = vpack.c.bf16 %v829_v13, %v828_v46  ;;  %v798_v56 = vadd.f32 %v5631_v9, %v6611_v3  ;;  %v9141_v31 = vshll.u32 %v6950_v34, 16  ;;  %v5632_v25 = vpop.f32.mrf.mxu0 }
 0x12b   : > { %v7060_v40 = vsel %vm1429_vm4, %v1480_v59, %v1491_v17  ;;  %v1537_v14 = vshll.u32 %v7048_v41, 16  ;;  %v790_v42 = vadd.f32 %v6611_v3, %v789_v18  ;;  %v7069_v53 = vsel %vm2019_vm10, %v2051_v23, %v2052_v15 }
 0x12c   : > { %9140 = vst [vmem:[#allocation49_spill] sm:$0xff] %v7056_v4  ;;  %v1499_v51 = vor.u32 %v9141_v31, %v7036_v37  ;;  %5729 = vmatprep.mubr.msk.bf16.mxu0 %vm1603_vm5, %v2098_v2  ;;  %9142 = vst [vmem:[#allocation50_spill] sm:$0xff] %v7069_v53  ;;  %v1512_v46 = vrot.slane %v1510_v52, 7  ;;  %v801_v9 = vadd.f32 %v5632_v25, %v6611_v3  ;;  %5662 = vmatmul.mubr.msk.bf16.gmra.mxu1 %vm1603_vm5, %v7056_v4  ;;  %v792_v31 = vpop.f32.mrf.mxu0 }
 0x12d   : > { %v2099_v59 = vmul.bf16 %v7069_v53, %v6705_v10  ;;  %v1529_v17 = vshll.u32 %v7056_v4, 16  ;;  %v1526_v13 = vshrl.u32 %v7056_v4, 16  ;;  %v1534_v18 = vshrl.u32 %v7048_v41, 16  ;;  %5665 = vmatprep.mubr.msk.bf16.mxu1 %vm1603_vm5, %v7048_v41 }
 0x12e   : > { %v2054_v2 = vor.u32 %v2052_v15, %v1518_v28  ;;  %v9143_v52 = vshll.u32 %v6938_v12, 16  ;;  %v1520_v23 = vrot.slane %v1518_v28, 7  ;;  %v834_v60 = vmax.f32 %v798_v56, 0.0 }
 0x12f   : > { %v835_v34 = vmax.f32 %v801_v9, 0.0  ;;  %v793_v10 = vadd.f32 %v6611_v3, %v792_v31  ;;  %v2055_v53 = vrot.slane %v1529_v17, 1  ;;  %v832_v6 = vmax.f32 %v790_v42, 0.0  ;;  %5730 = vmatmul.mubr.msk.bf16.gmra.mxu0 %vm1603_vm5, %v2099_v59  ;;  %v9156_v3 = vld [vmem:[#allocation32_spill] sm:$0xff] }
 0x130   : > { %v1507_v25 = vor.u32 %v9143_v52, %v7044_v29  ;;  %v2058_v4 = vrot.slane %v1537_v14, 1  ;;  %v1515_v24 = vor.u32 %v1513_v16, %v1512_v46  ;;  %v1528_v35 = vrot.slane %v1526_v13, 7 }
 0x131   : > { %v7086_v38 = vpack.c.bf16 %v835_v34, %v834_v60  ;;  %v833_v41 = vmax.f32 %v793_v10, 0.0  ;;  %v7089_v15 = vsel %vm2019_vm10, %v2054_v2, %v2055_v53  ;;  %v2057_v12 = vor.u32 %v2055_v53, %v1526_v13 }
 0x132   : > { %v2100_v56 = vmul.bf16 %v7089_v15, %v6745_v47  ;;  %v1523_v28 = vor.u32 %v1521_v50, %v1520_v23  ;;  %v1536_v9 = vrot.slane %v1534_v18, 7  ;;  %v7103_v10 = vsel %vm1429_vm4, %v6995_v26, %v1499_v51 }
 0x133   : > { %9144 = vst [vmem:[#allocation51_spill] sm:$0xff] %v7086_v38  ;;  %v2065_v42 = vshll.u32 %v7086_v38, 16  ;;  %v7096_v59 = vpack.c.bf16 %v833_v41, %v832_v6  ;;  %v7099_v34 = vsel %vm2019_vm10, %v2057_v12, %v2058_v4  ;;  %v2361_v60 = vshrl.u32 %v7086_v38, 16 }
 0x134   : > { %5733 = vmatprep.mubr.msk.bf16.mxu0 %vm1603_vm5, %v2100_v56  ;;  %v2101_v16 = vmul.bf16 %v7099_v34, %v6748_v48  ;;  %v1531_v50 = vor.u32 %v1529_v17, %v1528_v35  ;;  %v7117_v26 = vsel %vm1429_vm4, %v7036_v37, %v1507_v25  ;;  %v9145_v51 = vmul.bf16 0, %v6481_v0  ;;  %v9163_v37 = vld [vmem:[#allocation43_spill] sm:$0xff] }
 0x135   : > { %v2067_v6 = vrot.slane %v2065_v42, 1  ;;  %5666 = vmatmul.mubr.msk.bf16.gmra.mxu1 %vm1603_vm5, %v7096_v59  ;;  %v1545_v12 = vshll.u32 %v7096_v59, 16  ;;  %v1542_v41 = vshrl.u32 %v7096_v59, 16  ;;  %v2060_v17 = vor.u32 %v2058_v4, %v1534_v18 }
 0x136   : > { %5673 = vmatprep.mubr.msk.bf16.mxu1 %vm1603_vm5, %v9145_v51  ;;  %v7124_v13 = vsel %vm1429_vm4, %v7044_v29, %v1515_v24  ;;  %v7127_v31 = vsel %vm1429_vm4, %v1512_v46, %v1523_v28  ;;  %v1539_v2 = vor.u32 %v1537_v14, %v1536_v9  ;;  %v2363_v25 = vrot.slane %v2361_v60, 7  ;;  %v9159_v24 = vld [vmem:[#allocation14_spill] sm:$0xff] }
 0x137   : > { %v7129_v52 = vor.u32 %v2361_v60, %v2067_v6  ;;  %v2061_v56 = vrot.slane %v1545_v12, 1  ;;  %v1544_v53 = vrot.slane %v1542_v41, 7  ;;  %5734 = vmatmul.mubr.msk.bf16.gmra.mxu0 %vm1603_vm5, %v2101_v16  ;;  %v7135_v4 = vsel %vm1429_vm4, %v1520_v23, %v1531_v50  ;;  %v9157_v50 = vld [vmem:[#allocation12_spill] sm:$0xff]  ;;  %v9172_v29 = vld [vmem:[#allocation18_spill] sm:$0xff] }
 0x138   : > { %v1568_v60 = vmul.bf16 %v6976_v1, %v6475_v62  ;;  %v7151_v16 = vsel %vm1429_vm4, %v1528_v35, %v1539_v2  ;;  %v1569_v51 = vmul.bf16 %v6953_v32, %v6522_v20  ;;  %v7197_v35 = vld [vmem:[%s8895_s3 + $0x58] sm:$0xff]  }
 0x139   : > { %v7142_v14 = vsel %vm2019_vm10, %v2060_v17, %v2061_v56  ;;  %v2063_v46 = vor.u32 %v2061_v56, %v1542_v41  ;;  %v1547_v18 = vor.u32 %v1545_v12, %v1544_v53  ;;  %v6133_v41 = vld [vmem:[%s8895_s3 + $0x30] sm:$0xff]   ;;  %v1570_v56 = vmul.bf16 %v6844_v22, %v6570_v44 }
 0x13a   : > { %v2102_v23 = vmul.bf16 %v7142_v14, %v6889_v21 }
 0x13b   : > { %v7158_v12 = vsel %vm2019_vm10, %v2063_v46, %v2067_v6  ;;  %v7164_v17 = vsel %vm1429_vm4, %v1536_v9, %v1547_v18  ;;  %v1571_v6 = vmul.bf16 %v7008_v5, %v6573_v45  ;;  %v2364_v18 = vor.u32 %v2363_v25, %v2065_v42  ;;  %v9154_v46 = vld [vmem:[#allocation11_spill] sm:$0xff]  ;;  %v9168_v9 = vld [vmem:[#allocation20_spill] sm:$0xff] }
 0x13c   : > { %5737 = vmatprep.mubr.msk.bf16.mxu0 %vm1603_vm5, %v2102_v23  ;;  %v2103_v2 = vmul.bf16 %v7158_v12, %v6956_v43  ;;  %v9162_v23 = vld [vmem:[#allocation15_spill] sm:$0xff]  ;;  %v9165_v43 = vld [vmem:[#allocation46_spill] sm:$0xff]  ;;  %v7261_v45 = vsel %vm6734_vm1, %v7129_v52, 0  ;;  %v9174_v52 = vld [vmem:[#allocation28_spill] sm:$0xff]  ;;  %v1573_v42 = vmul.bf16 %v7019_v54, %v6621_v7  ;;  %vm4556_vm10 = vcmask 1043456  }
 0x13d   : > { %5674 = vmatmul.mubr.msk.bf16.vlgmr.msra.gmra.mxu1 %vm1603_vm5, %v1568_v60  ;;  %v3128_v60 = vsel %vm6946_vm11, %v2363_v25, 0  ;;  %v9169_v25 = vld [vmem:[#allocation50_spill] sm:$0xff] }
 0x13e   : > { %5742 = vmatpush3.bf16.msra.mxu1 %v6741_v39  ;;  %5677 = vmatprep.mubr.msk.bf16.mxu1 %vm1603_vm5, %v1569_v51  ;;  %v7200_v39 = vsel %vm1429_vm4, %v1544_v53, %v2364_v18  ;;  %v9152_v51 = vld [vmem:[#allocation41_spill] sm:$0xff]  ;;  %v9158_v53 = vld [vmem:[#allocation36_spill] sm:$0xff]  ;;  %v9175_v18 = vld [vmem:[#allocation23_spill] sm:$0xff] }
 0x13f   : > { %5743 = vmatprep.subr.bf16.mxu1 %v6133_v41  ;;  %9151 = vst [vmem:[#allocation38_spill] sm:$0xff] %v7200_v39  ;;  %v7203_v28 = vmul.bf16 %v3128_v60, %v9152_v51  ;;  %5738 = vmatmul.mubr.msk.bf16.gmra.mxu0 %vm1603_vm5, %v2103_v2  ;;  %v9160_v60 = vld [vmem:[#allocation42_spill] sm:$0xff]  ;;  %v9167_v39 = vld [vmem:[#allocation48_spill] sm:$0xff]  ;;  %v1574_v2 = vmul.bf16 %v7042_v36, %v6630_v11 }
 0x140   : > { %5781 = vmatprep.mubr.msk.bf16.mxu0 %vm1603_vm5, %v9161_v63  ;;  %v9166_v63 = vld [vmem:[#allocation17_spill] sm:$0xff] }
 0x141   : > { %9153 = vst [vmem:[#allocation41_spill] sm:$0xff] %v7203_v28  ;;  %v9173_v28 = vld [vmem:[#allocation24_spill] sm:$0xff] }
 0x142   : > { %5744 = vmatpush3.bf16.msra.mxu1 %v6133_v41  ;;  %v1572_v41 = vmul.bf16 %v7011_v55, %v6604_v61 }
 0x143   : > { %5813 = vmatprep.subr.bf16.mxu1 %v7197_v35 }
 0x145   : > { %5678 = vmatmul.mubr.msk.bf16.gmra.mxu1 %vm1603_vm5, %v1570_v56  ;;  %v6136_v56 = vld [vmem:[%s8895_s3 + $0x60] sm:$0xff]  }
 0x146   : > { %5681 = vmatprep.mubr.msk.bf16.mxu1 %vm1603_vm5, %v1571_v6  ;;  %v6139_v6 = vld [vmem:[%s8895_s3 + $0x88] sm:$0xff]  }
 0x147   : > { %5782 = vmatmul.mubr.msk.bf16.vlgmr.msra.gmra.mxu0 %vm1603_vm5, %v9172_v29 }
 0x148   : > { %5785 = vmatprep.mubr.msk.bf16.mxu0 %vm1603_vm5, %v9173_v28  ;;  %5850 = vmatpush3.bf16.msra.mxu0 %v9174_v52  ;;  %v9176_v52 = vld [vmem:[#allocation29_spill] sm:$0xff]  ;;  %v1575_v28 = vmul.bf16 %v7060_v40, %v6655_v33 }
 0x149   : > { %5851 = vmatprep.subr.bf16.mxu0 %v6136_v56 }
 0x14c   : > { %5852 = vmatpush3.bf16.msra.mxu0 %v6136_v56  ;;  %v9177_v56 = vld [vmem:[#allocation26_spill] sm:$0xff] }
 0x14d   : > { %5682 = vmatmul.mubr.msk.bf16.gmra.mxu1 %vm1603_vm5, %v1572_v41  ;;  %5921 = vmatprep.subr.bf16.mxu0 %v6139_v6  ;;  %v1576_v41 = vmul.bf16 %v7103_v10, %v6688_v57 }
 0x14e   : > { %5685 = vmatprep.mubr.msk.bf16.mxu1 %vm1603_vm5, %v1573_v42  ;;  %v9178_v42 = vld [vmem:[#allocation34_spill] sm:$0xff] }
 0x14f   : > { %5786 = vmatmul.mubr.msk.bf16.gmra.mxu0 %vm1603_vm5, %v9175_v18  ;;  %v9179_v18 = vld [vmem:[#allocation33_spill] sm:$0xff] }
 0x150   : > { %5789 = vmatprep.mubr.msk.bf16.mxu0 %vm1603_vm5, %v9176_v52  ;;  %v1577_v52 = vmul.bf16 %v7117_v26, %v6691_v58 }
 0x155   : > { %5686 = vmatmul.mubr.msk.bf16.gmra.mxu1 %vm1603_vm5, %v1574_v2  ;;  %v1578_v2 = vmul.bf16 %v7124_v13, %v6727_v30 }
 0x156   : > { %5689 = vmatprep.mubr.msk.bf16.mxu1 %vm1603_vm5, %v1575_v28  ;;  %v9180_v28 = vld [vmem:[#allocation39_spill] sm:$0xff] }
 0x157   : > { %5790 = vmatmul.mubr.msk.bf16.gmra.mxu0 %vm1603_vm5, %v9177_v56  ;;  %v9181_v56 = vld [vmem:[#allocation37_spill] sm:$0xff] }
 0x158   : > { %5793 = vmatprep.mubr.msk.bf16.mxu0 %vm1603_vm5, %v9178_v42  ;;  %v1579_v42 = vmul.bf16 %v7127_v31, %v6751_v49 }
 0x15d   : > { %5690 = vmatmul.mubr.msk.bf16.gmra.mxu1 %vm1603_vm5, %v1576_v41  ;;  %v1580_v41 = vmul.bf16 %v7135_v4, %v6872_v8 }
 0x15e   : > { %5693 = vmatprep.mubr.msk.bf16.mxu1 %vm1603_vm5, %v1577_v52  ;;  %v9182_v52 = vld [vmem:[#allocation45_spill] sm:$0xff] }
 0x15f   : > { %5794 = vmatmul.mubr.msk.bf16.gmra.mxu0 %vm1603_vm5, %v9179_v18  ;;  %v9183_v18 = vld [vmem:[#allocation44_spill] sm:$0xff] }
 0x160   : > { %5797 = vmatprep.mubr.msk.bf16.mxu0 %vm1603_vm5, %v9180_v28  ;;  %v1581_v28 = vmul.bf16 %v7151_v16, %v9156_v3 }
 0x165   : > { %5694 = vmatmul.mubr.msk.bf16.gmra.mxu1 %vm1603_vm5, %v1578_v2  ;;  %v1582_v2 = vmul.bf16 %v7164_v17, %v9152_v51 }
 0x166   : > { %5697 = vmatprep.mubr.msk.bf16.mxu1 %vm1603_vm5, %v1579_v42  ;;  %v9184_v42 = vld [vmem:[#allocation49_spill] sm:$0xff] }
 0x167   : > { %5798 = vmatmul.mubr.msk.bf16.gmra.mxu0 %vm1603_vm5, %v9181_v56  ;;  %v9185_v56 = vld [vmem:[#allocation47_spill] sm:$0xff] }
 0x168   : > { %5801 = vmatprep.mubr.msk.bf16.mxu0 %vm1603_vm5, %v9182_v52  ;;  %v2367_v52 = vmul.bf16 %v6976_v1, %v6481_v0  ;;  %v2369_v1 = vmul.bf16 %v6844_v22, %v6522_v20 }
 0x16d   : > { %5698 = vmatmul.mubr.msk.bf16.gmra.mxu1 %vm1603_vm5, %v1580_v41  ;;  %v6137_v41 = vld [vmem:[%s8895_s3 + $0x50] sm:$0xff]  }
 0x16e   : > { %5701 = vmatprep.mubr.msk.bf16.mxu1 %vm1603_vm5, %v1581_v28  ;;  %v2368_v28 = vmul.bf16 %v6953_v32, %v6475_v62 }
 0x16f   : > { %5802 = vmatmul.mubr.msk.bf16.gmra.mxu0 %vm1603_vm5, %v9183_v18 }
 0x170   : > { %5805 = vmatprep.mubr.msk.bf16.mxu0 %vm1603_vm5, %v9184_v42 }
 0x175   : > { %5702 = vmatmul.mubr.msk.bf16.gmra.mxu1 %vm1603_vm5, %v1582_v2  ;;  %v6138_v2 = vld [vmem:[%s8895_s3 + $0x78] sm:$0xff]  }
 0x176   : > { %5745 = vmatprep.mubr.msk.bf16.mxu1 %vm1603_vm5, %v2367_v52  ;;  %v3129_v52 = vmul.bf16 %v6953_v32, %v6481_v0  ;;  %v6140_v0 = vld [vmem:[%s8895_s3 + $0x80] sm:$0xff]   ;;  %v9187_v32 = vmul.bf16 %v6844_v22, %v6475_v62  ;;  %v9189_v62 = vmul.bf16 %v7011_v55, %v6570_v44  ;;  %v2374_v22 = vmul.bf16 %v7060_v40, %v6630_v11 }
 0x177   : > { %5806 = vmatmul.mubr.msk.bf16.gmra.mxu0 %vm1603_vm5, %v9185_v56 }
 0x178   : > { %5809 = vmatprep.mubr.msk.bf16.mxu0 %vm1603_vm5, %v7096_v59 }
 0x17d   : > { %5746 = vmatmul.mubr.msk.bf16.vlgmr.msra.gmra.mxu1 %vm1603_vm5, %v2368_v28  ;;  %v2370_v28 = vmul.bf16 %v7008_v5, %v6570_v44  ;;  %v9191_v44 = vmul.bf16 %v7042_v36, %v6604_v61 }
 0x17e   : > { %5814 = vmatpush3.bf16.msra.mxu1 %v7197_v35  ;;  %5749 = vmatprep.mubr.msk.bf16.mxu1 %vm1603_vm5, %v2369_v1  ;;  %v9186_v35 = vld [vmem:[#allocation13_spill] sm:$0xff] }
 0x17f   : > { %5815 = vmatprep.subr.bf16.mxu1 %v6137_v41  ;;  %5810 = vmatmul.mubr.msk.bf16.gmra.mxu0 %vm1603_vm5, %v7086_v38  ;;  %v2371_v1 = vmul.bf16 %v7011_v55, %v9186_v35  ;;  %v9192_v55 = vmul.bf16 %v7060_v40, %v6621_v7  ;;  %v2379_v40 = vmul.bf16 %v7135_v4, %v6751_v49 }
 0x180   : > { %5853 = vmatprep.mubr.msk.bf16.mxu0 %vm1603_vm5, %v3129_v52  ;;  %v2372_v52 = vmul.bf16 %v7019_v54, %v6604_v61  ;;  %v9193_v61 = vmul.bf16 %v7103_v10, %v6630_v11  ;;  %v9195_v11 = vmul.bf16 %v7124_v13, %v6688_v57 }
 0x182   : > { %5816 = vmatpush3.bf16.msra.mxu1 %v6137_v41  ;;  %v9188_v41 = vmul.bf16 %v7008_v5, %v6522_v20  ;;  %v9190_v20 = vmul.bf16 %v7019_v54, %v9186_v35  ;;  %v2375_v5 = vmul.bf16 %v7103_v10, %v6655_v33  ;;  %v2376_v54 = vmul.bf16 %v7117_v26, %v6688_v57  ;;  %v9201_v35 = vld [vmem:[#allocation25_spill] sm:$0xff] }
 0x183   : > { %5885 = vmatprep.subr.bf16.mxu1 %v6138_v2  ;;  %v2380_v10 = vmul.bf16 %v7151_v16, %v6872_v8  ;;  %v9197_v57 = vmul.bf16 %v7135_v4, %v6727_v30  ;;  %v6141_v4 = vld [vmem:[%s8895_s3 + $0x70] sm:$0xff]  }
 0x185   : > { %5750 = vmatmul.mubr.msk.bf16.gmra.mxu1 %vm1603_vm5, %v2370_v28  ;;  %v2373_v28 = vmul.bf16 %v7042_v36, %v6621_v7  ;;  %v9194_v7 = vmul.bf16 %v7117_v26, %v6655_v33  ;;  %v2378_v36 = vmul.bf16 %v7127_v31, %v6727_v30  ;;  %v9196_v33 = vmul.bf16 %v7127_v31, %v6691_v58 }
 0x186   : > { %5753 = vmatprep.mubr.msk.bf16.mxu1 %vm1603_vm5, %v2371_v1  ;;  %v2381_v26 = vmul.bf16 %v7164_v17, %v9156_v3  ;;  %v9202_v1 = vld [vmem:[#allocation7_spill] sm:$0xff]  ;;  %v9204_v30 = vmul.bf16 %v7164_v17, %v6872_v8  ;;  %v9209_v8 = vld [vmem:[#allocation30_spill] sm:$0xff]  ;;  %v9210_v17 = vld [vmem:[#allocation9_spill] sm:$0xff] }
 0x187   : > { %5854 = vmatmul.mubr.msk.bf16.vlgmr.msra.gmra.mxu0 %vm1603_vm5, %v9187_v32  ;;  %v9207_v32 = vld [vmem:[#allocation8_spill] sm:$0xff] }
 0x188   : > { %5857 = vmatprep.mubr.msk.bf16.mxu0 %vm1603_vm5, %v9188_v41  ;;  %5922 = vmatpush3.bf16.msra.mxu0 %v6139_v6  ;;  %v2377_v6 = vmul.bf16 %v7124_v13, %v6691_v58  ;;  %v9198_v58 = vmul.bf16 %v7151_v16, %v6751_v49  ;;  %v9199_v13 = vld [vmem:[#allocation38_spill] sm:$0xff] }
 0x189   : > { %5923 = vmatprep.subr.bf16.mxu0 %v6140_v0  ;;  %v9200_v31 = vmul.bf16 %v9199_v13, %v9152_v51  ;;  %v9205_v49 = vmul.bf16 %v9199_v13, %v9156_v3  ;;  %v9206_v51 = vld [vmem:[#allocation27_spill] sm:$0xff] }
 0x18a   : > { %v9208_v41 = vmul.bf16 %v9206_v51, %v9207_v32 }
 0x18c   : > { %5924 = vmatpush3.bf16.msra.mxu0 %v6140_v0  ;;  %v9203_v0 = vmul.bf16 %v9201_v35, %v9202_v1 }
 0x18d   : > { %5754 = vmatmul.mubr.msk.bf16.gmra.mxu1 %vm1603_vm5, %v2372_v52  ;;  %v9211_v52 = vmul.bf16 %v9209_v8, %v9210_v17 }
 0x18e   : > { %5757 = vmatprep.mubr.msk.bf16.mxu1 %vm1603_vm5, %v2373_v28  ;;  %v9212_v28 = vld [vmem:[#allocation41_spill] sm:$0xff] }
 0x18f   : > { %5858 = vmatmul.mubr.msk.bf16.gmra.mxu0 %vm1603_vm5, %v9189_v62  ;;  %v9213_v62 = vmul.bf16 %v9206_v51, %v9202_v1 }
 0x190   : > { %5861 = vmatprep.mubr.msk.bf16.mxu0 %vm1603_vm5, %v9190_v20 }
 0x195   : > { %5758 = vmatmul.mubr.msk.bf16.gmra.mxu1 %vm1603_vm5, %v2374_v22 }
 0x196   : > { %5761 = vmatprep.mubr.msk.bf16.mxu1 %vm1603_vm5, %v2375_v5  ;;  %v9214_v5 = vld [vmem:[#allocation31_spill] sm:$0xff] }
 0x197   : > { %5862 = vmatmul.mubr.msk.bf16.gmra.mxu0 %vm1603_vm5, %v9191_v44  ;;  %v9215_v44 = vld [vmem:[#allocation10_spill] sm:$0xff] }
 0x198   : > { %5865 = vmatprep.mubr.msk.bf16.mxu0 %vm1603_vm5, %v9192_v55  ;;  %v9216_v55 = vmul.bf16 %v9214_v5, %v9215_v44 }
 0x19d   : > { %5762 = vmatmul.mubr.msk.bf16.gmra.mxu1 %vm1603_vm5, %v2376_v54  ;;  %v9217_v54 = vld [vmem:[#allocation35_spill] sm:$0xff] }
 0x19e   : > { %5765 = vmatprep.mubr.msk.bf16.mxu1 %vm1603_vm5, %v2377_v6  ;;  %v9218_v6 = vmul.bf16 %v9217_v54, %v9154_v46 }
 0x19f   : > { %5866 = vmatmul.mubr.msk.bf16.gmra.mxu0 %vm1603_vm5, %v9193_v61 }
 0x1a0   : > { %5869 = vmatprep.mubr.msk.bf16.mxu0 %vm1603_vm5, %v9194_v7 }
 0x1a5   : > { %5766 = vmatmul.mubr.msk.bf16.gmra.mxu1 %vm1603_vm5, %v2378_v36  ;;  %v9219_v36 = vmul.bf16 %v9209_v8, %v9207_v32  ;;  %v9225_v8 = vmul.bf16 %v9163_v37, %v9162_v23 }
 0x1a6   : > { %5769 = vmatprep.mubr.msk.bf16.mxu1 %vm1603_vm5, %v2379_v40  ;;  %v9220_v40 = vmul.bf16 %v9214_v5, %v9210_v17 }
 0x1a7   : > { %5870 = vmatmul.mubr.msk.bf16.gmra.mxu0 %vm1603_vm5, %v9195_v11 }
 0x1a8   : > { %5873 = vmatprep.mubr.msk.bf16.mxu0 %vm1603_vm5, %v9196_v33 }
 0x1ad   : > { %5770 = vmatmul.mubr.msk.bf16.gmra.mxu1 %vm1603_vm5, %v2380_v10 }
 0x1ae   : > { %5773 = vmatprep.mubr.msk.bf16.mxu1 %vm1603_vm5, %v2381_v26 }
 0x1af   : > { %5874 = vmatmul.mubr.msk.bf16.gmra.mxu0 %vm1603_vm5, %v9197_v57 }
 0x1b0   : > { %5877 = vmatprep.mubr.msk.bf16.mxu0 %vm1603_vm5, %v9198_v58  ;;  %v9221_v58 = vmul.bf16 %v9158_v53, %v9157_v50 }
 0x1b5   : > { %5774 = vmatmul.mubr.msk.bf16.gmra.mxu1 %vm1603_vm5, %v9200_v31  ;;  %v9222_v31 = vmul.bf16 %v9160_v60, %v9159_v24 }
 0x1b6   : > { %5817 = vmatprep.mubr.msk.bf16.mxu1 %vm1603_vm5, %v9203_v0  ;;  %v9223_v0 = vmul.bf16 %v9217_v54, %v9215_v44 }
 0x1b7   : > { %5878 = vmatmul.mubr.msk.bf16.gmra.mxu0 %vm1603_vm5, %v9204_v30  ;;  %v9224_v30 = vmul.bf16 %v9158_v53, %v9154_v46  ;;  %v9226_v46 = vmul.bf16 %v9165_v43, %v9164_v19 }
 0x1b8   : > { %5881 = vmatprep.mubr.msk.bf16.mxu0 %vm1603_vm5, %v9205_v49 }
 0x1bb   : > { %v7463_v16 = vpop.f32.mrf.mxu1 }
 0x1bd   : > { %5818 = vmatmul.mubr.msk.bf16.vlgmr.msra.gmra.mxu1 %vm1603_vm5, %v9208_v41  ;;  %v7473_v3 = vpop.f32.mrf.mxu1 }
 0x1be   : > { %5886 = vmatpush3.bf16.msra.mxu1 %v6138_v2  ;;  %5821 = vmatprep.mubr.msk.bf16.mxu1 %vm1603_vm5, %v9211_v52 }
 0x1bf   : > { %5887 = vmatprep.subr.bf16.mxu1 %v6141_v4  ;;  %5882 = vmatmul.mubr.msk.bf16.gmra.mxu0 %vm1603_vm5, %v9212_v28  ;;  %v7481_v20 = vpop.f32.mrf.mxu1  ;;  %v9227_v28 = vmul.bf16 %v9160_v60, %v9157_v50  ;;  %v9229_v50 = vmul.bf16 %v9167_v39, %v9166_v63 }
 0x1c0   : > { %5925 = vmatprep.mubr.msk.bf16.mxu0 %vm1603_vm5, %v9213_v62  ;;  %v9228_v62 = vmul.bf16 %v9163_v37, %v9159_v24  ;;  %v9230_v37 = vmul.bf16 %v9169_v25, %v9168_v9 }
 0x1c1   : > { %v7483_v2 = vpop.f32.mrf.mxu1 }
 0x1c2   : > { %5888 = vmatpush3.bf16.msra.mxu1 %v6141_v4 }
 0x1c3   : > { %v7485_v22 = vpop.f32.mrf.mxu1 }
 0x1c4   : > { %v7497_v7 = vpop.f32.mrf.mxu0 }
 0x1c5   : > { %5822 = vmatmul.mubr.msk.bf16.gmra.mxu1 %vm1603_vm5, %v9216_v55  ;;  %v7495_v61 = vpop.f32.mrf.mxu1 }
 0x1c6   : > { %5825 = vmatprep.mubr.msk.bf16.mxu1 %vm1603_vm5, %v9218_v6  ;;  %v7509_v33 = vpop.f32.mrf.mxu0 }
 0x1c7   : > { %5926 = vmatmul.mubr.msk.bf16.vlgmr.msra.gmra.mxu0 %vm1603_vm5, %v9219_v36  ;;  %v7507_v11 = vpop.f32.mrf.mxu1 }
 0x1c8   : > { %5929 = vmatprep.mubr.msk.bf16.mxu0 %vm1603_vm5, %v9220_v40  ;;  %v7513_v26 = vpop.f32.mrf.mxu0  ;;  %v9231_v40 = vmul.bf16 %v9165_v43, %v9162_v23  ;;  %v9234_v43 = vmul.bf16 %v7089_v15, %v9170_v27 }
 0x1c9   : > { %v7511_v10 = vpop.f32.mrf.mxu1 }
 0x1ca   : > { %v7521_v13 = vpop.f32.mrf.mxu0 }
 0x1cb   : > { %v7515_v57 = vpop.f32.mrf.mxu1 }
 0x1cd   : > { %5826 = vmatmul.mubr.msk.bf16.gmra.mxu1 %vm1603_vm5, %v9221_v58  ;;  %v7527_v35 = vpop.f32.mrf.mxu1  ;;  %v7529_v1 = vpop.f32.mrf.mxu0  ;;  %v9232_v58 = vmul.bf16 %v9167_v39, %v9164_v19  ;;  %v9235_v19 = vmul.bf16 %v7099_v34, %v6745_v47 }
 0x1ce   : > { %5829 = vmatprep.mubr.msk.bf16.mxu1 %vm1603_vm5, %v9222_v31 }
 0x1cf   : > { %5930 = vmatmul.mubr.msk.bf16.gmra.mxu0 %vm1603_vm5, %v9223_v0  ;;  %v7539_v49 = vpop.f32.mrf.mxu1  ;;  %v7541_v4 = vpop.f32.mrf.mxu0 }
 0x1d0   : > { %5933 = vmatprep.mubr.msk.bf16.mxu0 %vm1603_vm5, %v9224_v30 }
 0x1d1   : > { %v7543_v51 = vpop.f32.mrf.mxu1  ;;  %v7545_v32 = vpop.f32.mrf.mxu0 }
 0x1d3   : > { %v7547_v41 = vpop.f32.mrf.mxu1  ;;  %v7553_v17 = vpop.f32.mrf.mxu0 }
 0x1d5   : > { %5830 = vmatmul.mubr.msk.bf16.gmra.mxu1 %vm1603_vm5, %v9225_v8  ;;  %v7559_v53 = vpop.f32.mrf.mxu1  ;;  %v7561_v52 = vpop.f32.mrf.mxu0 }
 0x1d6   : > { %5833 = vmatprep.mubr.msk.bf16.mxu1 %vm1603_vm5, %v9226_v46 }
 0x1d7   : > { %5934 = vmatmul.mubr.msk.bf16.gmra.mxu0 %vm1603_vm5, %v9227_v28  ;;  %v7571_v5 = vpop.f32.mrf.mxu1  ;;  %v7573_v44 = vpop.f32.mrf.mxu0 }
 0x1d8   : > { %5937 = vmatprep.mubr.msk.bf16.mxu0 %vm1603_vm5, %v9228_v62  ;;  %v9236_v62 = vmul.bf16 %v9169_v25, %v9166_v63  ;;  %v9240_v25 = vmul.bf16 %v7142_v14, %v6748_v48 }
 0x1d9   : > { %v7575_v55 = vpop.f32.mrf.mxu1  ;;  %v7577_v54 = vpop.f32.mrf.mxu0 }
 0x1db   : > { %v7579_v6 = vpop.f32.mrf.mxu1  ;;  %v7585_v60 = vpop.f32.mrf.mxu0 }
 0x1dd   : > { %5834 = vmatmul.mubr.msk.bf16.gmra.mxu1 %vm1603_vm5, %v9229_v50  ;;  %v7591_v24 = vpop.f32.mrf.mxu1  ;;  %v9237_v50 = vmul.bf16 %v7089_v15, %v9168_v9  ;;  %v9242_v15 = vmul.bf16 %v7158_v12, %v6889_v21 }
 0x1de   : > { %5837 = vmatprep.mubr.msk.bf16.mxu1 %vm1603_vm5, %v9230_v37  ;;  %v7593_v36 = vpop.f32.mrf.mxu0 }
 0x1df   : > { %5938 = vmatmul.mubr.msk.bf16.gmra.mxu0 %vm1603_vm5, %v9231_v40  ;;  %v7603_v31 = vpop.f32.mrf.mxu1 }
 0x1e0   : > { %5941 = vmatprep.mubr.msk.bf16.mxu0 %vm1603_vm5, %v9232_v58  ;;  %v7605_v0 = vpop.f32.mrf.mxu0 }
 0x1e1   : > { %v7607_v30 = vpop.f32.mrf.mxu1 }
 0x1e2   : > { %9233 = vst [vmem:[#allocation11_spill] sm:$0xff] %v7607_v30  ;;  %v7609_v8 = vpop.f32.mrf.mxu0  ;;  %v9245_v30 = vmul.bf16 %v7142_v14, %v6745_v47  ;;  %v9251_v14 = vmul.bf16 %v7158_v12, %v6748_v48  ;;  %v9255_v48 = vld [vmem:[#allocation24_spill] sm:$0xff] }
 0x1e3   : > { %v7611_v46 = vpop.f32.mrf.mxu1 }
 0x1e4   : > { %v7617_v23 = vpop.f32.mrf.mxu0 }
 0x1e5   : > { %5838 = vmatmul.mubr.msk.bf16.gmra.mxu1 %vm1603_vm5, %v9234_v43  ;;  %v7623_v39 = vpop.f32.mrf.mxu1 }
 0x1e6   : > { %5841 = vmatprep.mubr.msk.bf16.mxu1 %vm1603_vm5, %v9235_v19 }
 0x1e7   : > { %v7625_v28 = vpop.f32.mrf.mxu0  ;;  %5942 = vmatmul.mubr.msk.bf16.gmra.mxu0 %vm1603_vm5, %v9236_v62  ;;  %v7635_v37 = vpop.f32.mrf.mxu1 }
 0x1e8   : > { %5945 = vmatprep.mubr.msk.bf16.mxu0 %vm1603_vm5, %v9237_v50  ;;  %v9244_v50 = vmul.bf16 %v7099_v34, %v9170_v27 }
 0x1e9   : > { %v7637_v40 = vpop.f32.mrf.mxu0  ;;  %v7639_v58 = vpop.f32.mrf.mxu1 }
 0x1ea   : > { %9238 = vst [vmem:[#allocation32_spill] sm:$0xff] %v7639_v58 }
 0x1eb   : > { %v7641_v43 = vpop.f32.mrf.mxu0 }
 0x1ec   : > { %v7643_v19 = vpop.f32.mrf.mxu1 }
 0x1ed   : > { %9239 = vst [vmem:[#allocation12_spill] sm:$0xff] %v7643_v19  ;;  %5842 = vmatmul.mubr.msk.bf16.gmra.mxu1 %vm1603_vm5, %v9240_v25  ;;  %v7649_v63 = vpop.f32.mrf.mxu0 }
 0x1ee   : > { %9241 = vst [vmem:[#allocation36_spill] sm:$0xff] %v7649_v63  ;;  %5845 = vmatprep.mubr.msk.bf16.mxu1 %vm1603_vm5, %v9242_v15  ;;  %v7655_v9 = vpop.f32.mrf.mxu1  ;;  %v9247_v15 = vld [vmem:[#allocation40_spill] sm:$0xff] }
 0x1ef   : > { %9243 = vst [vmem:[#allocation14_spill] sm:$0xff] %v7655_v9  ;;  %v7657_v62 = vpop.f32.mrf.mxu0  ;;  %5946 = vmatmul.mubr.msk.bf16.gmra.mxu0 %vm1603_vm5, %v9244_v50  ;;  %v2869_v9 = vmul.bf16 %v7261_v45, %v9247_v15 }
 0x1f0   : > { %5949 = vmatprep.mubr.msk.bf16.mxu0 %vm1603_vm5, %v9245_v30  ;;  %v7667_v25 = vpop.f32.mrf.mxu1  ;;  %v9252_v30 = vmul.bf16 %v7261_v45, %v6889_v21  ;;  %v9257_v21 = vld [vmem:[#allocation23_spill] sm:$0xff] }
 0x1f1   : > { %v7669_v63 = vpop.f32.mrf.mxu0 }
 0x1f2   : > { %v7671_v58 = vpop.f32.mrf.mxu1 }
 0x1f3   : > { %9246 = vst [vmem:[#allocation42_spill] sm:$0xff] %v7671_v58  ;;  %v7675_v38 = vpop.f32.mrf.mxu0 }
 0x1f5   : > { %v7677_v19 = vpop.f32.mrf.mxu1  ;;  %5846 = vmatmul.mubr.msk.bf16.gmra.mxu1 %vm1603_vm5, %v2869_v9  ;;  %v7680_v27 = vpop.f32.mrf.mxu0 }
 0x1f6   : > { %9248 = vst [vmem:[#allocation19_spill] sm:$0xff] %v7677_v19  ;;  %9249 = vst [vmem:[#allocation15_spill] sm:$0xff] %v7680_v27  ;;  %5889 = vmatprep.mubr.msk.bf16.mxu1 %vm1603_vm5, %v9172_v29  ;;  %v3626_v27 = vmul.bf16 0, %v9247_v15  ;;  %v6160_v19 = vld [vmem:[%s6376_s21] sm:$0xff]  }
 0x1f7   : > { %v7684_v47 = vpop.f32.mrf.mxu1  ;;  %v7686_v34 = vpop.f32.mrf.mxu0  ;;  %5950 = vmatmul.mubr.msk.bf16.gmra.mxu0 %vm1603_vm5, %v9251_v14 }
 0x1f8   : > { %9250 = vst [vmem:[#allocation43_spill] sm:$0xff] %v7684_v47  ;;  %5953 = vmatprep.mubr.msk.bf16.mxu0 %vm1603_vm5, %v9252_v30 }
 0x1f9   : > { %v7696_v9 = vpop.f32.mrf.mxu1  ;;  %v7698_v50 = vpop.f32.mrf.mxu0 }
 0x1fa   : > { %9253 = vst [vmem:[#allocation16_spill] sm:$0xff] %v7696_v9 }
 0x1fb   : > { %v7700_v29 = vpop.f32.mrf.mxu1  ;;  %v7702_v58 = vpop.f32.mrf.mxu0 }
 0x1fc   : > { %9254 = vst [vmem:[#allocation46_spill] sm:$0xff] %v7700_v29 }
 0x1fd   : > { %v5675_v47 = vpop.f32.mrf.mxu1  ;;  %5890 = vmatmul.mubr.msk.bf16.vlgmr.msra.gmra.mxu1 %vm1603_vm5, %v9255_v48  ;;  %v7707_v12 = vpop.f32.mrf.mxu0 }
 0x1fe   : > { %9256 = vst [vmem:[#allocation17_spill] sm:$0xff] %v7707_v12  ;;  %v1901_v45 = vadd.f32 %v5675_v47, %v7463_v16  ;;  %5893 = vmatprep.mubr.msk.bf16.mxu1 %vm1603_vm5, %v9257_v21 }
 0x1ff   : > { %v1892_v14 = vpop.f32.mrf.mxu1  ;;  %v7712_v30 = vpop.f32.mrf.mxu0  ;;  %5954 = vmatmul.mubr.msk.bf16.gmra.mxu0 %vm1603_vm5, %v3626_v27 }
 0x200   : > { %v1893_v29 = vadd.f32 %v1892_v14, %v7473_v3  ;;  %v7717_v15 = vadd.f32 %v7497_v7, %v1901_v45  ;;  %6001 = vmatprep.mubr.msk.bf16.mxu0 %vm594_vm0, %v6160_v19  ;;  %v9258_v45 = vld [vmem:[#allocation29_spill] sm:$0xff] }
 0x201   : > { %v5676_v9 = vpop.f32.mrf.mxu1  ;;  %v7721_v48 = vpop.f32.mrf.mxu0 }
 0x202   : > { %v1904_v16 = vadd.f32 %v5676_v9, %v7481_v20  ;;  %v7725_v47 = vadd.f32 %v7509_v33, %v1893_v29  ;;  %v9259_v20 = vld [vmem:[#allocation26_spill] sm:$0xff] }
 0x203   : > { %v1895_v21 = vpop.f32.mrf.mxu1  ;;  %v7727_v12 = vpop.f32.mrf.mxu0 }
 0x204   : > { %v1896_v3 = vadd.f32 %v1895_v21, %v7483_v2  ;;  %v7731_v27 = vadd.f32 %v7513_v26, %v1904_v16 }
 0x205   : > { %v5679_v7 = vpop.f32.mrf.mxu1  ;;  %5894 = vmatmul.mubr.msk.bf16.gmra.mxu1 %vm1603_vm5, %v9258_v45  ;;  %v7735_v19 = vpop.f32.mrf.mxu0 }
 0x206   : > { %v1917_v14 = vadd.f32 %v5679_v7, %v7485_v22  ;;  %5897 = vmatprep.mubr.msk.bf16.mxu1 %vm1603_vm5, %v9259_v20  ;;  %v7741_v33 = vadd.f32 %v7521_v13, %v1896_v3 }
 0x207   : > { %v1908_v9 = vpop.f32.mrf.mxu1  ;;  %v7743_v29 = vpop.f32.mrf.mxu0 }
 0x208   : > { %v1909_v2 = vadd.f32 %v1908_v9, %v7495_v61  ;;  %v7747_v26 = vadd.f32 %v7529_v1, %v1917_v14  ;;  %v9260_v9 = vld [vmem:[#allocation34_spill] sm:$0xff] }
 0x209   : > { %v5680_v16 = vpop.f32.mrf.mxu1  ;;  %v7749_v21 = vpop.f32.mrf.mxu0 }
 0x20a   : > { %v1920_v45 = vadd.f32 %v5680_v16, %v7507_v11  ;;  %v7753_v22 = vadd.f32 %v7541_v4, %v1909_v2  ;;  %v9262_v11 = vld [vmem:[#allocation33_spill] sm:$0xff] }
 0x20b   : > { %v1911_v7 = vpop.f32.mrf.mxu1  ;;  %v7755_v20 = vpop.f32.mrf.mxu0 }
 0x20c   : > { %v1912_v13 = vadd.f32 %v1911_v7, %v7511_v10  ;;  %v7759_v3 = vadd.f32 %v7545_v32, %v1920_v45  ;;  %v6142_v45 = vld [vmem:[%s8897_s5 + $0x8] sm:$0xff]  }
 0x20d   : > { %v5683_v61 = vpop.f32.mrf.mxu1  ;;  %5898 = vmatmul.mubr.msk.bf16.gmra.mxu1 %vm1603_vm5, %v9260_v9  ;;  %v7763_v1 = vpop.f32.mrf.mxu0  ;;  %5957 = vmatprep.subr.bf16.mxu1 %v6142_v45 }
 0x20e   : > { %9261 = vst [vmem:[#allocation48_spill] sm:$0xff] %v7763_v1  ;;  %v1933_v14 = vadd.f32 %v5683_v61, %v7515_v57  ;;  %5901 = vmatprep.mubr.msk.bf16.mxu1 %vm1603_vm5, %v9262_v11  ;;  %v7769_v4 = vadd.f32 %v7553_v17, %v1912_v13  ;;  %5958 = vmatpush3.bf16.msra.mxu1 %v6142_v45  ;;  %v9264_v11 = vld [vmem:[#allocation39_spill] sm:$0xff] }
 0x20f   : > { %v1924_v2 = vpop.f32.mrf.mxu1  ;;  %v7771_v16 = vpop.f32.mrf.mxu0 }
 0x210   : > { %9263 = vst [vmem:[#allocation20_spill] sm:$0xff] %v7769_v4  ;;  %v1925_v10 = vadd.f32 %v1924_v2, %v7527_v35  ;;  %v7775_v32 = vadd.f32 %v7561_v52, %v1933_v14 }
 0x211   : > { %v5684_v7 = vpop.f32.mrf.mxu1  ;;  %v7780_v57 = vpop.f32.mrf.mxu0 }
 0x212   : > { %v1936_v61 = vadd.f32 %v5684_v7, %v7539_v49  ;;  %v7784_v17 = vadd.f32 %v7573_v44, %v1925_v10  ;;  %v9266_v44 = vld [vmem:[#allocation37_spill] sm:$0xff] }
 0x213   : > { %v1927_v13 = vpop.f32.mrf.mxu1  ;;  %v7786_v9 = vpop.f32.mrf.mxu0 }
 0x214   : > { %v1928_v35 = vadd.f32 %v1927_v13, %v7543_v51  ;;  %v7790_v52 = vadd.f32 %v7577_v54, %v1936_v61 }
 0x215   : > { %v5687_v14 = vpop.f32.mrf.mxu1  ;;  %5902 = vmatmul.mubr.msk.bf16.gmra.mxu1 %vm1603_vm5, %v9264_v11  ;;  %v7794_v2 = vpop.f32.mrf.mxu0 }
 0x216   : > { %9265 = vst [vmem:[#allocation50_spill] sm:$0xff] %v7794_v2  ;;  %v1949_v49 = vadd.f32 %v5687_v14, %v7547_v41  ;;  %5905 = vmatprep.mubr.msk.bf16.mxu1 %vm1603_vm5, %v9266_v44  ;;  %v7800_v10 = vadd.f32 %v7585_v60, %v1928_v35 }
 0x217   : > { %v1940_v45 = vpop.f32.mrf.mxu1  ;;  %v7802_v7 = vpop.f32.mrf.mxu0 }
 0x218   : > { %9267 = vst [vmem:[#allocation21_spill] sm:$0xff] %v7800_v10  ;;  %v1941_v51 = vadd.f32 %v1940_v45, %v7559_v53  ;;  %v7806_v54 = vadd.f32 %v7593_v36, %v1949_v49  ;;  %v9268_v45 = vld [vmem:[#allocation45_spill] sm:$0xff] }
 0x219   : > { %v5688_v61 = vpop.f32.mrf.mxu1  ;;  %v7808_v13 = vpop.f32.mrf.mxu0 }
 0x21a   : > { %v1952_v11 = vadd.f32 %v5688_v61, %v7571_v5  ;;  %v7812_v41 = vadd.f32 %v7605_v0, %v1941_v51 }
 0x21b   : > { %v1943_v14 = vpop.f32.mrf.mxu1  ;;  %v7814_v44 = vpop.f32.mrf.mxu0 }
 0x21c   : > { %v1944_v60 = vadd.f32 %v1943_v14, %v7575_v55  ;;  %v7818_v35 = vadd.f32 %v7609_v8, %v1952_v11 }
 0x21d   : > { %v5691_v53 = vpop.f32.mrf.mxu1  ;;  %5906 = vmatmul.mubr.msk.bf16.gmra.mxu1 %vm1603_vm5, %v9268_v45  ;;  %v7822_v36 = vpop.f32.mrf.mxu0 }
 0x21e   : > { %9269 = vst [vmem:[#allocation22_spill] sm:$0xff] %v7822_v36  ;;  %v1965_v49 = vadd.f32 %v5691_v53, %v7579_v6  ;;  %5909 = vmatprep.mubr.msk.bf16.mxu1 %vm1603_vm5, %v9183_v18  ;;  %v7828_v5 = vadd.f32 %v7617_v23, %v1944_v60 }
 0x21f   : > { %v1956_v0 = vpop.f32.mrf.mxu1  ;;  %v7830_v51 = vpop.f32.mrf.mxu0 }
 0x220   : > { %9270 = vst [vmem:[#allocation18_spill] sm:$0xff] %v7828_v5  ;;  %v1957_v55 = vadd.f32 %v1956_v0, %v7591_v24  ;;  %v7834_v8 = vadd.f32 %v7625_v28, %v1965_v49 }
 0x221   : > { %v5692_v61 = vpop.f32.mrf.mxu1  ;;  %v7836_v11 = vpop.f32.mrf.mxu0 }
 0x222   : > { %v1968_v14 = vadd.f32 %v5692_v61, %v7603_v31  ;;  %v7840_v6 = vadd.f32 %v7637_v40, %v1957_v55 }
 0x223   : > { %v7842_v18 = vpop.f32.mrf.mxu1  ;;  %v7844_v23 = vpop.f32.mrf.mxu0 }
 0x224   : > { %9271 = vst [vmem:[#allocation28_spill] sm:$0xff] %v7842_v18  ;;  %v7847_v60 = vadd.f32 %v7641_v43, %v1968_v14 }
 0x225   : > { %v5695_v53 = vpop.f32.mrf.mxu1  ;;  %5910 = vmatmul.mubr.msk.bf16.gmra.mxu1 %vm1603_vm5, %v9184_v42  ;;  %v7851_v24 = vpop.f32.mrf.mxu0 }
 0x226   : > { %9272 = vst [vmem:[#allocation44_spill] sm:$0xff] %v7851_v24  ;;  %v1981_v28 = vadd.f32 %v5695_v53, %v7611_v46  ;;  %5913 = vmatprep.mubr.msk.bf16.mxu1 %vm1603_vm5, %v9185_v56  ;;  %v9278_v24 = vld [vmem:[#allocation19_spill] sm:$0xff] }
 0x227   : > { %v1972_v31 = vpop.f32.mrf.mxu1  ;;  %v7856_v40 = vpop.f32.mrf.mxu0 }
 0x228   : > { %v1973_v45 = vadd.f32 %v1972_v31, %v7623_v39  ;;  %v7860_v49 = vadd.f32 %v7657_v62, %v1981_v28  ;;  %v9274_v62 = vld [vmem:[#allocation12_spill] sm:$0xff]  ;;  %v9275_v28 = vld [vmem:[#allocation51_spill] sm:$0xff]  ;;  %v9276_v31 = vld [vmem:[#allocation14_spill] sm:$0xff] }
 0x229   : > { %v5696_v43 = vpop.f32.mrf.mxu1  ;;  %v7862_v0 = vpop.f32.mrf.mxu0 }
 0x22a   : > { %v1984_v42 = vadd.f32 %v5696_v43, %v7635_v37  ;;  %v7866_v55 = vadd.f32 %v7669_v63, %v1973_v45 }
 0x22b   : > { %v7868_v46 = vpop.f32.mrf.mxu1  ;;  %v7870_v61 = vpop.f32.mrf.mxu0 }
 0x22c   : > { %v7873_v56 = vadd.f32 %v7675_v38, %v1984_v42  ;;  %v6143_v38 = vld [vmem:[%s8897_s5] sm:$0xff]  }
 0x22d   : > { %v5699_v14 = vpop.f32.mrf.mxu1  ;;  %5914 = vmatmul.mubr.msk.bf16.gmra.mxu1 %vm1603_vm5, %v7096_v59  ;;  %v7877_v39 = vpop.f32.mrf.mxu0  ;;  %5959 = vmatprep.subr.bf16.mxu1 %v6143_v38 }
 0x22e   : > { %9273 = vst [vmem:[#allocation49_spill] sm:$0xff] %v7877_v39  ;;  %v1997_v53 = vadd.f32 %v5699_v14, %v9274_v62  ;;  %5917 = vmatprep.mubr.msk.bf16.mxu1 %vm1603_vm5, %v9275_v28  ;;  %5960 = vmatpush3.bf16.msra.mxu1 %v6143_v38 }
 0x22f   : > { %v1988_v37 = vpop.f32.mrf.mxu1  ;;  %v7882_v63 = vpop.f32.mrf.mxu0 }
 0x230   : > { %v1989_v45 = vadd.f32 %v1988_v37, %v9276_v31  ;;  %v7886_v43 = vadd.f32 %v7686_v34, %v1997_v53  ;;  %v9277_v31 = vmov 0  }
 0x231   : > { %v5700_v59 = vpop.f32.mrf.mxu1  ;;  %v7891_v42 = vpop.f32.mrf.mxu0 }
 0x232   : > { %v2000_v14 = vadd.f32 %v5700_v59, %v7667_v25  ;;  %v7895_v62 = vadd.f32 %v7698_v50, %v1989_v45  ;;  %v9279_v50 = vld [vmem:[#allocation43_spill] sm:$0xff] }
 0x233   : > { %v7897_v28 = vpop.f32.mrf.mxu1  ;;  %v7899_v37 = vpop.f32.mrf.mxu0 }
 0x234   : > { %v7902_v34 = vadd.f32 %v7702_v58, %v2000_v14  ;;  %v9280_v58 = vld [vmem:[#allocation16_spill] sm:$0xff] }
 0x235   : > { %v5703_v53 = vpop.f32.mrf.mxu1  ;;  %5918 = vmatmul.mubr.bf16.gmra.mxu1 %v9277_v31  ;;  %v7905_v39 = vpop.f32.mrf.mxu0 }
 0x236   : > { %v2013_v18 = vadd.f32 %v5703_v53, %v9278_v24 }
 0x237   : > { %v2004_v25 = vpop.f32.mrf.mxu1  ;;  %v7908_v59 = vpop.f32.mrf.mxu0 }
 0x238   : > { %v2005_v45 = vadd.f32 %v2004_v25, %v9279_v50  ;;  %v7912_v5 = vadd.f32 %v7712_v30, %v2013_v18 }
 0x239   : > { %v5704_v38 = vpop.f32.mrf.mxu1  ;;  %v7914_v36 = vpop.f32.mrf.mxu0 }
 0x23a   : > { %v2016_v14 = vadd.f32 %v5704_v38, %v9280_v58  ;;  %v7918_v10 = vadd.f32 %v7721_v48, %v2005_v45 }
 0x23b   : > { %v7920_v31 = vpop.f32.mrf.mxu1  ;;  %v7922_v2 = vpop.f32.mrf.mxu0 }
 0x23c   : > { %v7925_v24 = vadd.f32 %v7727_v12, %v2016_v14 }
 0x23d   : > { %v5747_v53 = vpop.f32.mrf.mxu1  ;;  %v7927_v25 = vpop.f32.mrf.mxu0 }
 0x23e   : > { %v2610_v30 = vadd.f32 %v5747_v53, %v7717_v15 }
 0x23f   : > { %v2481_v18 = vpop.f32.mrf.mxu1  ;;  %v7930_v50 = vpop.f32.mrf.mxu0 }
 0x240   : > { %v2608_v38 = vadd.f32 %v2481_v18, %v7725_v47  ;;  %v7934_v48 = vadd.f32 %v7743_v29, %v2610_v30 }
 0x241   : > { %v5748_v45 = vpop.f32.mrf.mxu1  ;;  %v7936_v58 = vpop.f32.mrf.mxu0 }
 0x242   : > { %v2611_v4 = vadd.f32 %v5748_v45, %v7731_v27  ;;  %v7940_v12 = vadd.f32 %v7749_v21, %v2608_v38 }
 0x243   : > { %v7942_v14 = vpop.f32.mrf.mxu1  ;;  %v7944_v1 = vpop.f32.mrf.mxu0 }
 0x244   : > { %9281 = vst [vmem:[#allocation47_spill] sm:$0xff] %v7942_v14  ;;  %v7947_v15 = vadd.f32 %v7755_v20, %v2611_v4 }
 0x245   : > { %v5751_v53 = vpop.f32.mrf.mxu1  ;;  %v7949_v47 = vpop.f32.mrf.mxu0 }
 0x246   : > { %9282 = vst [vmem:[#allocation13_spill] sm:$0xff] %v7947_v15  ;;  %v2614_v29 = vadd.f32 %v5751_v53, %v7747_v26 }
 0x247   : > { %v2497_v30 = vpop.f32.mrf.mxu1  ;;  %v7952_v18 = vpop.f32.mrf.mxu0 }
 0x248   : > { %v2612_v27 = vadd.f32 %v2497_v30, %v7753_v22  ;;  %v7956_v21 = vadd.f32 %v7771_v16, %v2614_v29 }
 0x249   : > { %v5752_v38 = vpop.f32.mrf.mxu1  ;;  %v7958_v45 = vpop.f32.mrf.mxu0 }
 0x24a   : > { %v2615_v14 = vadd.f32 %v5752_v38, %v7759_v3  ;;  %v7962_v20 = vadd.f32 %v7780_v57, %v2612_v27 }
 0x24b   : > { %v7964_v4 = vpop.f32.mrf.mxu1  ;;  %v7966_v15 = vpop.f32.mrf.mxu0 }
 0x24c   : > { %9283 = vst [vmem:[#allocation38_spill] sm:$0xff] %v7966_v15  ;;  %v7969_v26 = vadd.f32 %v7786_v9, %v2615_v14 }
 0x24d   : > { %v5755_v53 = vpop.f32.mrf.mxu1  ;;  %v7971_v22 = vpop.f32.mrf.mxu0 }
 0x24e   : > { %9284 = vst [vmem:[#allocation25_spill] sm:$0xff] %v7969_v26  ;;  %9285 = vst [vmem:[#allocation7_spill] sm:$0xff] %v7971_v22  ;;  %v2618_v16 = vadd.f32 %v5755_v53, %v7775_v32 }
 0x24f   : > { %v2513_v29 = vpop.f32.mrf.mxu1  ;;  %v7974_v30 = vpop.f32.mrf.mxu0 }
 0x250   : > { %v2616_v3 = vadd.f32 %v2513_v29, %v7784_v17  ;;  %v7978_v57 = vadd.f32 %v7802_v7, %v2618_v16 }
 0x251   : > { %v5756_v27 = vpop.f32.mrf.mxu1  ;;  %v7980_v38 = vpop.f32.mrf.mxu0 }
 0x252   : > { %v2619_v15 = vadd.f32 %v5756_v27, %v7790_v52  ;;  %v7984_v9 = vadd.f32 %v7808_v13, %v2616_v3 }
 0x253   : > { %v7986_v14 = vpop.f32.mrf.mxu1  ;;  %v7988_v26 = vpop.f32.mrf.mxu0 }
 0x254   : > { %9286 = vst [vmem:[#allocation27_spill] sm:$0xff] %v7986_v14  ;;  %9287 = vst [vmem:[#allocation8_spill] sm:$0xff] %v7988_v26  ;;  %v7991_v32 = vadd.f32 %v7814_v44, %v2619_v15 }
 0x255   : > { %v5759_v53 = vpop.f32.mrf.mxu1  ;;  %v7993_v17 = vpop.f32.mrf.mxu0 }
 0x256   : > { %9288 = vst [vmem:[#allocation30_spill] sm:$0xff] %v7993_v17  ;;  %v2622_v7 = vadd.f32 %v5759_v53, %v7806_v54 }
 0x257   : > { %v2529_v16 = vpop.f32.mrf.mxu1  ;;  %v7996_v29 = vpop.f32.mrf.mxu0 }
 0x258   : > { %v2620_v52 = vadd.f32 %v2529_v16, %v7812_v41  ;;  %v8000_v13 = vadd.f32 %v7830_v51, %v2622_v7 }
 0x259   : > { %v5760_v3 = vpop.f32.mrf.mxu1  ;;  %v8002_v27 = vpop.f32.mrf.mxu0 }
 0x25a   : > { %v2623_v26 = vadd.f32 %v5760_v3, %v7818_v35  ;;  %v8006_v44 = vadd.f32 %v7836_v11, %v2620_v52 }
 0x25b   : > { %v8008_v15 = vpop.f32.mrf.mxu1  ;;  %v8010_v17 = vpop.f32.mrf.mxu0 }
 0x25c   : > { %9289 = vst [vmem:[#allocation9_spill] sm:$0xff] %v8008_v15  ;;  %v8013_v54 = vadd.f32 %v7844_v23, %v2623_v26 }
 0x25d   : > { %v5763_v53 = vpop.f32.mrf.mxu1  ;;  %v8015_v41 = vpop.f32.mrf.mxu0 }
 0x25e   : > { %9290 = vst [vmem:[#allocation41_spill] sm:$0xff] %v8015_v41  ;;  %v2626_v51 = vadd.f32 %v5763_v53, %v7834_v8 }
 0x25f   : > { %v2545_v7 = vpop.f32.mrf.mxu1  ;;  %v8018_v16 = vpop.f32.mrf.mxu0 }
 0x260   : > { %v2624_v35 = vadd.f32 %v2545_v7, %v7840_v6  ;;  %v8022_v11 = vadd.f32 %v7856_v40, %v2626_v51  ;;  %v9292_v6 = vld [vmem:[#allocation32_spill] sm:$0xff] }
 0x261   : > { %v5764_v52 = vpop.f32.mrf.mxu1  ;;  %v8024_v3 = vpop.f32.mrf.mxu0  ;;  %v1976_v40 = vadd.f32 %v7868_v46, %v9292_v6 }
 0x262   : > { %v2627_v15 = vadd.f32 %v5764_v52, %v7847_v60  ;;  %v8028_v23 = vadd.f32 %v7862_v0, %v2624_v35 }
 0x263   : > { %v8030_v26 = vpop.f32.mrf.mxu1  ;;  %v8032_v41 = vpop.f32.mrf.mxu0 }
 0x264   : > { %9291 = vst [vmem:[#allocation31_spill] sm:$0xff] %v8030_v26  ;;  %v8035_v8 = vadd.f32 %v7870_v61, %v2627_v15  ;;  %v9294_v15 = vld [vmem:[#allocation15_spill] sm:$0xff] }
 0x265   : > { %v5767_v53 = vpop.f32.mrf.mxu1  ;;  %v8039_v51 = vpop.f32.mrf.mxu0  ;;  %v2350_v22 = vadd.f32 %v9294_v15, %v1976_v40  ;;  %v9296_v15 = vld [vmem:[#allocation17_spill] sm:$0xff] }
 0x266   : > { %9293 = vst [vmem:[#allocation10_spill] sm:$0xff] %v8039_v51  ;;  %v2630_v7 = vadd.f32 %v5767_v53, %v7860_v49 }
 0x267   : > { %v2561_v14 = vpop.f32.mrf.mxu1  ;;  %v8042_v60 = vpop.f32.mrf.mxu0 }
 0x268   : > { %v2628_v0 = vadd.f32 %v2561_v14, %v7866_v55  ;;  %v8046_v35 = vadd.f32 %v7882_v63, %v2630_v7  ;;  %v9295_v63 = vld [vmem:[#allocation42_spill] sm:$0xff] }
 0x269   : > { %v5768_v52 = vpop.f32.mrf.mxu1  ;;  %v8048_v26 = vpop.f32.mrf.mxu0  ;;  %v1992_v14 = vadd.f32 %v7897_v28, %v9295_v63 }
 0x26a   : > { %v2631_v61 = vadd.f32 %v5768_v52, %v7873_v56  ;;  %v8053_v46 = vadd.f32 %v7891_v42, %v2628_v0 }
 0x26b   : > { %v2564_v6 = vpop.f32.mrf.mxu1  ;;  %v8055_v49 = vpop.f32.mrf.mxu0 }
 0x26c   : > { %v2629_v53 = vadd.f32 %v2564_v6, %v2350_v22  ;;  %v8058_v51 = vadd.f32 %v7899_v37, %v2631_v61  ;;  %v2354_v6 = vadd.f32 %v9296_v15, %v1992_v14 }
 0x26d   : > { %v5771_v55 = vpop.f32.mrf.mxu1  ;;  %v8062_v7 = vpop.f32.mrf.mxu0 }
 0x26e   : > { %v2634_v56 = vadd.f32 %v5771_v55, %v7886_v43  ;;  %v8066_v40 = vadd.f32 %v7905_v39, %v2629_v53 }
 0x26f   : > { %v2577_v42 = vpop.f32.mrf.mxu1  ;;  %v8068_v0 = vpop.f32.mrf.mxu0 }
 0x270   : > { %v2632_v52 = vadd.f32 %v2577_v42, %v7895_v62  ;;  %v8072_v22 = vadd.f32 %v7908_v59, %v2634_v56  ;;  %v9297_v59 = vld [vmem:[#allocation46_spill] sm:$0xff] }
 0x271   : > { %v5772_v37 = vpop.f32.mrf.mxu1  ;;  %v8074_v61 = vpop.f32.mrf.mxu0  ;;  %v2008_v56 = vadd.f32 %v7920_v31, %v9297_v59 }
 0x272   : > { %v2635_v28 = vadd.f32 %v5772_v37, %v7902_v34  ;;  %v8079_v43 = vadd.f32 %v7914_v36, %v2632_v52 }
 0x273   : > { %v2580_v39 = vpop.f32.mrf.mxu1  ;;  %v8081_v53 = vpop.f32.mrf.mxu0 }
 0x274   : > { %v2633_v55 = vadd.f32 %v2580_v39, %v2354_v6  ;;  %v8084_v63 = vadd.f32 %v7922_v2, %v2635_v28  ;;  %v2358_v6 = vadd.f32 %v7735_v19, %v2008_v56 }
 0x275   : > { %v5775_v62 = vpop.f32.mrf.mxu1  ;;  %v8088_v42 = vpop.f32.mrf.mxu0 }
 0x276   : > { %v2638_v34 = vadd.f32 %v5775_v62, %v7912_v5  ;;  %v8092_v14 = vadd.f32 %v7927_v25, %v2633_v55 }
 0x277   : > { %v2593_v36 = vpop.f32.mrf.mxu1  ;;  %v8094_v52 = vpop.f32.mrf.mxu0 }
 0x278   : > { %9298 = vst [vmem:[#allocation35_spill] sm:$0xff] %v8092_v14  ;;  %v2636_v37 = vadd.f32 %v2593_v36, %v7918_v10  ;;  %v8098_v15 = vadd.f32 %v7930_v50, %v2638_v34 }
 0x279   : > { %v5776_v2 = vpop.f32.mrf.mxu1  ;;  %v8100_v28 = vpop.f32.mrf.mxu0 }
 0x27a   : > { %v2639_v31 = vadd.f32 %v5776_v2, %v7925_v24  ;;  %v8105_v5 = vadd.f32 %v7936_v58, %v2636_v37 }
 0x27b   : > { %v2596_v25 = vpop.f32.mrf.mxu1  ;;  %v8107_v39 = vpop.f32.mrf.mxu0 }
 0x27c   : > { %v2637_v55 = vadd.f32 %v2596_v25, %v2358_v6  ;;  %v8110_v62 = vadd.f32 %v7944_v1, %v2639_v31 }
 0x27d   : > { %v5819_v10 = vpop.f32.mrf.mxu1  ;;  %v8112_v50 = vpop.f32.mrf.mxu0 }
 0x27e   : > { %9299 = vst [vmem:[#allocation40_spill] sm:$0xff] %v8112_v50  ;;  %v3097_v59 = vadd.f32 %v5819_v10, %v7934_v48  ;;  %v8116_v34 = vadd.f32 %v7949_v47, %v2637_v55 }
 0x27f   : > { %v2968_v24 = vpop.f32.mrf.mxu1  ;;  %v8118_v19 = vpop.f32.mrf.mxu0 }
 0x280   : > { %9300 = vst [vmem:[#allocation24_spill] sm:$0xff] %v8116_v34  ;;  %v3095_v58 = vadd.f32 %v2968_v24, %v7940_v12  ;;  %v8122_v56 = vadd.f32 %v7952_v18, %v3097_v59 }
 0x281   : > { %v8124_v36 = vpop.f32.mrf.mxu1  ;;  %v8126_v1 = vpop.f32.mrf.mxu0 }
 0x282   : > { %v8129_v37 = vadd.f32 %v7958_v45, %v3095_v58 }
 0x283   : > { %v8131_v2 = vpop.f32.mrf.mxu1  ;;  %v8133_v48 = vpop.f32.mrf.mxu0 }
 0x285   : > { %v5823_v47 = vpop.f32.mrf.mxu1  ;;  %v8135_v31 = vpop.f32.mrf.mxu0 }
 0x286   : > { %9301 = vst [vmem:[#allocation23_spill] sm:$0xff] %v8135_v31  ;;  %v3101_v6 = vadd.f32 %v5823_v47, %v7956_v21 }
 0x287   : > { %v2984_v12 = vpop.f32.mrf.mxu1  ;;  %v8138_v25 = vpop.f32.mrf.mxu0 }
 0x288   : > { %v3099_v18 = vadd.f32 %v2984_v12, %v7962_v20  ;;  %v8142_v55 = vadd.f32 %v7974_v30, %v3101_v6 }
 0x289   : > { %v8144_v10 = vpop.f32.mrf.mxu1  ;;  %v8146_v45 = vpop.f32.mrf.mxu0 }
 0x28a   : > { %v8149_v59 = vadd.f32 %v7980_v38, %v3099_v18 }
 0x28b   : > { %v8151_v24 = vpop.f32.mrf.mxu1  ;;  %v8153_v58 = vpop.f32.mrf.mxu0 }
 0x28d   : > { %v5827_v21 = vpop.f32.mrf.mxu1  ;;  %v8156_v31 = vpop.f32.mrf.mxu0 }
 0x28e   : > { %v3105_v47 = vadd.f32 %v5827_v21, %v7978_v57 }
 0x28f   : > { %v3000_v20 = vpop.f32.mrf.mxu1  ;;  %v8166_v18 = vpop.f32.mrf.mxu0 }
 0x290   : > { %v3103_v30 = vadd.f32 %v3000_v20, %v7984_v9  ;;  %v8160_v6 = vadd.f32 %v7996_v29, %v3105_v47 }
 0x291   : > { %v5828_v12 = vpop.f32.mrf.mxu1  ;;  %v8174_v9 = vpop.f32.mrf.mxu0 }
 0x292   : > { %v3106_v34 = vadd.f32 %v5828_v12, %v7991_v32  ;;  %v8164_v38 = vadd.f32 %v8002_v27, %v3103_v30 }
 0x293   : > { %v8168_v50 = vpop.f32.mrf.mxu1  ;;  %v8184_v12 = vpop.f32.mrf.mxu0 }
 0x294   : > { %v8171_v57 = vadd.f32 %v8010_v17, %v3106_v34 }
 0x295   : > { %v5831_v21 = vpop.f32.mrf.mxu1 }
 0x296   : > { %v3109_v14 = vadd.f32 %v5831_v21, %v8000_v13 }
 0x297   : > { %v3016_v29 = vpop.f32.mrf.mxu1 }
 0x298   : > { %v3107_v47 = vadd.f32 %v3016_v29, %v8006_v44  ;;  %v8178_v32 = vadd.f32 %v8018_v16, %v3109_v14  ;;  %v8192_v44 = vpop.f32.mrf.mxu0 }
 0x299   : > { %v5832_v27 = vpop.f32.mrf.mxu1 }
 0x29a   : > { %v3110_v20 = vadd.f32 %v5832_v27, %v8013_v54  ;;  %v8182_v30 = vadd.f32 %v8024_v3, %v3107_v47  ;;  %v8202_v27 = vpop.f32.mrf.mxu0 }
 0x29b   : > { %v8186_v17 = vpop.f32.mrf.mxu1 }
 0x29c   : > { %v8189_v13 = vadd.f32 %v8032_v41, %v3110_v20 }
 0x29d   : > { %v5835_v34 = vpop.f32.mrf.mxu1 }
 0x29e   : > { %v3113_v21 = vadd.f32 %v5835_v34, %v8022_v11 }
 0x29f   : > { %v3032_v16 = vpop.f32.mrf.mxu1 }
 0x2a0   : > { %v3111_v14 = vadd.f32 %v3032_v16, %v8028_v23  ;;  %v8196_v54 = vadd.f32 %v8042_v60, %v3113_v21  ;;  %v8210_v23 = vpop.f32.mrf.mxu0 }
 0x2a1   : > { %v5836_v3 = vpop.f32.mrf.mxu1 }
 0x2a2   : > { %v3114_v29 = vadd.f32 %v5836_v3, %v8035_v8  ;;  %v8200_v47 = vadd.f32 %v8048_v26, %v3111_v14  ;;  %v8220_v3 = vpop.f32.mrf.mxu0 }
 0x2a3   : > { %v8204_v41 = vpop.f32.mrf.mxu1 }
 0x2a4   : > { %v8207_v11 = vadd.f32 %v8055_v49, %v3114_v29 }
 0x2a5   : > { %v5839_v20 = vpop.f32.mrf.mxu1 }
 0x2a6   : > { %v3117_v34 = vadd.f32 %v5839_v20, %v8046_v35 }
 0x2a7   : > { %v3048_v60 = vpop.f32.mrf.mxu1 }
 0x2a8   : > { %v3115_v21 = vadd.f32 %v3048_v60, %v8053_v46  ;;  %v8214_v8 = vadd.f32 %v8068_v0, %v3117_v34  ;;  %v8228_v46 = vpop.f32.mrf.mxu0 }
 0x2a9   : > { %v5840_v26 = vpop.f32.mrf.mxu1 }
 0x2aa   : > { %v3118_v16 = vadd.f32 %v5840_v26, %v8058_v51  ;;  %v8218_v14 = vadd.f32 %v8074_v61, %v3115_v21  ;;  %v8238_v26 = vpop.f32.mrf.mxu0 }
 0x2ab   : > { %v8222_v49 = vpop.f32.mrf.mxu1 }
 0x2ac   : > { %v8225_v35 = vadd.f32 %v8081_v53, %v3118_v16 }
 0x2ad   : > { %v5843_v29 = vpop.f32.mrf.mxu1 }
 0x2ae   : > { %v3121_v20 = vadd.f32 %v5843_v29, %v8072_v22 }
 0x2af   : > { %v3064_v0 = vpop.f32.mrf.mxu1 }
 0x2b0   : > { %v3119_v34 = vadd.f32 %v3064_v0, %v8079_v43  ;;  %v8232_v51 = vadd.f32 %v8094_v52, %v3121_v20  ;;  %v8246_v43 = vpop.f32.mrf.mxu0  ;;  %v9304_v20 = vld [vmem:[#allocation47_spill] sm:$0xff] }
 0x2b1   : > { %v5844_v61 = vpop.f32.mrf.mxu1  ;;  %v2609_v0 = vadd.f32 %v9304_v20, %v7741_v33 }
 0x2b2   : > { %v3122_v60 = vadd.f32 %v5844_v61, %v8084_v63  ;;  %v8236_v21 = vadd.f32 %v8100_v28, %v3119_v34 }
 0x2b3   : > { %v8240_v53 = vpop.f32.mrf.mxu1 }
 0x2b4   : > { %9302 = vst [vmem:[#allocation29_spill] sm:$0xff] %v8236_v21  ;;  %v8243_v22 = vadd.f32 %v8107_v39, %v3122_v60  ;;  %v8258_v60 = vpop.f32.mrf.mxu0  ;;  %v9308_v21 = vld [vmem:[#allocation48_spill] sm:$0xff] }
 0x2b5   : > { %v5847_v16 = vpop.f32.mrf.mxu1  ;;  %v2820_v33 = vadd.f32 %v9308_v21, %v2609_v0 }
 0x2b6   : > { %9303 = vst [vmem:[#allocation26_spill] sm:$0xff] %v8243_v22  ;;  %v3125_v29 = vadd.f32 %v5847_v16, %v8098_v15  ;;  %v9307_v16 = vld [vmem:[#allocation13_spill] sm:$0xff]  ;;  %v8272_v20 = vpop.f32.mrf.mxu0 }
 0x2b7   : > { %v3080_v52 = vpop.f32.mrf.mxu1  ;;  %v3098_v22 = vadd.f32 %v8124_v36, %v9307_v16  ;;  %v9311_v16 = vld [vmem:[#allocation38_spill] sm:$0xff] }
 0x2b8   : > { %v3123_v63 = vadd.f32 %v3080_v52, %v8105_v5  ;;  %v8252_v28 = vadd.f32 %v8118_v19, %v3125_v29  ;;  %v3096_v29 = vadd.f32 %v8131_v2, %v2820_v33  ;;  %v9310_v52 = vld [vmem:[#allocation20_spill] sm:$0xff]  ;;  %v9313_v33 = vld [vmem:[#allocation50_spill] sm:$0xff] }
 0x2b9   : > { %v5848_v34 = vpop.f32.mrf.mxu1  ;;  %v3373_v21 = vadd.f32 %v9311_v16, %v3098_v22 }
 0x2ba   : > { %9305 = vst [vmem:[#allocation34_spill] sm:$0xff] %v8252_v28  ;;  %v3126_v61 = vadd.f32 %v5848_v34, %v8110_v62  ;;  %v8256_v39 = vadd.f32 %v8126_v1, %v3123_v63  ;;  %v2613_v1 = vadd.f32 %v7964_v4, %v9310_v52  ;;  %v8285_v52 = vpop.f32.mrf.mxu0  ;;  %v9319_v28 = vld [vmem:[#allocation22_spill] sm:$0xff] }
 0x2bb   : > { %v8260_v15 = vpop.f32.mrf.mxu1 }
 0x2bc   : > { %9306 = vst [vmem:[#allocation33_spill] sm:$0xff] %v8256_v39  ;;  %v8266_v5 = vadd.f32 %v8133_v48, %v3126_v61  ;;  %v8280_v48 = vld [vmem:[%s8896_s4] ss:$0 sm:$0xff]  ;;  %v9312_v61 = vld [vmem:[#allocation7_spill] sm:$0xff] }
 0x2bd   : > { %v5891_v19 = vpop.f32.mrf.mxu1  ;;  %v3371_v4 = vadd.f32 %v9312_v61, %v3096_v29  ;;  %v9315_v61 = vld [vmem:[#allocation21_spill] sm:$0xff] }
 0x2be   : > { %9309 = vst [vmem:[#allocation39_spill] sm:$0xff] %v8266_v5  ;;  %v3581_v62 = vadd.f32 %v5891_v19, %v8122_v56  ;;  %v2824_v19 = vadd.f32 %v9313_v33, %v2613_v1  ;;  %v9317_v33 = vld [vmem:[#allocation8_spill] sm:$0xff] }
 0x2bf   : > { %v3452_v63 = vpop.f32.mrf.mxu1 }
 0x2c0   : > { %v3854_v34 = vadd.f32 %v8138_v25, %v3581_v62  ;;  %v3579_v36 = vadd.f32 %v3452_v63, %v8129_v37  ;;  %v9314_v63 = vld [vmem:[#allocation25_spill] sm:$0xff]  ;;  %v3100_v5 = vadd.f32 %v8151_v24, %v2824_v19  ;;  %v9316_v24 = vld [vmem:[#allocation27_spill] sm:$0xff] }
 0x2c1   : > { %v5892_v2 = vpop.f32.mrf.mxu1  ;;  %v3102_v16 = vadd.f32 %v8144_v10, %v9314_v63 }
 0x2c2   : > { %v3852_v56 = vadd.f32 %v8146_v45, %v3579_v36  ;;  %v3582_v0 = vadd.f32 %v5892_v2, %v3373_v21  ;;  %v3893_v37 = vadd.f32 %v8280_v48, %v3854_v34  ;;  %v8296_v21 = vpop.f32.mrf.mxu0 }
 0x2c3   : > { %v3455_v25 = vpop.f32.mrf.mxu1  ;;  %v3377_v19 = vadd.f32 %v9317_v33, %v3102_v16  ;;  %v9323_v33 = vld [vmem:[#allocation28_spill] sm:$0xff] }
 0x2c4   : > { %v3855_v22 = vadd.f32 %v8153_v58, %v3582_v0  ;;  %v3580_v62 = vadd.f32 %v3455_v25, %v3371_v4  ;;  %v3891_v45 = vadd.f32 %v8280_v48, %v3852_v56  ;;  %v3925_v2 = vmax.f32 %v3893_v37, 0.0  ;;  %v8306_v63 = vpop.f32.mrf.mxu0 }
 0x2c5   : > { %v5895_v39 = vpop.f32.mrf.mxu1  ;;  %v2617_v4 = vadd.f32 %v9316_v24, %v9315_v61 }
 0x2c6   : > { %v3894_v29 = vadd.f32 %v8280_v48, %v3855_v22  ;;  %v3853_v1 = vadd.f32 %v8156_v31, %v3580_v62  ;;  %v3585_v36 = vadd.f32 %v5895_v39, %v8142_v55  ;;  %v9318_v31 = vld [vmem:[#allocation30_spill] sm:$0xff]  ;;  %v3923_v55 = vmax.f32 %v3891_v45, 0.0 }
 0x2c7   : > { %v3468_v34 = vpop.f32.mrf.mxu1  ;;  %v3375_v22 = vadd.f32 %v9318_v31, %v3100_v5  ;;  %v2828_v61 = vadd.f32 %v9319_v28, %v2617_v4 }
 0x2c8   : > { %v3926_v58 = vmax.f32 %v3894_v29, 0.0  ;;  %v3892_v0 = vadd.f32 %v8280_v48, %v3853_v1  ;;  %v3583_v10 = vadd.f32 %v3468_v34, %v8149_v59  ;;  %v3858_v56 = vadd.f32 %v8166_v18, %v3585_v36 }
 0x2c9   : > { %v5896_v25 = vpop.f32.mrf.mxu1 }
 0x2ca   : > { %v3956_v39 = vpack.c.bf16 %v3926_v58, %v3925_v2  ;;  %v3924_v62 = vmax.f32 %v3892_v0, 0.0  ;;  %v3856_v37 = vadd.f32 %v8174_v9, %v3583_v10  ;;  %v3586_v29 = vadd.f32 %v5896_v25, %v3377_v19  ;;  %v8316_v58 = vpop.f32.mrf.mxu0  ;;  %v9320_v10 = vld [vmem:[#allocation18_spill] sm:$0xff] }
 0x2cb   : > { %v3471_v1 = vpop.f32.mrf.mxu1  ;;  %v3897_v18 = vadd.f32 %v8280_v48, %v3858_v56  ;;  %v3104_v9 = vadd.f32 %v8168_v50, %v2828_v61  ;;  %v9322_v56 = vld [vmem:[#allocation11_spill] sm:$0xff] }
 0x2cc   : > { %v3955_v59 = vpack.c.bf16 %v3924_v62, %v3923_v55  ;;  %v3584_v34 = vadd.f32 %v3471_v1, %v3375_v22  ;;  %v3859_v16 = vadd.f32 %v8184_v12, %v3586_v29  ;;  %v3895_v5 = vadd.f32 %v8280_v48, %v3856_v37  ;;  %v9321_v12 = vld [vmem:[#allocation9_spill] sm:$0xff] }
 0x2cd   : > { %v5899_v36 = vpop.f32.mrf.mxu1  ;;  %v2621_v24 = vadd.f32 %v9321_v12, %v9320_v10  ;;  %v1960_v19 = vadd.f32 %v9323_v33, %v9322_v56  ;;  %v3929_v50 = vmax.f32 %v3897_v18, 0.0  ;;  %v9324_v1 = vld [vmem:[#allocation41_spill] sm:$0xff] }
 0x2ce   : > { %v3857_v45 = vadd.f32 %v8192_v44, %v3584_v34  ;;  %v3589_v2 = vadd.f32 %v5899_v36, %v8160_v6  ;;  %5961 = vmatprep.mubr.msk.bf16.mxu1 %vm1603_vm5, %v3955_v59  ;;  %v3898_v0 = vadd.f32 %v8280_v48, %v3859_v16  ;;  %v3927_v22 = vmax.f32 %v3895_v5, 0.0  ;;  %v9325_v34 = vld [vmem:[#allocation44_spill] sm:$0xff] }
 0x2cf   : > { %v3484_v28 = vpop.f32.mrf.mxu1  ;;  %5962 = vmatmul.mubr.msk.bf16.vlgmr.msra.gmra.mxu1 %vm1603_vm5, %v3956_v39  ;;  %v8328_v39 = vpop.f32.mrf.mxu0  ;;  %v3379_v59 = vadd.f32 %v9324_v1, %v3104_v9  ;;  %v9326_v36 = vld [vmem:[#allocation36_spill] sm:$0xff]  ;;  %v9327_v9 = vld [vmem:[#allocation31_spill] sm:$0xff] }
 0x2d0   : > { %v3896_v4 = vadd.f32 %v8280_v48, %v3857_v45  ;;  %v3862_v44 = vadd.f32 %v8202_v27, %v3589_v2  ;;  %v3587_v6 = vadd.f32 %v3484_v28, %v8164_v38  ;;  %v3930_v25 = vmax.f32 %v3898_v0, 0.0 }
 0x2d1   : > { %v5900_v31 = vpop.f32.mrf.mxu1  ;;  %v2832_v38 = vadd.f32 %v9325_v34, %v2621_v24  ;;  %v2346_v5 = vadd.f32 %v9326_v36, %v1960_v19  ;;  %v8341_v10 = vpop.f32.mrf.mxu0 }
 0x2d2   : > { %v3928_v55 = vmax.f32 %v3896_v4, 0.0  ;;  %v3590_v62 = vadd.f32 %v5900_v31, %v8171_v57  ;;  %v3958_v37 = vpack.c.bf16 %v3930_v25, %v3929_v50  ;;  %v3860_v29 = vadd.f32 %v8210_v23, %v3587_v6  ;;  %v9328_v25 = vld [vmem:[#allocation10_spill] sm:$0xff] }
 0x2d3   : > { %v3487_v27 = vpop.f32.mrf.mxu1  ;;  %v3901_v16 = vadd.f32 %v8280_v48, %v3862_v44  ;;  %v3108_v57 = vadd.f32 %v8186_v17, %v2832_v38  ;;  %v2625_v28 = vadd.f32 %v9327_v9, %v2346_v5 }
 0x2d4   : > { %v3957_v61 = vpack.c.bf16 %v3928_v55, %v3927_v22  ;;  %v3863_v18 = vadd.f32 %v8220_v3, %v3590_v62  ;;  %v3588_v45 = vadd.f32 %v3487_v27, %v3379_v59  ;;  %v3899_v12 = vadd.f32 %v8280_v48, %v3860_v29  ;;  %v5948_v55 = vpop.f32.mrf.mxu0 }
 0x2d5   : > { %v5903_v2 = vpop.f32.mrf.mxu1  ;;  %v3933_v4 = vmax.f32 %v3901_v16, 0.0  ;;  %v3383_v31 = vadd.f32 %v9328_v25, %v3108_v57 }
 0x2d6   : > { %v3902_v0 = vadd.f32 %v8280_v48, %v3863_v18  ;;  %v3593_v23 = vadd.f32 %v5903_v2, %v8178_v32  ;;  %5965 = vmatprep.mubr.msk.bf16.mxu1 %vm1603_vm5, %v3957_v61  ;;  %v3861_v3 = vadd.f32 %v8228_v46, %v3588_v45  ;;  %v9329_v46 = vld [vmem:[#allocation49_spill] sm:$0xff]  ;;  %v3931_v62 = vmax.f32 %v3899_v12, 0.0  ;;  %v3808_v16 = vpop.f32.mrf.mxu0 }
 0x2d7   : > { %v3500_v24 = vpop.f32.mrf.mxu1  ;;  %5966 = vmatmul.mubr.msk.bf16.gmra.mxu1 %vm1603_vm5, %v3958_v37  ;;  %v2836_v22 = vadd.f32 %v9329_v46, %v2625_v28 }
 0x2d8   : > { %v3934_v44 = vmax.f32 %v3902_v0, 0.0  ;;  %v3866_v17 = vadd.f32 %v8238_v26, %v3593_v23  ;;  %v3591_v6 = vadd.f32 %v3500_v24, %v8182_v30  ;;  %v3900_v32 = vadd.f32 %v8280_v48, %v3861_v3  ;;  %v5951_v9 = vpop.f32.mrf.mxu0 }
 0x2d9   : > { %v5904_v56 = vpop.f32.mrf.mxu1  ;;  %v3112_v59 = vadd.f32 %v8204_v41, %v2836_v22 }
 0x2da   : > { %v3960_v33 = vpack.c.bf16 %v3934_v44, %v3933_v4  ;;  %v3864_v19 = vadd.f32 %v8246_v43, %v3591_v6  ;;  %v3594_v50 = vadd.f32 %v5904_v56, %v8189_v13  ;;  %v3932_v37 = vmax.f32 %v3900_v32, 0.0 }
 0x2db   : > { %v3503_v29 = vpop.f32.mrf.mxu1  ;;  %v3905_v26 = vadd.f32 %v8280_v48, %v3866_v17  ;;  %v3387_v57 = vadd.f32 %v8062_v7, %v3112_v59 }
 0x2dc   : > { %v3867_v30 = vadd.f32 %v8258_v60, %v3594_v50  ;;  %v3592_v1 = vadd.f32 %v3503_v29, %v3383_v31  ;;  %v3959_v27 = vpack.c.bf16 %v3932_v37, %v3931_v62  ;;  %v3903_v43 = vadd.f32 %v8280_v48, %v3864_v19 }
 0x2dd   : > { %v5907_v34 = vpop.f32.mrf.mxu1  ;;  %v3937_v36 = vmax.f32 %v3905_v26, 0.0 }
 0x2de   : > { %v3906_v13 = vadd.f32 %v8280_v48, %v3867_v30  ;;  %v3865_v38 = vadd.f32 %v8272_v20, %v3592_v1  ;;  %v3597_v61 = vadd.f32 %v5907_v34, %v8196_v54  ;;  %5969 = vmatprep.mubr.msk.bf16.mxu1 %vm1603_vm5, %v3959_v27  ;;  %v3935_v20 = vmax.f32 %v3903_v43, 0.0  ;;  %v9330_v30 = vld [vmem:[#allocation35_spill] sm:$0xff] }
 0x2df   : > { %v3516_v18 = vpop.f32.mrf.mxu1  ;;  %5970 = vmatmul.mubr.msk.bf16.gmra.mxu1 %vm1603_vm5, %v3960_v33  ;;  %v3120_v1 = vadd.f32 %v8240_v53, %v9330_v30 }
 0x2e0   : > { %v3938_v5 = vmax.f32 %v3906_v13, 0.0  ;;  %v3904_v60 = vadd.f32 %v8280_v48, %v3865_v38  ;;  %v3595_v41 = vadd.f32 %v3516_v18, %v8200_v47  ;;  %v3870_v45 = vadd.f32 %v8285_v52, %v3597_v61 }
 0x2e1   : > { %v5908_v2 = vpop.f32.mrf.mxu1 }
 0x2e2   : > { %v3962_v0 = vpack.c.bf16 %v3938_v5, %v3937_v36  ;;  %v3936_v54 = vmax.f32 %v3904_v60, 0.0  ;;  %v3868_v23 = vadd.f32 %v8296_v21, %v3595_v41  ;;  %v3598_v28 = vadd.f32 %v5908_v2, %v8207_v11  ;;  %v3821_v11 = vpop.f32.mrf.mxu0  ;;  %v9332_v60 = vld [vmem:[#allocation26_spill] sm:$0xff] }
 0x2e3   : > { %v3519_v12 = vpop.f32.mrf.mxu1  ;;  %v3909_v47 = vadd.f32 %v8280_v48, %v3870_v45  ;;  %v3116_v21 = vadd.f32 %v8222_v49, %v8066_v40  ;;  %v9333_v45 = vld [vmem:[#allocation40_spill] sm:$0xff] }
 0x2e4   : > { %v3961_v3 = vpack.c.bf16 %v3936_v54, %v3935_v20  ;;  %v3596_v24 = vadd.f32 %v3519_v12, %v3387_v57  ;;  %v3871_v4 = vadd.f32 %v8306_v63, %v3598_v28  ;;  %v3907_v52 = vadd.f32 %v8280_v48, %v3868_v23  ;;  %v5952_v40 = vpop.f32.mrf.mxu0 }
 0x2e5   : > { %v5911_v44 = vpop.f32.mrf.mxu1  ;;  %v3391_v22 = vadd.f32 %v8088_v42, %v3116_v21  ;;  %v3395_v2 = vadd.f32 %v9333_v45, %v3120_v1  ;;  %v4550_v45 = vld [vmem:[%s8903_s11] sm:$0xf] }
 0x2e6   : > { %v3869_v7 = vadd.f32 %v8316_v58, %v3596_v24  ;;  %v3601_v17 = vadd.f32 %v5911_v44, %v8214_v8  ;;  %5973 = vmatprep.mubr.msk.bf16.mxu1 %vm1603_vm5, %v3961_v3  ;;  %v3910_v6 = vadd.f32 %v8280_v48, %v3871_v4  ;;  %v3941_v58 = vmax.f32 %v3909_v47, 0.0  ;;  %v3824_v27 = vpop.f32.mrf.mxu0 }
 0x2e7   : > { %v3532_v32 = vpop.f32.mrf.mxu1  ;;  %5974 = vmatmul.mubr.msk.bf16.gmra.mxu1 %vm1603_vm5, %v3962_v0  ;;  %v3939_v50 = vmax.f32 %v3907_v52, 0.0  ;;  %v9335_v52 = vld [vmem:[#allocation34_spill] sm:$0xff] }
 0x2e8   : > { %v3908_v56 = vadd.f32 %v8280_v48, %v3869_v7  ;;  %v3874_v63 = vadd.f32 %v8328_v39, %v3601_v17  ;;  %v3599_v33 = vadd.f32 %v3532_v32, %v8218_v14  ;;  %v3942_v19 = vmax.f32 %v3910_v6, 0.0  ;;  %v5955_v36 = vpop.f32.mrf.mxu0  ;;  %v9336_v32 = vld [vmem:[#allocation33_spill] sm:$0xff] }
 0x2e9   : > { %v5912_v8 = vpop.f32.mrf.mxu1 }
 0x2ea   : > { %v3940_v25 = vmax.f32 %v3908_v56, 0.0  ;;  %v3602_v31 = vadd.f32 %v5912_v8, %v8225_v35  ;;  %v3964_v49 = vpack.c.bf16 %v3942_v19, %v3941_v58  ;;  %v3872_v46 = vadd.f32 %v8341_v10, %v3599_v33  ;;  %v3837_v3 = vpop.f32.mrf.mxu0  ;;  %v9337_v58 = vld [vmem:[#allocation23_spill] sm:$0xff] }
 0x2eb   : > { %v3535_v62 = vpop.f32.mrf.mxu1  ;;  %v3913_v39 = vadd.f32 %v8280_v48, %v3874_v63 }
 0x2ec   : > { %v3963_v37 = vpack.c.bf16 %v3940_v25, %v3939_v50  ;;  %v3875_v14 = vadd.f32 %v5948_v55, %v3602_v31  ;;  %v3600_v29 = vadd.f32 %v3535_v62, %v3391_v22  ;;  %v3911_v10 = vadd.f32 %v8280_v48, %v3872_v46  ;;  %v9331_v55 = vld [vmem:[#allocation29_spill] sm:$0xff]  ;;  %v5956_v63 = vpop.f32.mrf.mxu0 }
 0x2ed   : > { %v5915_v26 = vpop.f32.mrf.mxu1  ;;  %v3945_v43 = vmax.f32 %v3913_v39, 0.0 }
 0x2ee   : > { %v3914_v59 = vadd.f32 %v8280_v48, %v3875_v14  ;;  %v3605_v35 = vadd.f32 %v5915_v26, %v8232_v51  ;;  %5977 = vmatprep.mubr.msk.bf16.mxu1 %vm1603_vm5, %v3963_v37  ;;  %v3873_v42 = vadd.f32 %v3808_v16, %v3600_v29  ;;  %v3943_v57 = vmax.f32 %v3911_v10, 0.0  ;;  %v3840_v39 = vpop.f32.mrf.mxu0 }
 0x2ef   : > { %v3548_v34 = vpop.f32.mrf.mxu1  ;;  %5978 = vmatmul.mubr.msk.bf16.gmra.mxu1 %vm1603_vm5, %v3964_v49 }
 0x2f0   : > { %v3946_v13 = vmax.f32 %v3914_v59, 0.0  ;;  %v3878_v38 = vadd.f32 %v5951_v9, %v3605_v35  ;;  %v3603_v61 = vadd.f32 %v3548_v34, %v9331_v55  ;;  %v3912_v53 = vadd.f32 %v8280_v48, %v3873_v42  ;;  %v9334_v9 = vld [vmem:[#allocation24_spill] sm:$0xff]  ;;  %v6147_v55 = vld [vmem:[%s8901_s9 + $0x20] sm:$0xff]  }
 0x2f1   : > { %v5916_v18 = vpop.f32.mrf.mxu1  ;;  %v3124_v28 = vadd.f32 %v8260_v15, %v9334_v9 }
 0x2f2   : > { %v3966_v5 = vpack.c.bf16 %v3946_v13, %v3945_v43  ;;  %v3876_v51 = vadd.f32 %v3821_v11, %v3603_v61  ;;  %v3606_v41 = vadd.f32 %v5916_v18, %v9332_v60  ;;  %v3944_v16 = vmax.f32 %v3912_v53, 0.0  ;;  %v6144_v43 = vld [vmem:[%s8901_s9 + $0x38] sm:$0xff]   ;;  %v6149_v53 = vld [vmem:[%s8901_s9 + $0x10] sm:$0xff]   ;;  %v6150_v18 = vld [vmem:[%s8901_s9 + $0x8] sm:$0xff]  }
 0x2f3   : > { %v3551_v20 = vpop.f32.mrf.mxu1  ;;  %v3917_v0 = vadd.f32 %v8280_v48, %v3878_v38  ;;  %v3399_v19 = vadd.f32 %v9337_v58, %v3124_v28  ;;  %v6240_v13 = vmov 0.0   ;;  %v6146_v38 = vld [vmem:[%s8901_s9 + $0x28] sm:$0xff]   ;;  %v6148_v61 = vld [vmem:[%s8901_s9 + $0x18] sm:$0xff]  }
 0x2f4   : > { %v3879_v54 = vadd.f32 %v5952_v40, %v3606_v41  ;;  %v3604_v23 = vadd.f32 %v3551_v20, %v3395_v2  ;;  %v3965_v12 = vpack.c.bf16 %v3944_v16, %v3943_v57  ;;  %v3915_v47 = vadd.f32 %v8280_v48, %v3876_v51  ;;  %v9338_v40 = vld [vmem:[#allocation39_spill] sm:$0xff]  ;;  %6033 = vmatprep.subr.bf16.mxu1 %v6240_v13  ;;  %v6151_v51 = vld [vmem:[%s8901_s9] sm:$0xff]   ;;  %v6162_v16 = vld [vmem:[%s6376_s21 + $0x10] sm:$0xff]  }
 0x2f5   : > { %v5919_v24 = vpop.f32.mrf.mxu1  ;;  %v3949_v21 = vmax.f32 %v3917_v0, 0.0  ;;  %6034 = vmatpush3.bf16.msra.mxu1 %v6144_v43  ;;  %v6154_v60 = vld [vmem:[%s8899_s7 + $0x8] sm:$0xff]   ;;  %v6155_v41 = vld [vmem:[%s8899_s7] sm:$0xff]   ;;  %v4558_v2 = vsel %vm4556_vm10, %v4550_v45, 0  ;;  %v6163_v20 = vld [vmem:[%s6376_s21 + $0x18] sm:$0xff]  }
 0x2f6   : > { %v3918_v4 = vadd.f32 %v8280_v48, %v3879_v54  ;;  %v3877_v44 = vadd.f32 %v3824_v27, %v3604_v23  ;;  %v3609_v7 = vadd.f32 %v5919_v24, %v9335_v52  ;;  %5981 = vmatprep.mubr.msk.bf16.mxu1 %vm1603_vm5, %v3965_v12  ;;  %v3947_v8 = vmax.f32 %v3915_v47, 0.0  ;;  %6035 = vmatprep.subr.bf16.mxu1 %v6240_v13  ;;  %v6161_v57 = vld [vmem:[%s6376_s21 + $0x8] sm:$0xff]   ;;  %v6164_v0 = vld [vmem:[%s6376_s21 + $0x20] sm:$0xff]   ;;  %v6166_v23 = vld [vmem:[%s6376_s21 + $0x30] sm:$0xff]  }
 0x2f7   : > { %v3564_v17 = vpop.f32.mrf.mxu1  ;;  %5982 = vmatmul.mubr.msk.bf16.gmra.mxu1 %vm1603_vm5, %v3966_v5  ;;  %v6153_v5 = vld [vmem:[%s8899_s7 + $0x10] sm:$0xff]   ;;  %v6165_v54 = vld [vmem:[%s6376_s21 + $0x28] sm:$0xff]   ;;  %v6167_v12 = vld [vmem:[%s6376_s21 + $0x38] sm:$0xff]  }
 0x2f8   : > { %v3950_v11 = vmax.f32 %v3918_v4, 0.0  ;;  %v3916_v6 = vadd.f32 %v8280_v48, %v3877_v44  ;;  %v3607_v56 = vadd.f32 %v3564_v17, %v9336_v32  ;;  %v3882_v15 = vadd.f32 %v5955_v36, %v3609_v7  ;;  %v6152_v36 = vld [vmem:[%s8899_s7 + $0x18] sm:$0xff]   ;;  %v8485_v47 = vld [vmem:[%s8898_s6] ss:$0 sm:$0xff] }
 0x2f9   : > { %v5920_v33 = vpop.f32.mrf.mxu1  ;;  %5993 = vmatprep.subr.bf16.mxu0 %v6152_v36 }
 0x2fa   : > { %v3968_v50 = vpack.c.bf16 %v3950_v11, %v3949_v21  ;;  %v3948_v25 = vmax.f32 %v3916_v6, 0.0  ;;  %v3880_v31 = vadd.f32 %v3837_v3, %v3607_v56  ;;  %v3610_v49 = vadd.f32 %v5920_v33, %v9338_v40  ;;  %5994 = vmatpush3.bf16.msra.mxu0 %v6152_v36  ;;  %v6168_v3 = vld [vmem:[%s6376_s21 + $0x40] sm:$0xff]   ;;  %v6169_v6 = vld [vmem:[%s6376_s21 + $0x48] sm:$0xff]  }
 0x2fb   : > { %v3567_v46 = vpop.f32.mrf.mxu1  ;;  %v3921_v37 = vadd.f32 %v8280_v48, %v3882_v15  ;;  %5995 = vmatprep.subr.bf16.mxu0 %v6153_v5  ;;  %v6170_v15 = vld [vmem:[%s6376_s21 + $0x50] sm:$0xff]  }
 0x2fc   : > { %v3967_v22 = vpack.c.bf16 %v3948_v25, %v3947_v8  ;;  %v3608_v62 = vadd.f32 %v3567_v46, %v3399_v19  ;;  %v3883_v14 = vadd.f32 %v5956_v63, %v3610_v49  ;;  %v3919_v29 = vadd.f32 %v8280_v48, %v3880_v31  ;;  %v6171_v49 = vld [vmem:[%s6376_s21 + $0x58] sm:$0xff]  }
 0x2fd   : > { %v3953_v59 = vmax.f32 %v3921_v37, 0.0  ;;  %v6172_v37 = vld [vmem:[%s6376_s21 + $0x60] sm:$0xff]  }
 0x2fe   : > { %v3881_v26 = vadd.f32 %v3840_v39, %v3608_v62  ;;  %5985 = vmatprep.mubr.msk.bf16.mxu1 %vm1603_vm5, %v3967_v22  ;;  %v3922_v30 = vadd.f32 %v8280_v48, %v3883_v14  ;;  %v3951_v27 = vmax.f32 %v3919_v29, 0.0  ;;  %5996 = vmatpush3.bf16.msra.mxu0 %v6153_v5 }
 0x2ff   : > { %5986 = vmatmul.mubr.msk.bf16.gmra.mxu1 %vm1603_vm5, %v3968_v50  ;;  %5997 = vmatprep.subr.bf16.mxu0 %v6154_v60 }
 0x300   : > { %v3920_v1 = vadd.f32 %v8280_v48, %v3881_v26  ;;  %v3954_v35 = vmax.f32 %v3922_v30, 0.0  ;;  %v6145_v48 = vld [vmem:[%s8901_s9 + $0x30] sm:$0xff]  }
 0x301   : > { %6036 = vmatpush3.bf16.msra.mxu1 %v6145_v48 }
 0x302   : > { %v3952_v10 = vmax.f32 %v3920_v1, 0.0  ;;  %v3970_v42 = vpack.c.bf16 %v3954_v35, %v3953_v59  ;;  %6037 = vmatprep.subr.bf16.mxu1 %v6240_v13  ;;  %5998 = vmatpush3.bf16.msra.mxu0 %v6154_v60 }
 0x303   : > { %5999 = vmatprep.subr.bf16.mxu0 %v6155_v41 }
 0x304   : > { %v3969_v34 = vpack.c.bf16 %v3952_v10, %v3951_v27  ;;  %v6173_v10 = vld [vmem:[%s6376_s21 + $0x68] sm:$0xff]  }
 0x305   : > { %6038 = vmatpush3.bf16.msra.mxu1 %v6146_v38 }
 0x306   : > { %5989 = vmatprep.mubr.msk.bf16.mxu1 %vm1603_vm5, %v3969_v34  ;;  %6039 = vmatprep.subr.bf16.mxu1 %v6240_v13  ;;  %v6174_v34 = vld [vmem:[%s6376_s21 + $0x70] sm:$0xff]  }
 0x307   : > { %5990 = vmatmul.mubr.msk.bf16.gmra.mxu1 %vm1603_vm5, %v3970_v42  ;;  %vm6241_vm5 = vmmov 0   ;;  %6000 = vmatpush3.bf16.msra.mxu0 %v6155_v41  ;;  %v6175_v41 = vld [vmem:[%s6376_s21 + $0x78] sm:$0xff]   ;;  %s8824_s21 = scalar_lea.vmem [#allocation2], %s8808_s23  ;;  %s6242_s23 = smov [#allocation2]  }
 0x308   : > { %6049 = vmatprep.mubr.msk.bf16.mxu1 %vm6241_vm5, %v6240_v13  ;;  %6053 = vmatprep.subr.bf16.mxu0 %v6240_v13  ;;  %s4880_s17 = sshll.u32 %s8824_s21, 4  ;;  %s6180_s24 = sshll.u32 %s6242_s23, 4  ;;  %s8836_s17 = int_to_ptr.vmem [resolvable:$true] %s4880_s17  ;;  %s6181_s24 = int_to_ptr.vmem [resolvable:$false] %s6180_s24 }
 0x309   : > { %6040 = vmatpush3.bf16.msra.mxu1 %v6147_v55  ;;  %s6176_s16 = scalar_lea.vmem %s8836_s17, 2048  ;;  %s6182_s29 = scalar_lea.vmem %s6181_s24, 4096 }
 0x30a   : > { %6041 = vmatprep.subr.bf16.mxu1 %v6240_v13  ;;  %6002 = vmatmul.mubr.msk.bf16.vlgmr.msra.gmra.mxu0 %vm594_vm0, %v6161_v57  ;;  %p6177_p11 = scmp.ne.s32.totalorder %s8836_s17, %s6176_s16  ;;  %p6183_p0 = scmp.lt.s32.totalorder %s8836_s17, %s6181_s24 }
 0x30b   : > { %6054 = vmatpush3.bf16.msra.mxu0 %v4558_v2  ;;  %6005 = vmatprep.mubr.msk.bf16.mxu0 %vm594_vm0, %v6162_v16  ;;  %p6184_p1 = scmp.lt.s32.totalorder %s6182_s29, %s6176_s16 }
 0x30c   : > { %p6178_p12 = pnand %p6177_p11, %p6353_p5 }
 0x30d   : > { %6042 = vmatpush3.bf16.msra.mxu1 %v6148_v61  ;;  %p6185_p2 = por %p6184_p1, %p6183_p0 }
 0x30e   : > { %6043 = vmatprep.subr.bf16.mxu1 %v6240_v13  ;;  %p6179_p13 = pneg %p6178_p12 }
 0x310   : > { %p6186_p3 = pnand %p6185_p2, %p6179_p13 }
 0x311   : > { %6044 = vmatpush3.bf16.msra.mxu1 %v6149_v53 }
 0x312   : > { %6045 = vmatprep.subr.bf16.mxu1 %v6240_v13  ;;  %6006 = vmatmul.mubr.msk.bf16.gmra.mxu0 %vm594_vm0, %v6163_v20 }
 0x313   : > { %6009 = vmatprep.mubr.msk.bf16.mxu0 %vm594_vm0, %v6164_v0 }
 0x315   : > { %6046 = vmatpush3.bf16.msra.mxu1 %v6150_v18 }
 0x316   : > { %6047 = vmatprep.subr.bf16.mxu1 %v6240_v13 }
 0x319   : > { %6048 = vmatpush3.bf16.msra.mxu1 %v6151_v51 }
 0x31a   : > { %6010 = vmatmul.mubr.msk.bf16.gmra.mxu0 %vm594_vm0, %v6165_v54 }
 0x31b   : > { %6013 = vmatprep.mubr.msk.bf16.mxu0 %vm594_vm0, %v6166_v23 }
 0x322   : > { %6014 = vmatmul.mubr.msk.bf16.gmra.mxu0 %vm594_vm0, %v6167_v12 }
 0x323   : > { %6017 = vmatprep.mubr.msk.bf16.mxu0 %vm594_vm0, %v6168_v3 }
 0x32a   : > { %6018 = vmatmul.mubr.msk.bf16.gmra.mxu0 %vm594_vm0, %v6169_v6 }
 0x32b   : > { %6021 = vmatprep.mubr.msk.bf16.mxu0 %vm594_vm0, %v6170_v15 }
 0x332   : > { %6022 = vmatmul.mubr.msk.bf16.gmra.mxu0 %vm594_vm0, %v6171_v49 }
 0x333   : > { %6025 = vmatprep.mubr.msk.bf16.mxu0 %vm594_vm0, %v6172_v37 }
 0x33a   : > { %6026 = vmatmul.mubr.msk.bf16.gmra.mxu0 %vm594_vm0, %v6173_v10 }
 0x33b   : > { %6029 = vmatprep.mubr.msk.bf16.mxu0 %vm594_vm0, %v6174_v34 }
 0x342   : > { %6030 = vmatmul.mubr.msk.bf16.gmra.mxu0 %vm594_vm0, %v6175_v41  ;;  %vm4552_vm0 = vcmask 64512  }
 0x343   : > { %6055 = vmatprep.mubr.msk.bf16.mxu0 %vm6241_vm5, %v6240_v13 }
 0x38f   : > { %v5963_v9 = vpop.f32.mrf.mxu1 }
 0x390   : > { %v8494_v17 = vadd.f32 %v5963_v9, %v8485_v47 }
 0x391   : > { %v4076_v28 = vpop.f32.mrf.mxu1 }
 0x392   : > { %v8488_v44 = vadd.f32 %v8485_v47, %v4076_v28 }
 0x393   : > { %v5964_v24 = vpop.f32.mrf.mxu1 }
 0x394   : > { %v8501_v32 = vadd.f32 %v5964_v24, %v8485_v47 }
 0x395   : > { %v4079_v4 = vpop.f32.mrf.mxu1 }
 0x396   : > { %v8491_v52 = vadd.f32 %v8485_v47, %v4079_v4 }
 0x397   : > { %v5967_v7 = vpop.f32.mrf.mxu1 }
 0x398   : > { %v4403_v21 = vadd.f32 %v8491_v52, %v8488_v44  ;;  %v8515_v25 = vadd.f32 %v5967_v7, %v8485_v47 }
 0x399   : > { %v4092_v11 = vpop.f32.mrf.mxu1 }
 0x39a   : > { %v4404_v56 = vadd.f32 %v4403_v21, %v8494_v17  ;;  %v8507_v33 = vadd.f32 %v8485_v47, %v4092_v11 }
 0x39b   : > { %v5968_v63 = vpop.f32.mrf.mxu1 }
 0x39c   : > { %v4405_v58 = vadd.f32 %v4404_v56, %v8501_v32  ;;  %v8521_v46 = vadd.f32 %v5968_v63, %v8485_v47 }
 0x39d   : > { %v4095_v19 = vpop.f32.mrf.mxu1 }
 0x39e   : > { %v4406_v8 = vadd.f32 %v4405_v58, %v8507_v33  ;;  %v8512_v50 = vadd.f32 %v8485_v47, %v4095_v19 }
 0x39f   : > { %v5971_v40 = vpop.f32.mrf.mxu1 }
 0x3a0   : > { %v4407_v31 = vadd.f32 %v4406_v8, %v8512_v50  ;;  %v8535_v35 = vadd.f32 %v5971_v40, %v8485_v47 }
 0x3a1   : > { %v4108_v62 = vpop.f32.mrf.mxu1 }
 0x3a2   : > { %v4408_v22 = vadd.f32 %v4407_v31, %v8515_v25  ;;  %v8527_v39 = vadd.f32 %v8485_v47, %v4108_v62 }
 0x3a3   : > { %v5972_v29 = vpop.f32.mrf.mxu1 }
 0x3a4   : > { %v4409_v14 = vadd.f32 %v4408_v22, %v8521_v46  ;;  %v8543_v43 = vadd.f32 %v5972_v29, %v8485_v47 }
 0x3a5   : > { %v4111_v30 = vpop.f32.mrf.mxu1 }
 0x3a6   : > { %v4410_v26 = vadd.f32 %v4409_v14, %v8527_v39  ;;  %v8532_v1 = vadd.f32 %v8485_v47, %v4111_v30 }
 0x3a7   : > { %v5975_v59 = vpop.f32.mrf.mxu1 }
 0x3a8   : > { %v4411_v27 = vadd.f32 %v4410_v26, %v8532_v1  ;;  %v8555_v51 = vadd.f32 %v5975_v59, %v8485_v47 }
 0x3a9   : > { %v4124_v42 = vpop.f32.mrf.mxu1 }
 0x3aa   : > { %v4412_v48 = vadd.f32 %v4411_v27, %v8535_v35  ;;  %v8547_v55 = vadd.f32 %v8485_v47, %v4124_v42 }
 0x3ab   : > { %v5976_v38 = vpop.f32.mrf.mxu1 }
 0x3ac   : > { %v4413_v61 = vadd.f32 %v4412_v48, %v8543_v43  ;;  %v8563_v2 = vadd.f32 %v5976_v38, %v8485_v47 }
 0x3ad   : > { %v4127_v53 = vpop.f32.mrf.mxu1 }
 0x3ae   : > { %v4414_v18 = vadd.f32 %v4413_v61, %v8547_v55  ;;  %v8552_v36 = vadd.f32 %v8485_v47, %v4127_v53 }
 0x3af   : > { %v5979_v5 = vpop.f32.mrf.mxu1 }
 0x3b0   : > { %v4415_v60 = vadd.f32 %v4414_v18, %v8552_v36  ;;  %v8575_v13 = vadd.f32 %v5979_v5, %v8485_v47 }
 0x3b1   : > { %v4140_v45 = vpop.f32.mrf.mxu1 }
 0x3b2   : > { %v4416_v57 = vadd.f32 %v4415_v60, %v8555_v51  ;;  %v8567_v20 = vadd.f32 %v8485_v47, %v4140_v45  ;;  %9339 = vst [vmem:[#allocation37_spill] sm:$0xff] %v8575_v13 }
 0x3b3   : > { %v5980_v16 = vpop.f32.mrf.mxu1 }
 0x3b4   : > { %v4417_v0 = vadd.f32 %v4416_v57, %v8563_v2  ;;  %v8579_v24 = vadd.f32 %v5980_v16, %v8485_v47 }
 0x3b5   : > { %v4143_v54 = vpop.f32.mrf.mxu1 }
 0x3b6   : > { %v4418_v23 = vadd.f32 %v4417_v0, %v8567_v20  ;;  %v8572_v9 = vadd.f32 %v8485_v47, %v4143_v54  ;;  %9340 = vst [vmem:[#allocation45_spill] sm:$0xff] %v8579_v24 }
 0x3b7   : > { %v5983_v28 = vpop.f32.mrf.mxu1 }
 0x3b8   : > { %v4419_v12 = vadd.f32 %v4418_v23, %v8572_v9  ;;  %v8591_v58 = vadd.f32 %v5983_v28, %v8485_v47 }
 0x3b9   : > { %v4156_v3 = vpop.f32.mrf.mxu1 }
 0x3ba   : > { %v4420_v4 = vadd.f32 %v4419_v12, %v8575_v13  ;;  %v8583_v21 = vadd.f32 %v8485_v47, %v4156_v3  ;;  %9343 = vst [vmem:[#allocation14_spill] sm:$0xff] %v8591_v58 }
 0x3bb   : > { %v5984_v7 = vpop.f32.mrf.mxu1 }
 0x3bc   : > { %9341 = vst [vmem:[#allocation12_spill] sm:$0xff] %v8583_v21  ;;  %v4421_v11 = vadd.f32 %v4420_v4, %v8579_v24  ;;  %v8595_v31 = vadd.f32 %v5984_v7, %v8485_v47  ;;  %v4459_v7 = vld [vmem:[%s8902_s10] sm:$0x1] }
 0x3bd   : > { %v4159_v6 = vpop.f32.mrf.mxu1 }
 0x3be   : > { %v4422_v56 = vadd.f32 %v4421_v11, %v8583_v21  ;;  %v8588_v15 = vadd.f32 %v8485_v47, %v4159_v6  ;;  %9344 = vst [vmem:[#allocation19_spill] sm:$0xff] %v8595_v31 }
 0x3bf   : > { %v5987_v63 = vpop.f32.mrf.mxu1 }
 0x3c0   : > { %9342 = vst [vmem:[#allocation51_spill] sm:$0xff] %v8588_v15  ;;  %v4423_v19 = vadd.f32 %v4422_v56, %v8588_v15  ;;  %v8607_v30 = vadd.f32 %v5987_v63, %v8485_v47 }
 0x3c1   : > { %v4172_v8 = vpop.f32.mrf.mxu1 }
 0x3c2   : > { %v4424_v40 = vadd.f32 %v4423_v19, %v8591_v58  ;;  %v8599_v22 = vadd.f32 %v8485_v47, %v4172_v8  ;;  %9347 = vst [vmem:[#allocation32_spill] sm:$0xff] %v8607_v30  ;;  %v5166_v58 = vld [vmem:[%s8900_s8] ss:$0 sm:$0xff] }
 0x3c3   : > { %v5988_v49 = vpop.f32.mrf.mxu1 }
 0x3c4   : > { %9345 = vst [vmem:[#allocation43_spill] sm:$0xff] %v8599_v22  ;;  %v4425_v62 = vadd.f32 %v4424_v40, %v8595_v31  ;;  %v8611_v10 = vadd.f32 %v5988_v49, %v8485_v47 }
 0x3c5   : > { %v4175_v37 = vpop.f32.mrf.mxu1 }
 0x3c6   : > { %v4426_v14 = vadd.f32 %v4425_v62, %v8599_v22  ;;  %v8604_v29 = vadd.f32 %v8485_v47, %v4175_v37  ;;  %9348 = vst [vmem:[#allocation15_spill] sm:$0xff] %v8611_v10 }
 0x3c7   : > { %v5991_v26 = vpop.f32.mrf.mxu1 }
 0x3c8   : > { %9346 = vst [vmem:[#allocation16_spill] sm:$0xff] %v8604_v29  ;;  %v4427_v59 = vadd.f32 %v4426_v14, %v8604_v29  ;;  %v8623_v5 = vadd.f32 %v5991_v26, %v8485_v47 }
 0x3c9   : > { %v4188_v27 = vpop.f32.mrf.mxu1 }
 0x3ca   : > { %v4428_v42 = vadd.f32 %v4427_v59, %v8607_v30  ;;  %v8615_v48 = vadd.f32 %v8485_v47, %v4188_v27  ;;  %9351 = vst [vmem:[#allocation46_spill] sm:$0xff] %v8623_v5  ;;  %v6003_v40 = vpop.f32.mrf.mxu0 }
 0x3cb   : > { %v5992_v34 = vpop.f32.mrf.mxu1  ;;  %v8640_v15 = vadd.f32 %v6003_v40, %v5166_v58  ;;  %v9353_v40 = vld [vmem:[#allocation6_spill] sm:$0xff] }
 0x3cc   : > { %9349 = vst [vmem:[#allocation42_spill] sm:$0xff] %v8615_v48  ;;  %v4429_v38 = vadd.f32 %v4428_v42, %v8611_v10  ;;  %v8627_v41 = vadd.f32 %v5992_v34, %v8485_v47  ;;  %v4276_v49 = vpop.f32.mrf.mxu0 }
 0x3cd   : > { %v4191_v61 = vpop.f32.mrf.mxu1  ;;  %v8642_v21 = vadd.f32 %v5166_v58, %v4276_v49  ;;  %v4608_v49 = vsub.s32 0, %v9353_v40 }
 0x3ce   : > { %v4430_v53 = vadd.f32 %v4429_v38, %v8615_v48  ;;  %v8620_v18 = vadd.f32 %v8485_v47, %v4191_v61  ;;  %9352 = vst [vmem:[#allocation47_spill] sm:$0xff] %v8627_v41  ;;  %v6004_v62 = vpop.f32.mrf.mxu0 }
 0x3cf   : > { %v8644_v24 = vadd.f32 %v6004_v62, %v5166_v58 }
 0x3d0   : > { %9350 = vst [vmem:[#allocation17_spill] sm:$0xff] %v8620_v18  ;;  %v4431_v60 = vadd.f32 %v4430_v53, %v8620_v18  ;;  %v4279_v37 = vpop.f32.mrf.mxu0 }
 0x3d1   : > { %v8646_v13 = vadd.f32 %v5166_v58, %v4279_v37 }
 0x3d2   : > { %v4432_v45 = vadd.f32 %v4431_v60, %v8623_v5  ;;  %v6007_v14 = vpop.f32.mrf.mxu0 }
 0x3d4   : > { %v4433_v57 = vadd.f32 %v4432_v45, %v8627_v41  ;;  %v4292_v26 = vpop.f32.mrf.mxu0  ;;  %v4551_v41 = vld [vmem:[%s8904_s12] sm:$0x1] }
 0x3d6   : > { %v4434_v16 = vrot.slane %v4433_v57, 4  ;;  %v6008_v59 = vpop.f32.mrf.mxu0 }
 0x3d8   : > { %v4435_v0 = vadd.f32 %v4434_v16, %v4433_v57  ;;  %v4295_v27 = vpop.f32.mrf.mxu0 }
 0x3da   : > { %v4436_v54 = vrot.slane %v4435_v0, 2  ;;  %v6011_v42 = vpop.f32.mrf.mxu0 }
 0x3dc   : > { %v4437_v23 = vadd.f32 %v4436_v54, %v4435_v0  ;;  %v4308_v34 = vpop.f32.mrf.mxu0 }
 0x3de   : > { %v4438_v28 = vrot.slane %v4437_v23, 1  ;;  %v6012_v38 = vpop.f32.mrf.mxu0 }
 0x3e0   : > { %v4439_v12 = vadd.f32 %v4438_v28, %v4437_v23  ;;  %v4311_v61 = vpop.f32.mrf.mxu0 }
 0x3e2   : > { %v4441_v3 = vmul.f32 0.00390625, %v4439_v12  ;;  %v6015_v53 = vpop.f32.mrf.mxu0 }
 0x3e4   : > { %v4442_v4 = vpack.c.bf16 %v4441_v3, %v4441_v3  ;;  %v4324_v60 = vpop.f32.mrf.mxu0 }
 0x3e5   : > { %v8667_v62 = vadd.f32 %v5166_v58, %v4324_v60 }
 0x3e6   : > { %6050 = vmatmul.mubr.bf16.vlgmr.msra.gmra.mxu1 %v4442_v4  ;;  %v6016_v45 = vpop.f32.mrf.mxu0 }
 0x3e7   : > { %v8669_v37 = vadd.f32 %v6016_v45, %v5166_v58 }
 0x3e8   : > { %v4327_v57 = vpop.f32.mrf.mxu0 }
 0x3ea   : > { %v6019_v16 = vpop.f32.mrf.mxu0 }
 0x3ec   : > { %v4340_v0 = vpop.f32.mrf.mxu0 }
 0x3ee   : > { %v6020_v54 = vpop.f32.mrf.mxu0 }
 0x3f0   : > { %v4343_v23 = vpop.f32.mrf.mxu0 }
 0x3f2   : > { %v6023_v28 = vpop.f32.mrf.mxu0 }
 0x3f4   : > { %v4356_v12 = vpop.f32.mrf.mxu0 }
 0x3f6   : > { %v6024_v3 = vpop.f32.mrf.mxu0 }
 0x3f8   : > { %v4359_v4 = vpop.f32.mrf.mxu0 }
 0x3f9   : > { %v8687_v60 = vadd.f32 %v5166_v58, %v4359_v4 }
 0x3fb   : > { %9356 = vst [vmem:[#allocation20_spill] sm:$0xff] %v8687_v60  ;;  %v9378_v60 = vld [vmem:[#allocation47_spill] sm:$0xff] }
 0x4a6   : > { %v4542_v11 = vpop.f32.mrf.mxu1 }
 0x4a7   : > { %v4543_v47 = vadd.f32 %v4542_v11, %v4459_v7  ;;  %v6027_v7 = vpop.f32.mrf.mxu0 }
 0x4a8   : > { %v6051_v6 = vpop.f32.mrf.mxu1  ;;  %v8689_v45 = vadd.f32 %v6027_v7, %v5166_v58 }
 0x4a9   : > { %v4548_v56 = vmax.f32 %v4543_v47, 0.0  ;;  %v4372_v11 = vpop.f32.mrf.mxu0 }
 0x4aa   : > { %v4545_v63 = vpop.f32.mrf.mxu1  ;;  %9357 = vst [vmem:[#allocation38_spill] sm:$0xff] %v8689_v45  ;;  %v9373_v45 = vld [vmem:[#allocation32_spill] sm:$0xff] }
 0x4ab   : > { %v4549_v19 = vpack.c.bf16 %v4548_v56, %v4548_v56  ;;  %v6028_v47 = vpop.f32.mrf.mxu0 }
 0x4ac   : > { %v6052_v8 = vpop.f32.mrf.mxu1 }
 0x4ad   : > { %6056 = vmatmul.mubr.msk.bf16.vlgmr.msra.gmra.mxu0 %vm4552_vm0, %v4549_v19  ;;  %v4375_v6 = vpop.f32.mrf.mxu0 }
 0x4af   : > { %v6031_v56 = vpop.f32.mrf.mxu0 }
 0x4b1   : > { %v4388_v63 = vpop.f32.mrf.mxu0 }
 0x4b3   : > { %v6032_v19 = vpop.f32.mrf.mxu0 }
 0x4b4   : > { %v8701_v40 = vadd.f32 %v6032_v19, %v5166_v58 }
 0x4b5   : > { %v4391_v8 = vpop.f32.mrf.mxu0 }
 0x4b6   : > { %9363 = vst [vmem:[#allocation8_spill] sm:$0xff] %v8701_v40  ;;  %v9368_v40 = vld [vmem:[#allocation51_spill] sm:$0xff] }
 0x56d   : > { %v4594_v5 = vpop.f32.mrf.mxu0 }
 0x56e   : > { %v4595_v18 = vadd.f32 %v4594_v5, %v4551_v41  ;;  %v8662_v5 = vadd.f32 %v5166_v58, %v4311_v61  ;;  %v8664_v41 = vadd.f32 %v6015_v53, %v5166_v58  ;;  %v8683_v61 = vadd.f32 %v5166_v58, %v4356_v12 }
 0x56f   : > { %v6057_v48 = vpop.f32.mrf.mxu0  ;;  %v8685_v53 = vadd.f32 %v6024_v3, %v5166_v58  ;;  %v8703_v12 = vadd.f32 %v5166_v58, %v4391_v8  ;;  %v9365_v8 = vld [vmem:[#allocation37_spill] sm:$0xff] }
 0x570   : > { %v5196_v10 = vmul.f32 -1.442695, %v4595_v18  ;;  %v8648_v48 = vadd.f32 %v6007_v14, %v5166_v58  ;;  %v8660_v18 = vadd.f32 %v6012_v38, %v5166_v58  ;;  %v8671_v14 = vadd.f32 %v5166_v58, %v4327_v57 }
 0x571   : > { %v4597_v30 = vpop.f32.mrf.mxu0  ;;  %9355 = vst [vmem:[#allocation48_spill] sm:$0xff] %v8685_v53  ;;  %v8691_v57 = vadd.f32 %v5166_v58, %v4372_v11  ;;  %9364 = vst [vmem:[#allocation30_spill] sm:$0xff] %v8703_v12  ;;  %v9370_v12 = vld [vmem:[#allocation19_spill] sm:$0xff]  ;;  %v9376_v53 = vld [vmem:[#allocation17_spill] sm:$0xff] }
 0x572   : > { %6156 = vpow2.f32 %v5196_v10  ;;  %v8650_v30 = vadd.f32 %v5166_v58, %v4292_v26  ;;  %v8658_v10 = vadd.f32 %v5166_v58, %v4308_v34  ;;  %v8673_v26 = vadd.f32 %v6019_v16, %v5166_v58 }
 0x573   : > { %v6058_v29 = vpop.f32.mrf.mxu0  ;;  %v8681_v34 = vadd.f32 %v6023_v28, %v5166_v58  ;;  %9358 = vst [vmem:[#allocation7_spill] sm:$0xff] %v8691_v57  ;;  %v8693_v16 = vadd.f32 %v6028_v47, %v5166_v58  ;;  %v8699_v28 = vadd.f32 %v5166_v58, %v4388_v63  ;;  %v9375_v57 = vld [vmem:[#allocation42_spill] sm:$0xff] }
 0x574   : > { %v8652_v29 = vadd.f32 %v6008_v59, %v5166_v58  ;;  %v8675_v59 = vadd.f32 %v5166_v58, %v4340_v0  ;;  %v8695_v0 = vadd.f32 %v5166_v58, %v4375_v6 }
 0x575   : > { %9354 = vst [vmem:[#allocation13_spill] sm:$0xff] %v8681_v34  ;;  %9359 = vst [vmem:[#allocation50_spill] sm:$0xff] %v8693_v16  ;;  %v9372_v16 = vld [vmem:[#allocation16_spill] sm:$0xff]  ;;  %v9377_v34 = vld [vmem:[#allocation46_spill] sm:$0xff] }
 0x576   : > { %9360 = vst [vmem:[#allocation25_spill] sm:$0xff] %v8695_v0  ;;  %9362 = vst [vmem:[#allocation27_spill] sm:$0xff] %v8699_v28  ;;  %v9371_v28 = vld [vmem:[#allocation43_spill] sm:$0xff] }
 0x577   : > { %v9374_v0 = vld [vmem:[#allocation15_spill] sm:$0xff] }
 0x57f   : > { %v6157_v22 = vpop.eup %6156 }
 0x580   : > { %v4603_v31 = vadd.f32 1.0, %v6157_v22  ;;  %v8654_v22 = vadd.f32 %v5166_v58, %v4295_v27  ;;  %v8677_v27 = vadd.f32 %v6020_v54, %v5166_v58 }
 0x582   : > { %6158 = vrcp.f32 %v4603_v31  ;;  %v8656_v31 = vadd.f32 %v6011_v42, %v5166_v58  ;;  %v8679_v42 = vadd.f32 %v5166_v58, %v4343_v23  ;;  %v8697_v23 = vadd.f32 %v6031_v56, %v5166_v58 }
 0x584   : > { %9361 = vst [vmem:[#allocation21_spill] sm:$0xff] %v8697_v23  ;;  %v9369_v23 = vld [vmem:[#allocation14_spill] sm:$0xff] }
 0x58f   : > { %v6159_v38 = vpop.eup %6158 }
 0x590   : > { %v4609_v54 = vrot.slane %v6159_v38, %v4608_v49  ;;  %v9366_v49 = vld [vmem:[#allocation45_spill] sm:$0xff]  ;;  %v9367_v38 = vld [vmem:[#allocation12_spill] sm:$0xff] }
 0x592   : > { %v4610_v3 = vmul.f32 %v4609_v54, %v8488_v44  ;;  %v4611_v4 = vmul.f32 %v4609_v54, %v8491_v52  ;;  %v4612_v7 = vmul.f32 %v4609_v54, %v8494_v17  ;;  %v4613_v11 = vmul.f32 %v4609_v54, %v8501_v32 }
 0x593   : > { %v4614_v47 = vmul.f32 %v4609_v54, %v8507_v33  ;;  %v4615_v6 = vmul.f32 %v4609_v54, %v8512_v50  ;;  %v4616_v56 = vmul.f32 %v4609_v54, %v8515_v25  ;;  %v4617_v63 = vmul.f32 %v4609_v54, %v8521_v46 }
 0x594   : > { %v4618_v19 = vmul.f32 %v4609_v54, %v8527_v39  ;;  %v4619_v58 = vmul.f32 %v4609_v54, %v8532_v1  ;;  %v4620_v44 = vmul.f32 %v4609_v54, %v8535_v35  ;;  %v4621_v52 = vmul.f32 %v4609_v54, %v8543_v43 }
 0x595   : > { %v4622_v17 = vmul.f32 %v4609_v54, %v8547_v55  ;;  %v4623_v32 = vmul.f32 %v4609_v54, %v8552_v36  ;;  %v4624_v33 = vmul.f32 %v4609_v54, %v8555_v51  ;;  %v4625_v50 = vmul.f32 %v4609_v54, %v8563_v2 }
 0x596   : > { %v4626_v25 = vmul.f32 %v4609_v54, %v8567_v20  ;;  %v4627_v46 = vmul.f32 %v4609_v54, %v8572_v9  ;;  %v4628_v39 = vmul.f32 %v4609_v54, %v9365_v8  ;;  %v4629_v1 = vmul.f32 %v4609_v54, %v9366_v49 }
 0x597   : > { %v4630_v35 = vmul.f32 %v4609_v54, %v9367_v38  ;;  %v4631_v43 = vmul.f32 %v4609_v54, %v9368_v40  ;;  %v4632_v55 = vmul.f32 %v4609_v54, %v9369_v23  ;;  %v4633_v36 = vmul.f32 %v4609_v54, %v9370_v12 }
 0x598   : > { %v4634_v51 = vmul.f32 %v4609_v54, %v9371_v28  ;;  %v4635_v2 = vmul.f32 %v4609_v54, %v9372_v16  ;;  %v4636_v20 = vmul.f32 %v4609_v54, %v9373_v45  ;;  %v4637_v9 = vmul.f32 %v4609_v54, %v9374_v0  ;;  %v9380_v28 = vld [vmem:[#allocation13_spill] sm:$0xff] }
 0x599   : > { %v4638_v8 = vmul.f32 %v4609_v54, %v9375_v57  ;;  %v4639_v49 = vmul.f32 %v4609_v54, %v9376_v53  ;;  %v4640_v38 = vmul.f32 %v4609_v54, %v9377_v34  ;;  %v4641_v40 = vmul.f32 %v4609_v54, %v9378_v60 }
 0x59a   : > { %v8738_v23 = vadd.f32 %v4610_v3, %v8642_v21  ;;  %v8741_v12 = vadd.f32 %v4611_v4, %v8646_v13  ;;  %v8744_v16 = vadd.f32 %v4612_v7, %v8640_v15  ;;  %v8747_v45 = vadd.f32 %v4613_v11, %v8644_v24  ;;  %v9381_v3 = vld [vmem:[#allocation48_spill] sm:$0xff]  ;;  %v9382_v4 = vld [vmem:[#allocation7_spill] sm:$0xff] }
 0x59b   : > { %v8750_v57 = vadd.f32 %v4614_v47, %v8650_v30  ;;  %v8753_v53 = vadd.f32 %v4615_v6, %v8654_v22  ;;  %v8756_v34 = vadd.f32 %v4616_v56, %v8648_v48  ;;  %v8759_v21 = vadd.f32 %v4617_v63, %v8652_v29  ;;  %v9388_v63 = vld [vmem:[#allocation21_spill] sm:$0xff] }
 0x59c   : > { %v8762_v13 = vadd.f32 %v4618_v19, %v8658_v10  ;;  %v8765_v15 = vadd.f32 %v4619_v58, %v8662_v5  ;;  %v8768_v24 = vadd.f32 %v4620_v44, %v8656_v31  ;;  %v8771_v30 = vadd.f32 %v4621_v52, %v8660_v18  ;;  %v9389_v58 = vld [vmem:[#allocation8_spill] sm:$0xff] }
 0x59d   : > { %v8774_v22 = vadd.f32 %v4622_v17, %v8667_v62  ;;  %v8777_v48 = vadd.f32 %v4623_v32, %v8671_v14  ;;  %v8780_v29 = vadd.f32 %v4624_v33, %v8664_v41  ;;  %v4657_v10 = vadd.f32 %v4625_v50, %v8669_v37  ;;  %v9379_v62 = vld [vmem:[#allocation20_spill] sm:$0xff] }
 0x59e   : > { %v4658_v5 = vadd.f32 %v4626_v25, %v8675_v59  ;;  %v4659_v60 = vadd.f32 %v4627_v46, %v8679_v42  ;;  %v4660_v31 = vadd.f32 %v4628_v39, %v8673_v26  ;;  %v4661_v18 = vadd.f32 %v4629_v1, %v8677_v27  ;;  %v9383_v59 = vld [vmem:[#allocation25_spill] sm:$0xff]  ;;  %v9384_v42 = vld [vmem:[#allocation38_spill] sm:$0xff]  ;;  %v9386_v27 = vld [vmem:[#allocation27_spill] sm:$0xff] }
 0x59f   : > { %v4662_v0 = vadd.f32 %v4630_v35, %v8683_v61  ;;  %v4663_v54 = vadd.f32 %v4631_v43, %v9379_v62  ;;  %v4664_v14 = vadd.f32 %v4632_v55, %v9380_v28  ;;  %v4665_v41 = vadd.f32 %v4633_v36, %v9381_v3  ;;  %v9385_v26 = vld [vmem:[#allocation50_spill] sm:$0xff] }
 0x5a0   : > { %v8793_v37 = vadd.f32 %v4634_v51, %v9382_v4  ;;  %v4667_v7 = vadd.f32 %v4635_v2, %v9383_v59  ;;  %v4668_v11 = vadd.f32 %v4636_v20, %v9384_v42  ;;  %v4669_v47 = vadd.f32 %v4637_v9, %v9385_v26  ;;  %v9387_v61 = vld [vmem:[#allocation30_spill] sm:$0xff] }
 0x5a1   : > { %v4670_v6 = vadd.f32 %v4638_v8, %v9386_v27  ;;  %v4671_v56 = vadd.f32 %v4639_v49, %v9387_v61  ;;  %v4672_v19 = vadd.f32 %v4640_v38, %v9388_v63  ;;  %v4673_v44 = vadd.f32 %v4641_v40, %v9389_v58 }
 0x5a2   : > { %v4674_v52 = vmax.f32 %v8738_v23, 0.0  ;;  %v4675_v17 = vmax.f32 %v8741_v12, 0.0  ;;  %v4676_v32 = vmax.f32 %v8744_v16, 0.0  ;;  %v4677_v33 = vmax.f32 %v8747_v45, 0.0 }
 0x5a3   : > { %v4678_v50 = vmax.f32 %v8750_v57, 0.0  ;;  %v4679_v25 = vmax.f32 %v8753_v53, 0.0  ;;  %v4680_v46 = vmax.f32 %v8756_v34, 0.0  ;;  %v4681_v39 = vmax.f32 %v8759_v21, 0.0 }
 0x5a4   : > { %v4682_v1 = vmax.f32 %v8762_v13, 0.0  ;;  %v4683_v35 = vmax.f32 %v8765_v15, 0.0  ;;  %v4684_v43 = vmax.f32 %v8768_v24, 0.0  ;;  %v4685_v55 = vmax.f32 %v8771_v30, 0.0 }
 0x5a5   : > { %v4686_v36 = vmax.f32 %v8774_v22, 0.0  ;;  %v4687_v51 = vmax.f32 %v8777_v48, 0.0  ;;  %v4688_v2 = vmax.f32 %v8780_v29, 0.0  ;;  %v4689_v20 = vmax.f32 %v4657_v10, 0.0 }
 0x5a6   : > { %v4690_v9 = vmax.f32 %v4658_v5, 0.0  ;;  %v4691_v8 = vmax.f32 %v4659_v60, 0.0  ;;  %v4692_v49 = vmax.f32 %v4660_v31, 0.0  ;;  %v4693_v38 = vmax.f32 %v4661_v18, 0.0 }
 0x5a7   : > { %v4694_v40 = vmax.f32 %v4662_v0, 0.0  ;;  %v4695_v23 = vmax.f32 %v4663_v54, 0.0  ;;  %v4696_v12 = vmax.f32 %v4664_v14, 0.0  ;;  %v4697_v16 = vmax.f32 %v4665_v41, 0.0 }
 0x5a8   : > { %v4698_v45 = vmax.f32 %v8793_v37, 0.0  ;;  %v4699_v57 = vmax.f32 %v4667_v7, 0.0  ;;  %v4700_v53 = vmax.f32 %v4668_v11, 0.0  ;;  %v4701_v34 = vmax.f32 %v4669_v47, 0.0 }
 0x5a9   : > { %v4702_v21 = vmax.f32 %v4670_v6, 0.0  ;;  %v4703_v13 = vmax.f32 %v4671_v56, 0.0  ;;  %v4704_v15 = vmax.f32 %v4672_v19, 0.0  ;;  %v4705_v24 = vmax.f32 %v4673_v44, 0.0 }
 0x5aa   : > { %v5270_v30 = vpack.c.bf16 %v4675_v17, %v4674_v52  ;;  %v5275_v22 = vpack.c.bf16 %v4677_v33, %v4676_v32  ;;  %v5280_v48 = vpack.c.bf16 %v4679_v25, %v4678_v50  ;;  %v5285_v29 = vpack.c.bf16 %v4681_v39, %v4680_v46 }
 0x5ab   : > { %v5290_v10 = vpack.c.bf16 %v4683_v35, %v4682_v1  ;;  %v5295_v5 = vpack.c.bf16 %v4685_v55, %v4684_v43  ;;  %v5300_v60 = vpack.c.bf16 %v4687_v51, %v4686_v36  ;;  %v5305_v31 = vpack.c.bf16 %v4689_v20, %v4688_v2 }
 0x5ac   : > { %v5310_v18 = vpack.c.bf16 %v4691_v8, %v4690_v9  ;;  %v5315_v0 = vpack.c.bf16 %v4693_v38, %v4692_v49  ;;  %v5320_v62 = vpack.c.bf16 %v4695_v23, %v4694_v40  ;;  %v5325_v54 = vpack.c.bf16 %v4697_v16, %v4696_v12  ;;  %5271 = vst [vmem:[%s8824_s21] sm:$0xff] %v5270_v30  }
 0x5ad   : > { %5347 = vst [vmem:[%s8824_s21 + $0x8] sm:$0xff] %v5275_v22   ;;  %5348 = vst [vmem:[%s8824_s21 + $0x10] sm:$0xff] %v5280_v48   ;;  %v5330_v28 = vpack.c.bf16 %v4699_v57, %v4698_v45  ;;  %v5335_v14 = vpack.c.bf16 %v4701_v34, %v4700_v53  ;;  %v5340_v3 = vpack.c.bf16 %v4703_v13, %v4702_v21 }
 0x5ae   : > { %5349 = vst [vmem:[%s8824_s21 + $0x18] sm:$0xff] %v5285_v29   ;;  %v5345_v41 = vpack.c.bf16 %v4705_v24, %v4704_v15  ;;  %5350 = vst [vmem:[%s8824_s21 + $0x20] sm:$0xff] %v5290_v10  }
 0x5af   : > { %5351 = vst [vmem:[%s8824_s21 + $0x28] sm:$0xff] %v5295_v5   ;;  %5352 = vst [vmem:[%s8824_s21 + $0x30] sm:$0xff] %v5300_v60  }
 0x5b0   : > { %5353 = vst [vmem:[%s8824_s21 + $0x38] sm:$0xff] %v5305_v31   ;;  %5354 = vst [vmem:[%s8824_s21 + $0x40] sm:$0xff] %v5310_v18  }
 0x5b1   : > { %5355 = vst [vmem:[%s8824_s21 + $0x48] sm:$0xff] %v5315_v0   ;;  %5356 = vst [vmem:[%s8824_s21 + $0x50] sm:$0xff] %v5320_v62  }
 0x5b2   : > { %5357 = vst [vmem:[%s8824_s21 + $0x58] sm:$0xff] %v5325_v54   ;;  %5358 = vst [vmem:[%s8824_s21 + $0x60] sm:$0xff] %v5330_v28  }
 0x5b3   : > { %5359 = vst [vmem:[%s8824_s21 + $0x68] sm:$0xff] %v5335_v14   ;;  %5360 = vst [vmem:[%s8824_s21 + $0x70] sm:$0xff] %v5340_v3  }
 0x5b4   : > { %5361 = vst [vmem:[%s8824_s21 + $0x78] sm:$0xff] %v5345_v41  }
 0x5b5   : > { %6189 = shalt.err (!%p6186_p3)
}
 0x5b6   : > { %s6190_s20 = scalar_lea.hbm %s8834_s30, 2048  ;;  %s6194_s23 = scalar_lea.hbm %s8905_s13, 4096 }
 0x5b7   : > { %p6191_p4 = scmp.ne.s32.totalorder %s8834_s30, %s6190_s20  ;;  %p6195_p9 = scmp.lt.s32.totalorder %s8834_s30, %s8905_s13 }
 0x5b8   : > { %p6196_p10 = scmp.lt.s32.totalorder %s6194_s23, %s6190_s20 }
 0x5b9   : > { %p6192_p7 = pnand %p6191_p4, %p6353_p5 }
 0x5ba   : > { %p6197_p11 = por %p6196_p10, %p6195_p9 }
 0x5bb   : > { %p6193_p8 = pneg %p6192_p7 }
 0x5bd   : > { %p6198_p12 = pnand %p6197_p11, %p6193_p8 }
 0x5bf   : > { %6201 = shalt.err (!%p6198_p12)
}
 0x5c0   : > { %s6243_s16 = smov 64   ;;  %s6244_s24 = smov 4  }
 0x5c1   : > { %6059 = dma.vmem_to_hbm [thread:$0]  (%p6353_p5), %s8836_s17, 2048, %s8834_s30, %s8852_s15, %s6243_s16, %s6243_s16, %s6244_s24  }
 0x5c2 PF: > { %p6065_p13 = scmp.ge.s32.totalorder %s6236_s28, 2  ;;  %s4895_s29 = sand.u32 1, %s6224_s25  }
 0x5c3   : > { %s4896_s0 = scalar_lea.sflag [#allocation3], %s4895_s29 }
 0x5c4   : > { %p6062_p0 = pnand %p6065_p13, %p6357_p6 }
 0x5c6   : > { %p6063_p1 = pneg %p6062_p0 }
 0x5c8   : > { %6219 = dma.done.wait (%p6063_p1), %s4896_s0, 2048  }
 0x5c9   : > { %6221 = vsyncadd (%p6063_p1), %s4896_s0, 4294965248  ;;  %s9390_s1 = sld [smem:[#allocation5_spill]]  ;;  %p23_p2 = scmp.ge.s32.totalorder %s6340_s14, 4  }
 0x5ca   : > { %s9391_s25 = smov %s6228_s26  ;;  %s9392_s26 = smov %s6232_s27 }
 0x5cb   : > { %s9394_s28 = smov %s6340_s14  ;;  %25 = sbr.rel (!%p23_p2) target bundleno = 6 (0x6), region = 107 }
 0x5cf   : > { %s9393_s27 = smov %s9390_s1 }
 0x5d0   :  { %4901 = vsyncpa [#allocation3], 1 }
 0x5d1   :  { %4903 = vsyncpa [#allocation3 + $0x1], 1 }

</bundles_post_ra>
